<compile_context>
chip_gen: v5e
topology: v5e:2x2
jax: 0.10.0
libtpu: 0.0.40
codegen_flags: <defaults>
</compile_context>

<pallas_src>
import functools

import jax
import jax.numpy as jnp
from jax import lax
from jax.experimental import pallas as pl
from jax.experimental.pallas import tpu as pltpu


# ---------------------------------------------------------------------------
# In-kernel helpers
# ---------------------------------------------------------------------------

def _gauss_jordan_solve(S, B):
    """Solve S X = B for SPD S (no pivoting needed) fully inside the kernel.

    Slice-based, statically unrolled Gauss-Jordan: per iteration one pivot-row
    slice, one pivot-column slice and a single rank-1 update.  Subtracting the
    unit vector e_i from the pivot column makes the same update eliminate the
    other rows and leave row i equal to the normalized pivot row, so no masked
    selects or cross-axis reductions are required.

    S: (n, n), B: (n, m) -> X: (n, m).   Intended for n <= 32.
    """
    n = S.shape[0]
    M = jnp.concatenate([S, B], axis=1)                    # (n, n + m)
    row_iota = lax.broadcasted_iota(jnp.int32, (n, 1), 0)
    for i in range(n):                                     # static unroll
        prow = M[i:i + 1, :]                               # (1, n+m)
        piv = M[i:i + 1, i:i + 1]                          # (1, 1)
        prow_n = prow * (1.0 / piv)
        colv = M[:, i:i + 1] - (row_iota == i).astype(M.dtype)
        M = M - colv * prow_n
    return M[:, n:]


# ---------------------------------------------------------------------------
# Pallas kernels
# ---------------------------------------------------------------------------

def _matern32_gram_kernel(scal_ref, x_ref, xt_ref, out_ref, *, d, normalize):
    """Matern-3/2 Gram matrix via VPU outer differences (d is tiny)."""
    ls = scal_ref[0]
    mag = scal_ref[1]
    X = x_ref[...]                                          # (n, d)
    Xt = xt_ref[...]                                        # (d, n)
    n = X.shape[0]
    d2 = jnp.zeros((n, n), jnp.float32)
    for k in range(d):                                      # static, d ~ 2
        diff = X[:, k:k + 1] - Xt[k:k + 1, :]
        d2 = d2 + diff * diff
    arg = (jnp.sqrt(3.0) / ls) * jnp.sqrt(d2)
    K = mag * (1.0 + arg) * jnp.exp(-arg)
    if normalize:  # row-normalisation used by compute_K_w (exact division)
        K = K / jnp.sum(K, axis=1, keepdims=True)
    out_ref[...] = K


def _filtsmooth_kernel(scal_ref, valid_ref, m0_ref, p0_ref, sig_ref, y_ref,
                       ms_ref, ps_ref, mp_ref, pp_ref,
                       *, n_r, n_steps, smoothing):
    """Fused Kalman filter + RTS smoother, single invocation, history in VMEM.

    State basis is the permuted [positions; velocities] ordering so that
    A = kron(At, I_r) acts as 2x2 block arithmetic on row/column halves.
    Means are lane-dense (1, L) rows; covariances are (L, L).
    The output refs double as the in-VMEM history used by the smoother.
    """
    a00 = scal_ref[0]
    a01 = scal_ref[1]
    a10 = scal_ref[2]
    a11 = scal_ref[3]
    var_y = scal_ref[4]

    Sig = sig_ref[...]
    rows = lax.broadcasted_iota(jnp.int32, (n_r, n_r), 0)
    cols = lax.broadcasted_iota(jnp.int32, (n_r, n_r), 1)
    R_diag = jnp.where(rows == cols, var_y, 0.0)            # var_y * I_{n_r}

    m0 = m0_ref[...]
    P0 = p0_ref[...]
    ms_ref[0] = m0
    ps_ref[0] = P0
    mp_ref[0] = m0
    pp_ref[0] = P0

    def predict(m, P):
        mx, mv = m[:, :n_r], m[:, n_r:]
        m_pred = jnp.concatenate([a00 * mx + a01 * mv, a10 * mx + a11 * mv],
                                 axis=1)
        Pt, Pb = P[:n_r, :], P[n_r:, :]
        AP = jnp.concatenate([a00 * Pt + a01 * Pb, a10 * Pt + a11 * Pb], axis=0)
        APl, APr = AP[:, :n_r], AP[:, n_r:]
        P_pred = jnp.concatenate([a00 * APl + a01 * APr, a10 * APl + a11 * APr],
                                 axis=1) + Sig
        return m_pred, P_pred

    # ---- forward filter (straight-line, gated; no branches per step) ----
    def filter_body(k, carry):
        m, P = carry
        m_pred, P_pred = predict(m, P)
        mp_ref[k + 1] = m_pred
        pp_ref[k + 1] = P_pred

        gate = valid_ref[k]                 # 1.0 if data at step k, else 0.0
        y_row = y_ref[k]                    # (1, n_r), NaNs already zeroed
        HP = P_pred[:n_r, :]                # H P_pred            (n_r, L)
        S = HP[:, :n_r] + R_diag            # R + H P_pred H^T    (SPD)
        X = _gauss_jordan_solve(S, HP)      # S^{-1} H P_pred ; gain K = X^T
        innov = gate * (y_row - m_pred[:, :n_r])   # R R^{-1} Y - f_hat
        m_new = m_pred + jnp.dot(innov, X, preferred_element_type=jnp.float32)
        KHP = lax.dot_general(X, HP, (((0,), (0,)), ((), ())),
                              preferred_element_type=jnp.float32)
        # TODO(synk): matches the reference P_pred - K H P_pred (non-Joseph).
        P_new = P_pred - gate * KHP
        ms_ref[k + 1] = m_new
        ps_ref[k + 1] = P_new
        return m_new, P_new

    lax.fori_loop(0, n_steps, filter_body, (m0, P0))

    # ---- backward RTS smoother (in-place on ms/ps, like the reference) ----
    if smoothing:
        def smooth_body(j, carry):
            ms_next, Ps_next = carry         # smoothed state at k+1
            k = n_steps - 1 - j
            ms_k = ms_ref[k]                 # filtered mean at k   (1, L)
            Ps_k = ps_ref[k]                 # filtered cov  at k   (L, L)
            m_pred_next = mp_ref[k + 1]      # predicted mean at k+1
            P_pred_next = pp_ref[k + 1]      # predicted cov  at k+1

            Pt, Pb = Ps_k[:n_r, :], Ps_k[n_r:, :]
            APs = jnp.concatenate([a00 * Pt + a01 * Pb, a10 * Pt + a11 * Pb],
                                  axis=0)    # A @ Ps_k
            # Smoother gain C = Ps_k A^T P_pred^{-1} = X^T.
            X = _gauss_jordan_solve(P_pred_next, APs)

            dm = ms_next - m_pred_next                               # (1, L)
            dP = Ps_next - P_pred_next                               # (L, L)
            ms_new = ms_k + jnp.dot(dm, X, preferred_element_type=jnp.float32)
            T1 = jnp.dot(dP, X, preferred_element_type=jnp.float32)
            Ps_new = Ps_k + lax.dot_general(X, T1, (((0,), (0,)), ((), ())),
                                            preferred_element_type=jnp.float32)
            ms_ref[k] = ms_new
            ps_ref[k] = Ps_new
            return ms_new, Ps_new

        lax.fori_loop(0, n_steps, smooth_body,
                      (ms_ref[n_steps], ps_ref[n_steps]))


# ---------------------------------------------------------------------------
# Pallas wrappers
# ---------------------------------------------------------------------------

_VMEM = pl.BlockSpec(memory_space=pltpu.MemorySpace.VMEM)
_SMEM = pl.BlockSpec(memory_space=pltpu.MemorySpace.SMEM)


def matern32_gram(X, lengthscale, magnitude, *, normalize=False):
    X = X.astype(jnp.float32)
    n, d = X.shape
    scal = jnp.stack([jnp.asarray(lengthscale, jnp.float32),
                      jnp.asarray(magnitude, jnp.float32)])
    return pl.pallas_call(
        functools.partial(_matern32_gram_kernel, d=d, normalize=normalize),
        out_shape=jax.ShapeDtypeStruct((n, n), jnp.float32),
        in_specs=[_SMEM, _VMEM, _VMEM],
        out_specs=_VMEM,
    )(scal, X, X.T)


def _run_filtsmooth(scalars, valid, m0, P0, Sig, Y_rows, *, smoothing):
    """Entire filter + smoother in one pallas_call (history stays in VMEM)."""
    n_steps, _, n_r = Y_rows.shape
    L = m0.shape[1]
    n_t_pad = n_steps + 1
    out_shape = (
        jax.ShapeDtypeStruct((n_t_pad, 1, L), jnp.float32),   # (smoothed) means
        jax.ShapeDtypeStruct((n_t_pad, L, L), jnp.float32),   # (smoothed) covs
        jax.ShapeDtypeStruct((n_t_pad, 1, L), jnp.float32),   # predicted means
        jax.ShapeDtypeStruct((n_t_pad, L, L), jnp.float32),   # predicted covs
    )
    return pl.pallas_call(
        functools.partial(_filtsmooth_kernel, n_r=n_r, n_steps=n_steps,
                          smoothing=smoothing),
        out_shape=out_shape,
        in_specs=[_SMEM, _SMEM, _VMEM, _VMEM, _VMEM, _VMEM],
        out_specs=(_VMEM, _VMEM, _VMEM, _VMEM),
    )(scalars, valid, m0, P0, Sig, Y_rows)


# ---------------------------------------------------------------------------
# Model glue (parameters, padding, SDE matrices, forward driver)
# ---------------------------------------------------------------------------

def _matern32_state_space(lengthscale, magnitude, dt):
    """Matern-3/2 temporal SDE (MaternProcess with p=1)."""
    lam = jnp.sqrt(3.0) / lengthscale
    Sig0 = jnp.diag(jnp.stack([magnitude, magnitude * lam ** 2]))
    e = jnp.exp(-lam * dt)
    At = e * jnp.stack([
        jnp.stack([1.0 + lam * dt, dt]),
        jnp.stack([-(lam ** 2) * dt, 1.0 - lam * dt]),
    ])
    Sigt = Sig0 - At @ Sig0 @ At.T
    return At.astype(jnp.float32), Sigt.astype(jnp.float32), Sig0.astype(jnp.float32)


def spatio_temporal_rcgp_forward(params, ts, grid, Ys, p=1, smoothing=True,
                                 m0_data=False, with_K_w=False):
    """Mirrors SpatioTemporalRCGP.forward() in the default (non-robust,
    constant-prior-mean, p=1) configuration."""
    assert p == 1, "this Pallas port implements the module default p=1"

    var_y = jax.nn.softplus(params["raw_var_y"])
    t_len = jax.nn.softplus(params["raw_temporal_lengthscale"])
    t_mag = jax.nn.softplus(params["raw_temporal_magnitude"])
    s_len = jax.nn.softplus(params["raw_spatial_lengthscale"])
    s_mag = jax.nn.softplus(params["raw_spatial_magnitude"])

    ts = ts.astype(jnp.float32)
    grid = grid.astype(jnp.float32)
    Ys = Ys.astype(jnp.float32)
    n_r = grid.shape[0]
    step = p + 1
    L = n_r * step

    # ---- padding (prepend/append one time step with NaN data rows) ----
    t0 = (ts[0] - (ts[1] - ts[0]))[None]
    tf = (ts[-1] + (ts[-1] - ts[-2]))[None]
    ts_pad = jnp.concatenate([t0, ts, tf], axis=0)
    nan_row = jnp.full((1, n_r, 1), jnp.nan, jnp.float32)
    Ys_pad = jnp.concatenate([nan_row, Ys, nan_row], axis=0)
    n_t_pad = Ys_pad.shape[0]
    n_steps = n_t_pad - 1

    # ---- spatial Gram matrix ----
    K_spatial = matern32_gram(grid, s_len, s_mag, normalize=False)
    if with_K_w:
        _ = matern32_gram(grid, 4.0, 1.0, normalize=True)   # K_w (unused output)

    # ---- temporal SDE; state in the permuted [positions; velocities] basis,
    #      where kron(I_r, At) becomes kron(At, I_r) ----
    # TODO(synk): dt uses only the first padded interval (the reference module
    #             does the same and implicitly assumes uniform time spacing).
    dt = ts_pad[1, 0] - ts_pad[0, 0]
    At, Sigt, Sig0_t = _matern32_state_space(t_len, t_mag, dt)
    Sig = jnp.kron(Sigt, K_spatial)            # permuted kron(K_spatial, Sigt)
    P0 = jnp.kron(Sig0_t, K_spatial)           # permuted kron(K_spatial, Sig0)

    m0 = jnp.zeros((1, L), jnp.float32)
    if m0_data:
        m0 = m0.at[0, :n_r].set(Ys_pad[1, :, 0])

    scalars = jnp.stack([At[0, 0], At[0, 1], At[1, 0], At[1, 1],
                         var_y]).astype(jnp.float32)
    # Per-step data-availability flags (scalar gate) + NaN-cleaned data rows.
    valid = (~jnp.any(jnp.isnan(Ys_pad[1:]), axis=(1, 2))).astype(jnp.float32)
    Y_rows = jnp.nan_to_num(jnp.transpose(Ys_pad[1:], (0, 2, 1)))  # (n_steps,1,n_r)

    # ---- fused filter + smoother (single kernel, history in VMEM) ----
    ms_all, Ps_all, m_pr, P_pr = _run_filtsmooth(
        scalars, valid, m0, P0, Sig, Y_rows, smoothing=smoothing)

    # ---- outputs (H selects the position block = first n_r permuted entries) --
    preds_filt = m_pr[1:-1, 0, :n_r][..., None]              # (n_t, n_r, 1)
    covs_filt = P_pr[1:-1, :n_r, :n_r]                       # (n_t, n_r, n_r)
    preds_smooth = ms_all[1:-1, 0, :n_r]                     # (n_t, n_r)
    covs_smooth = Ps_all[1:-1, :n_r, :n_r]
    stds_smooth = jnp.sqrt(jnp.diagonal(covs_smooth, axis1=1, axis2=2)).squeeze()
    R = var_y * jnp.eye(n_r, dtype=jnp.float32)

    beta = jnp.sqrt(var_y / 2.0)
    has_data = jnp.logical_not(jnp.any(jnp.isnan(Ys_pad), axis=(1, 2)))
    Ws = jnp.where(has_data, beta, 0.0)[:, None, None] * jnp.ones(
        (n_t_pad, n_r, 1), jnp.float32)
    Ws_norm = Ws[1:-1] / jnp.sum(Ws)
    eff = (Ws / beta)[1:-1]

    # Permute back to the module's interleaved [x_0, v_0, x_1, v_1, ...] basis
    # via reshape/transpose (the permutation is a regular interleave).
    ms_out = (ms_all.reshape(n_t_pad, step, n_r)
              .transpose(0, 2, 1).reshape(n_t_pad, L, 1))
    Ps_out = (Ps_all.reshape(n_t_pad, step, n_r, step, n_r)
              .transpose(0, 2, 1, 4, 3).reshape(n_t_pad, L, L))

    return ((preds_smooth, stds_smooth, eff),
            (preds_filt, covs_filt, R, Ws_norm),
            (ms_out, Ps_out))


# ---------------------------------------------------------------------------
# Demo
# ---------------------------------------------------------------------------

if __name__ == "__main__":
    key = jax.random.PRNGKey(0)
    k_grid, k_y = jax.random.split(key)

    n_t, n_r, d_space, p = 8, 16, 2, 1
    ts = (jnp.arange(n_t, dtype=jnp.float32) * 0.1).reshape(n_t, 1)
    grid = jax.random.uniform(k_grid, (n_r, d_space), dtype=jnp.float32)
    Ys = jax.random.normal(k_y, (n_t, n_r, 1), dtype=jnp.float32)

    # Deterministic parameter init matching the module defaults (raw_* = 1.0).
    params = {
        "raw_var_y": jnp.float32(1.0),
        "raw_temporal_lengthscale": jnp.float32(1.0),
        "raw_temporal_magnitude": jnp.float32(1.0),
        "raw_spatial_lengthscale": jnp.float32(1.0),
        "raw_spatial_magnitude": jnp.float32(1.0),
    }

    fwd = jax.jit(functools.partial(spatio_temporal_rcgp_forward,
                                    p=p, smoothing=True, m0_data=False))
    out = fwd(params, ts, grid, Ys)
    jax.block_until_ready(out)

    (preds_smooth, stds_smooth, eff), (preds_filt, covs_filt, R, Ws_norm), (ms, Ps) = out
    L = n_r * (p + 1)
    assert preds_smooth.shape == (n_t, n_r)
    assert stds_smooth.shape == (n_t, n_r)
    assert eff.shape == (n_t, n_r, 1)
    assert preds_filt.shape == (n_t, n_r, 1)
    assert covs_filt.shape == (n_t, n_r, n_r)
    assert R.shape == (n_r, n_r)
    assert Ws_norm.shape == (n_t, n_r, 1)
    assert ms.shape == (n_t + 2, L, 1)
    assert Ps.shape == (n_t + 2, L, L)
    assert bool(jnp.all(jnp.isfinite(preds_smooth)))
    assert bool(jnp.all(jnp.isfinite(stds_smooth)))
    assert bool(jnp.all(jnp.isfinite(Ps)))
    print("KERNEL_OK")
</pallas_src>

<mosaic_0001>
module attributes {stable_mosaic.version = 11 : i64} {
  func.func @_matern32_gram_kernel(%arg0: memref<2xf32, #tpu.memory_space<smem>>, %arg1: memref<16x2xf32, #tpu.memory_space<vmem>>, %arg2: memref<2x16xf32, #tpu.memory_space<vmem>>, %arg3: memref<16x16xf32, #tpu.memory_space<vmem>>) attributes {dimension_semantics = [], scalar_prefetch = 0 : i64, scratch_operands = 0 : i64, tpu.core_type = #tpu.core_type<tc>} {
    %c0 = arith.constant 0 : index
    %0 = memref.load %arg0[%c0] : memref<2xf32, #tpu.memory_space<smem>>
    %c1 = arith.constant 1 : index
    %1 = memref.load %arg0[%c1] : memref<2xf32, #tpu.memory_space<smem>>
    %c0_0 = arith.constant 0 : index
    %c0_1 = arith.constant 0 : index
    %2 = vector.load %arg1[%c0_0, %c0_1] : memref<16x2xf32, #tpu.memory_space<vmem>>, vector<16x2xf32>
    %c0_2 = arith.constant 0 : index
    %c0_3 = arith.constant 0 : index
    %3 = vector.load %arg2[%c0_2, %c0_3] : memref<2x16xf32, #tpu.memory_space<vmem>>, vector<2x16xf32>
    %cst = arith.constant 0.000000e+00 : f32
    %4 = vector.broadcast %cst : f32 to vector<16x16xf32>
    %5 = vector.extract_strided_slice %2 {offsets = [0, 0], sizes = [16, 1], strides = [1, 1]} : vector<16x2xf32> to vector<16x1xf32>
    %6 = vector.extract_strided_slice %3 {offsets = [0, 0], sizes = [1, 16], strides = [1, 1]} : vector<2x16xf32> to vector<1x16xf32>
    %7 = vector.broadcast %5 : vector<16x1xf32> to vector<16x16xf32>
    %8 = vector.broadcast %6 : vector<1x16xf32> to vector<16x16xf32>
    %9 = arith.subf %7, %8 : vector<16x16xf32>
    %10 = arith.mulf %9, %9 : vector<16x16xf32>
    %11 = arith.addf %4, %10 : vector<16x16xf32>
    %12 = vector.extract_strided_slice %2 {offsets = [0, 1], sizes = [16, 1], strides = [1, 1]} : vector<16x2xf32> to vector<16x1xf32>
    %13 = vector.extract_strided_slice %3 {offsets = [1, 0], sizes = [1, 16], strides = [1, 1]} : vector<2x16xf32> to vector<1x16xf32>
    %14 = vector.broadcast %12 : vector<16x1xf32> to vector<16x16xf32>
    %15 = vector.broadcast %13 : vector<1x16xf32> to vector<16x16xf32>
    %16 = arith.subf %14, %15 : vector<16x16xf32>
    %17 = arith.mulf %16, %16 : vector<16x16xf32>
    %18 = arith.addf %11, %17 : vector<16x16xf32>
    %cst_4 = arith.constant 3.000000e+00 : f32
    %19 = math.sqrt %cst_4 : f32
    %20 = arith.divf %19, %0 : f32
    %21 = math.sqrt %18 : vector<16x16xf32>
    %22 = vector.broadcast %20 : f32 to vector<16x16xf32>
    %23 = arith.mulf %22, %21 : vector<16x16xf32>
    %cst_5 = arith.constant 1.000000e+00 : f32
    %24 = vector.broadcast %cst_5 : f32 to vector<16x16xf32>
    %25 = arith.addf %24, %23 : vector<16x16xf32>
    %26 = vector.broadcast %1 : f32 to vector<16x16xf32>
    %27 = arith.mulf %26, %25 : vector<16x16xf32>
    %cst_6 = arith.constant 0.000000e+00 : f32
    %28 = vector.broadcast %cst_6 : f32 to vector<16x16xf32>
    %29 = arith.subf %28, %23 : vector<16x16xf32>
    %30 = math.exp %29 : vector<16x16xf32>
    %31 = arith.mulf %27, %30 : vector<16x16xf32>
    %c0_7 = arith.constant 0 : index
    %c0_8 = arith.constant 0 : index
    %32 = vector.load %arg3[%c0_7, %c0_8] : memref<16x16xf32, #tpu.memory_space<vmem>>, vector<16x16xf32>
    tpu.vector_store %arg3[%c0_7, %c0_8], %31 {strides = array<i32>} : memref<16x16xf32, #tpu.memory_space<vmem>>, vector<16x16xf32>,
    return
  }
}

module attributes {stable_mosaic.version = 11 : i64} {
  func.func @_filtsmooth_kernel(%arg0: memref<5xf32, #tpu.memory_space<smem>>, %arg1: memref<9xf32, #tpu.memory_space<smem>>, %arg2: memref<1x32xf32, #tpu.memory_space<vmem>>, %arg3: memref<32x32xf32, #tpu.memory_space<vmem>>, %arg4: memref<32x32xf32, #tpu.memory_space<vmem>>, %arg5: memref<9x1x16xf32, #tpu.memory_space<vmem>>, %arg6: memref<10x1x32xf32, #tpu.memory_space<vmem>>, %arg7: memref<10x32x32xf32, #tpu.memory_space<vmem>>, %arg8: memref<10x1x32xf32, #tpu.memory_space<vmem>>, %arg9: memref<10x32x32xf32, #tpu.memory_space<vmem>>) attributes {dimension_semantics = [], scalar_prefetch = 0 : i64, scratch_operands = 0 : i64, tpu.core_type = #tpu.core_type<tc>} {
    %c0 = arith.constant 0 : index
    %0 = memref.load %arg0[%c0] : memref<5xf32, #tpu.memory_space<smem>>
    %c1 = arith.constant 1 : index
    %1 = memref.load %arg0[%c1] : memref<5xf32, #tpu.memory_space<smem>>
    %c2 = arith.constant 2 : index
    %2 = memref.load %arg0[%c2] : memref<5xf32, #tpu.memory_space<smem>>
    %c3 = arith.constant 3 : index
    %3 = memref.load %arg0[%c3] : memref<5xf32, #tpu.memory_space<smem>>
    %c4 = arith.constant 4 : index
    %4 = memref.load %arg0[%c4] : memref<5xf32, #tpu.memory_space<smem>>
    %c0_0 = arith.constant 0 : index
    %c0_1 = arith.constant 0 : index
    %5 = vector.load %arg4[%c0_0, %c0_1] : memref<32x32xf32, #tpu.memory_space<vmem>>, vector<32x32xf32>
    %6 = tpu.iota {dimensions = array<i32: 0>} : vector<16x16xi32>
    %7 = tpu.iota {dimensions = array<i32: 1>} : vector<16x16xi32>
    %8 = arith.cmpi eq, %6, %7 : vector<16x16xi32>
    %cst = arith.constant 0.000000e+00 : f32
    %9 = vector.broadcast %4 : f32 to vector<16x16xf32>
    %10 = vector.broadcast %cst : f32 to vector<16x16xf32>
    %11 = arith.select %8, %9, %10 : vector<16x16xi1>, vector<16x16xf32>
    %c0_2 = arith.constant 0 : index
    %c0_3 = arith.constant 0 : index
    %12 = vector.load %arg2[%c0_2, %c0_3] : memref<1x32xf32, #tpu.memory_space<vmem>>, vector<1x32xf32>
    %c0_4 = arith.constant 0 : index
    %c0_5 = arith.constant 0 : index
    %13 = vector.load %arg3[%c0_4, %c0_5] : memref<32x32xf32, #tpu.memory_space<vmem>>, vector<32x32xf32>
    %c0_6 = arith.constant 0 : index
    %c0_7 = arith.constant 0 : index
    %c0_8 = arith.constant 0 : index
    %14 = vector.load %arg6[%c0_6, %c0_7, %c0_8] : memref<10x1x32xf32, #tpu.memory_space<vmem>>, vector<1x1x32xf32>
    %15 = vector.shape_cast %14 : vector<1x1x32xf32> to vector<1x32xf32>
    %16 = vector.shape_cast %12 : vector<1x32xf32> to vector<1x1x32xf32>
    tpu.vector_store %arg6[%c0_6, %c0_7, %c0_8], %16 {strides = array<i32>} : memref<10x1x32xf32, #tpu.memory_space<vmem>>, vector<1x1x32xf32>,
    %c0_9 = arith.constant 0 : index
    %c0_10 = arith.constant 0 : index
    %c0_11 = arith.constant 0 : index
    %17 = vector.load %arg7[%c0_9, %c0_10, %c0_11] : memref<10x32x32xf32, #tpu.memory_space<vmem>>, vector<1x32x32xf32>
    %18 = vector.shape_cast %17 : vector<1x32x32xf32> to vector<32x32xf32>
    %19 = vector.shape_cast %13 : vector<32x32xf32> to vector<1x32x32xf32>
    tpu.vector_store %arg7[%c0_9, %c0_10, %c0_11], %19 {strides = array<i32>} : memref<10x32x32xf32, #tpu.memory_space<vmem>>, vector<1x32x32xf32>,
    %c0_12 = arith.constant 0 : index
    %c0_13 = arith.constant 0 : index
    %c0_14 = arith.constant 0 : index
    %20 = vector.load %arg8[%c0_12, %c0_13, %c0_14] : memref<10x1x32xf32, #tpu.memory_space<vmem>>, vector<1x1x32xf32>
    %21 = vector.shape_cast %20 : vector<1x1x32xf32> to vector<1x32xf32>
    %22 = vector.shape_cast %12 : vector<1x32xf32> to vector<1x1x32xf32>
    tpu.vector_store %arg8[%c0_12, %c0_13, %c0_14], %22 {strides = array<i32>} : memref<10x1x32xf32, #tpu.memory_space<vmem>>, vector<1x1x32xf32>,
    %c0_15 = arith.constant 0 : index
    %c0_16 = arith.constant 0 : index
    %c0_17 = arith.constant 0 : index
    %23 = vector.load %arg9[%c0_15, %c0_16, %c0_17] : memref<10x32x32xf32, #tpu.memory_space<vmem>>, vector<1x32x32xf32>
    %24 = vector.shape_cast %23 : vector<1x32x32xf32> to vector<32x32xf32>
    %25 = vector.shape_cast %13 : vector<32x32xf32> to vector<1x32x32xf32>
    tpu.vector_store %arg9[%c0_15, %c0_16, %c0_17], %25 {strides = array<i32>} : memref<10x32x32xf32, #tpu.memory_space<vmem>>, vector<1x32x32xf32>,
    %c0_i32 = arith.constant 0 : i32
    %c9_i32 = arith.constant 9 : i32
    %26 = arith.addi %c0_i32, %c9_i32 : i32
    %c1_i32 = arith.constant 1 : i32
    %27:2 = scf.for %arg10 = %c0_i32 to %26 step %c1_i32 iter_args(%arg11 = %12, %arg12 = %13) -> (vector<1x32xf32>, vector<32x32xf32>)  : i32 {
      %34 = vector.extract_strided_slice %arg11 {offsets = [0, 0], sizes = [1, 16], strides = [1, 1]} : vector<1x32xf32> to vector<1x16xf32>
      %35 = vector.extract_strided_slice %arg11 {offsets = [0, 16], sizes = [1, 16], strides = [1, 1]} : vector<1x32xf32> to vector<1x16xf32>
      %36 = vector.broadcast %0 : f32 to vector<1x16xf32>
      %37 = arith.mulf %36, %34 : vector<1x16xf32>
      %38 = vector.broadcast %1 : f32 to vector<1x16xf32>
      %39 = arith.mulf %38, %35 : vector<1x16xf32>
      %40 = arith.addf %37, %39 : vector<1x16xf32>
      %41 = vector.broadcast %2 : f32 to vector<1x16xf32>
      %42 = arith.mulf %41, %34 : vector<1x16xf32>
      %43 = vector.broadcast %3 : f32 to vector<1x16xf32>
      %44 = arith.mulf %43, %35 : vector<1x16xf32>
      %45 = arith.addf %42, %44 : vector<1x16xf32>
      %46 = tpu.concatenate %40, %45 in 1 : vector<1x16xf32>, vector<1x16xf32> -> vector<1x32xf32>
      %47 = vector.extract_strided_slice %arg12 {offsets = [0, 0], sizes = [16, 32], strides = [1, 1]} : vector<32x32xf32> to vector<16x32xf32>
      %48 = vector.extract_strided_slice %arg12 {offsets = [16, 0], sizes = [16, 32], strides = [1, 1]} : vector<32x32xf32> to vector<16x32xf32>
      %49 = vector.broadcast %0 : f32 to vector<16x32xf32>
      %50 = arith.mulf %49, %47 : vector<16x32xf32>
      %51 = vector.broadcast %1 : f32 to vector<16x32xf32>
      %52 = arith.mulf %51, %48 : vector<16x32xf32>
      %53 = arith.addf %50, %52 : vector<16x32xf32>
      %54 = vector.broadcast %2 : f32 to vector<16x32xf32>
      %55 = arith.mulf %54, %47 : vector<16x32xf32>
      %56 = vector.broadcast %3 : f32 to vector<16x32xf32>
      %57 = arith.mulf %56, %48 : vector<16x32xf32>
      %58 = arith.addf %55, %57 : vector<16x32xf32>
      %59 = tpu.concatenate %53, %58 in 0 : vector<16x32xf32>, vector<16x32xf32> -> vector<32x32xf32>
      %60 = vector.extract_strided_slice %59 {offsets = [0, 0], sizes = [32, 16], strides = [1, 1]} : vector<32x32xf32> to vector<32x16xf32>
      %61 = vector.extract_strided_slice %59 {offsets = [0, 16], sizes = [32, 16], strides = [1, 1]} : vector<32x32xf32> to vector<32x16xf32>
      %62 = vector.broadcast %0 : f32 to vector<32x16xf32>
      %63 = arith.mulf %62, %60 : vector<32x16xf32>
      %64 = vector.broadcast %1 : f32 to vector<32x16xf32>
      %65 = arith.mulf %64, %61 : vector<32x16xf32>
      %66 = arith.addf %63, %65 : vector<32x16xf32>
      %67 = vector.broadcast %2 : f32 to vector<32x16xf32>
      %68 = arith.mulf %67, %60 : vector<32x16xf32>
      %69 = vector.broadcast %3 : f32 to vector<32x16xf32>
      %70 = arith.mulf %69, %61 : vector<32x16xf32>
      %71 = arith.addf %68, %70 : vector<32x16xf32>
      %72 = tpu.concatenate %66, %71 in 1 : vector<32x16xf32>, vector<32x16xf32> -> vector<32x32xf32>
      %73 = arith.addf %72, %5 : vector<32x32xf32>
      %c1_i32_28 = arith.constant 1 : i32
      %74 = arith.addi %arg10, %c1_i32_28 : i32
      %75 = arith.index_cast %74 : i32 to index
      %c0_29 = arith.constant 0 : index
      %c0_30 = arith.constant 0 : index
      %76 = vector.load %arg8[%75, %c0_29, %c0_30] : memref<10x1x32xf32, #tpu.memory_space<vmem>>, vector<1x1x32xf32>
      %77 = vector.shape_cast %76 : vector<1x1x32xf32> to vector<1x32xf32>
      %78 = vector.shape_cast %46 : vector<1x32xf32> to vector<1x1x32xf32>
      tpu.vector_store %arg8[%75, %c0_29, %c0_30], %78 {strides = array<i32>} : memref<10x1x32xf32, #tpu.memory_space<vmem>>, vector<1x1x32xf32>,
      %c1_i32_31 = arith.constant 1 : i32
      %79 = arith.addi %arg10, %c1_i32_31 : i32
      %80 = arith.index_cast %79 : i32 to index
      %c0_32 = arith.constant 0 : index
      %c0_33 = arith.constant 0 : index
      %81 = vector.load %arg9[%80, %c0_32, %c0_33] : memref<10x32x32xf32, #tpu.memory_space<vmem>>, vector<1x32x32xf32>
      %82 = vector.shape_cast %81 : vector<1x32x32xf32> to vector<32x32xf32>
      %83 = vector.shape_cast %73 : vector<32x32xf32> to vector<1x32x32xf32>
      tpu.vector_store %arg9[%80, %c0_32, %c0_33], %83 {strides = array<i32>} : memref<10x32x32xf32, #tpu.memory_space<vmem>>, vector<1x32x32xf32>,
      %84 = arith.index_cast %arg10 : i32 to index
      %85 = memref.load %arg1[%84] : memref<9xf32, #tpu.memory_space<smem>>
      %86 = arith.index_cast %arg10 : i32 to index
      %c0_34 = arith.constant 0 : index
      %c0_35 = arith.constant 0 : index
      %87 = vector.load %arg5[%86, %c0_34, %c0_35] : memref<9x1x16xf32, #tpu.memory_space<vmem>>, vector<1x1x16xf32>
      %88 = vector.shape_cast %87 : vector<1x1x16xf32> to vector<1x16xf32>
      %89 = vector.extract_strided_slice %73 {offsets = [0, 0], sizes = [16, 32], strides = [1, 1]} : vector<32x32xf32> to vector<16x32xf32>
      %90 = vector.extract_strided_slice %89 {offsets = [0, 0], sizes = [16, 16], strides = [1, 1]} : vector<16x32xf32> to vector<16x16xf32>
      %91 = arith.addf %90, %11 : vector<16x16xf32>
      %92 = tpu.concatenate %91, %89 in 1 : vector<16x16xf32>, vector<16x32xf32> -> vector<16x48xf32>
      %93 = tpu.iota {dimensions = array<i32: 0>} : vector<16x1xi32>
      %94 = vector.extract_strided_slice %92 {offsets = [0, 0], sizes = [1, 48], strides = [1, 1]} : vector<16x48xf32> to vector<1x48xf32>
      %95 = vector.extract_strided_slice %92 {offsets = [0, 0], sizes = [1, 1], strides = [1, 1]} : vector<16x48xf32> to vector<1x1xf32>
      %cst_36 = arith.constant 1.000000e+00 : f32
      %96 = vector.broadcast %cst_36 : f32 to vector<1x1xf32>
      %97 = arith.divf %96, %95 : vector<1x1xf32>
      %98 = vector.broadcast %97 : vector<1x1xf32> to vector<1x48xf32>
      %99 = arith.mulf %94, %98 : vector<1x48xf32>
      %100 = vector.extract_strided_slice %92 {offsets = [0, 0], sizes = [16, 1], strides = [1, 1]} : vector<16x48xf32> to vector<16x1xf32>
      %c0_i32_37 = arith.constant 0 : i32
      %101 = vector.broadcast %c0_i32_37 : i32 to vector<16x1xi32>
      %102 = arith.cmpi eq, %93, %101 : vector<16x1xi32>
      %103 = arith.extui %102 : vector<16x1xi1> to vector<16x1xi32>
      %104 = arith.sitofp %103 : vector<16x1xi32> to vector<16x1xf32>
      %105 = arith.subf %100, %104 : vector<16x1xf32>
      %106 = vector.broadcast %105 : vector<16x1xf32> to vector<16x48xf32>
      %107 = vector.broadcast %99 : vector<1x48xf32> to vector<16x48xf32>
      %108 = arith.mulf %106, %107 : vector<16x48xf32>
      %109 = arith.subf %92, %108 : vector<16x48xf32>
      %110 = vector.extract_strided_slice %109 {offsets = [1, 0], sizes = [1, 48], strides = [1, 1]} : vector<16x48xf32> to vector<1x48xf32>
      %111 = vector.extract_strided_slice %109 {offsets = [1, 1], sizes = [1, 1], strides = [1, 1]} : vector<16x48xf32> to vector<1x1xf32>
      %cst_38 = arith.constant 1.000000e+00 : f32
      %112 = vector.broadcast %cst_38 : f32 to vector<1x1xf32>
      %113 = arith.divf %112, %111 : vector<1x1xf32>
      %114 = vector.broadcast %113 : vector<1x1xf32> to vector<1x48xf32>
      %115 = arith.mulf %110, %114 : vector<1x48xf32>
      %116 = vector.extract_strided_slice %109 {offsets = [0, 1], sizes = [16, 1], strides = [1, 1]} : vector<16x48xf32> to vector<16x1xf32>
      %c1_i32_39 = arith.constant 1 : i32
      %117 = vector.broadcast %c1_i32_39 : i32 to vector<16x1xi32>
      %118 = arith.cmpi eq, %93, %117 : vector<16x1xi32>
      %119 = arith.extui %118 : vector<16x1xi1> to vector<16x1xi32>
      %120 = arith.sitofp %119 : vector<16x1xi32> to vector<16x1xf32>
      %121 = arith.subf %116, %120 : vector<16x1xf32>
      %122 = vector.broadcast %121 : vector<16x1xf32> to vector<16x48xf32>
      %123 = vector.broadcast %115 : vector<1x48xf32> to vector<16x48xf32>
      %124 = arith.mulf %122, %123 : vector<16x48xf32>
      %125 = arith.subf %109, %124 : vector<16x48xf32>
      %126 = vector.extract_strided_slice %125 {offsets = [2, 0], sizes = [1, 48], strides = [1, 1]} : vector<16x48xf32> to vector<1x48xf32>
      %127 = vector.extract_strided_slice %125 {offsets = [2, 2], sizes = [1, 1], strides = [1, 1]} : vector<16x48xf32> to vector<1x1xf32>
      %cst_40 = arith.constant 1.000000e+00 : f32
      %128 = vector.broadcast %cst_40 : f32 to vector<1x1xf32>
      %129 = arith.divf %128, %127 : vector<1x1xf32>
      %130 = vector.broadcast %129 : vector<1x1xf32> to vector<1x48xf32>
      %131 = arith.mulf %126, %130 : vector<1x48xf32>
      %132 = vector.extract_strided_slice %125 {offsets = [0, 2], sizes = [16, 1], strides = [1, 1]} : vector<16x48xf32> to vector<16x1xf32>
      %c2_i32 = arith.constant 2 : i32
      %133 = vector.broadcast %c2_i32 : i32 to vector<16x1xi32>
      %134 = arith.cmpi eq, %93, %133 : vector<16x1xi32>
      %135 = arith.extui %134 : vector<16x1xi1> to vector<16x1xi32>
      %136 = arith.sitofp %135 : vector<16x1xi32> to vector<16x1xf32>
      %137 = arith.subf %132, %136 : vector<16x1xf32>
      %138 = vector.broadcast %137 : vector<16x1xf32> to vector<16x48xf32>
      %139 = vector.broadcast %131 : vector<1x48xf32> to vector<16x48xf32>
      %140 = arith.mulf %138, %139 : vector<16x48xf32>
      %141 = arith.subf %125, %140 : vector<16x48xf32>
      %142 = vector.extract_strided_slice %141 {offsets = [3, 0], sizes = [1, 48], strides = [1, 1]} : vector<16x48xf32> to vector<1x48xf32>
      %143 = vector.extract_strided_slice %141 {offsets = [3, 3], sizes = [1, 1], strides = [1, 1]} : vector<16x48xf32> to vector<1x1xf32>
      %cst_41 = arith.constant 1.000000e+00 : f32
      %144 = vector.broadcast %cst_41 : f32 to vector<1x1xf32>
      %145 = arith.divf %144, %143 : vector<1x1xf32>
      %146 = vector.broadcast %145 : vector<1x1xf32> to vector<1x48xf32>
      %147 = arith.mulf %142, %146 : vector<1x48xf32>
      %148 = vector.extract_strided_slice %141 {offsets = [0, 3], sizes = [16, 1], strides = [1, 1]} : vector<16x48xf32> to vector<16x1xf32>
      %c3_i32 = arith.constant 3 : i32
      %149 = vector.broadcast %c3_i32 : i32 to vector<16x1xi32>
      %150 = arith.cmpi eq, %93, %149 : vector<16x1xi32>
      %151 = arith.extui %150 : vector<16x1xi1> to vector<16x1xi32>
      %152 = arith.sitofp %151 : vector<16x1xi32> to vector<16x1xf32>
      %153 = arith.subf %148, %152 : vector<16x1xf32>
      %154 = vector.broadcast %153 : vector<16x1xf32> to vector<16x48xf32>
      %155 = vector.broadcast %147 : vector<1x48xf32> to vector<16x48xf32>
      %156 = arith.mulf %154, %155 : vector<16x48xf32>
      %157 = arith.subf %141, %156 : vector<16x48xf32>
      %158 = vector.extract_strided_slice %157 {offsets = [4, 0], sizes = [1, 48], strides = [1, 1]} : vector<16x48xf32> to vector<1x48xf32>
      %159 = vector.extract_strided_slice %157 {offsets = [4, 4], sizes = [1, 1], strides = [1, 1]} : vector<16x48xf32> to vector<1x1xf32>
      %cst_42 = arith.constant 1.000000e+00 : f32
      %160 = vector.broadcast %cst_42 : f32 to vector<1x1xf32>
      %161 = arith.divf %160, %159 : vector<1x1xf32>
      %162 = vector.broadcast %161 : vector<1x1xf32> to vector<1x48xf32>
      %163 = arith.mulf %158, %162 : vector<1x48xf32>
      %164 = vector.extract_strided_slice %157 {offsets = [0, 4], sizes = [16, 1], strides = [1, 1]} : vector<16x48xf32> to vector<16x1xf32>
      %c4_i32 = arith.constant 4 : i32
      %165 = vector.broadcast %c4_i32 : i32 to vector<16x1xi32>
      %166 = arith.cmpi eq, %93, %165 : vector<16x1xi32>
      %167 = arith.extui %166 : vector<16x1xi1> to vector<16x1xi32>
      %168 = arith.sitofp %167 : vector<16x1xi32> to vector<16x1xf32>
      %169 = arith.subf %164, %168 : vector<16x1xf32>
      %170 = vector.broadcast %169 : vector<16x1xf32> to vector<16x48xf32>
      %171 = vector.broadcast %163 : vector<1x48xf32> to vector<16x48xf32>
      %172 = arith.mulf %170, %171 : vector<16x48xf32>
      %173 = arith.subf %157, %172 : vector<16x48xf32>
      %174 = vector.extract_strided_slice %173 {offsets = [5, 0], sizes = [1, 48], strides = [1, 1]} : vector<16x48xf32> to vector<1x48xf32>
      %175 = vector.extract_strided_slice %173 {offsets = [5, 5], sizes = [1, 1], strides = [1, 1]} : vector<16x48xf32> to vector<1x1xf32>
      %cst_43 = arith.constant 1.000000e+00 : f32
      %176 = vector.broadcast %cst_43 : f32 to vector<1x1xf32>
      %177 = arith.divf %176, %175 : vector<1x1xf32>
      %178 = vector.broadcast %177 : vector<1x1xf32> to vector<1x48xf32>
      %179 = arith.mulf %174, %178 : vector<1x48xf32>
      %180 = vector.extract_strided_slice %173 {offsets = [0, 5], sizes = [16, 1], strides = [1, 1]} : vector<16x48xf32> to vector<16x1xf32>
      %c5_i32 = arith.constant 5 : i32
      %181 = vector.broadcast %c5_i32 : i32 to vector<16x1xi32>
      %182 = arith.cmpi eq, %93, %181 : vector<16x1xi32>
      %183 = arith.extui %182 : vector<16x1xi1> to vector<16x1xi32>
      %184 = arith.sitofp %183 : vector<16x1xi32> to vector<16x1xf32>
      %185 = arith.subf %180, %184 : vector<16x1xf32>
      %186 = vector.broadcast %185 : vector<16x1xf32> to vector<16x48xf32>
      %187 = vector.broadcast %179 : vector<1x48xf32> to vector<16x48xf32>
      %188 = arith.mulf %186, %187 : vector<16x48xf32>
      %189 = arith.subf %173, %188 : vector<16x48xf32>
      %190 = vector.extract_strided_slice %189 {offsets = [6, 0], sizes = [1, 48], strides = [1, 1]} : vector<16x48xf32> to vector<1x48xf32>
      %191 = vector.extract_strided_slice %189 {offsets = [6, 6], sizes = [1, 1], strides = [1, 1]} : vector<16x48xf32> to vector<1x1xf32>
      %cst_44 = arith.constant 1.000000e+00 : f32
      %192 = vector.broadcast %cst_44 : f32 to vector<1x1xf32>
      %193 = arith.divf %192, %191 : vector<1x1xf32>
      %194 = vector.broadcast %193 : vector<1x1xf32> to vector<1x48xf32>
      %195 = arith.mulf %190, %194 : vector<1x48xf32>
      %196 = vector.extract_strided_slice %189 {offsets = [0, 6], sizes = [16, 1], strides = [1, 1]} : vector<16x48xf32> to vector<16x1xf32>
      %c6_i32 = arith.constant 6 : i32
      %197 = vector.broadcast %c6_i32 : i32 to vector<16x1xi32>
      %198 = arith.cmpi eq, %93, %197 : vector<16x1xi32>
      %199 = arith.extui %198 : vector<16x1xi1> to vector<16x1xi32>
      %200 = arith.sitofp %199 : vector<16x1xi32> to vector<16x1xf32>
      %201 = arith.subf %196, %200 : vector<16x1xf32>
      %202 = vector.broadcast %201 : vector<16x1xf32> to vector<16x48xf32>
      %203 = vector.broadcast %195 : vector<1x48xf32> to vector<16x48xf32>
      %204 = arith.mulf %202, %203 : vector<16x48xf32>
      %205 = arith.subf %189, %204 : vector<16x48xf32>
      %206 = vector.extract_strided_slice %205 {offsets = [7, 0], sizes = [1, 48], strides = [1, 1]} : vector<16x48xf32> to vector<1x48xf32>
      %207 = vector.extract_strided_slice %205 {offsets = [7, 7], sizes = [1, 1], strides = [1, 1]} : vector<16x48xf32> to vector<1x1xf32>
      %cst_45 = arith.constant 1.000000e+00 : f32
      %208 = vector.broadcast %cst_45 : f32 to vector<1x1xf32>
      %209 = arith.divf %208, %207 : vector<1x1xf32>
      %210 = vector.broadcast %209 : vector<1x1xf32> to vector<1x48xf32>
      %211 = arith.mulf %206, %210 : vector<1x48xf32>
      %212 = vector.extract_strided_slice %205 {offsets = [0, 7], sizes = [16, 1], strides = [1, 1]} : vector<16x48xf32> to vector<16x1xf32>
      %c7_i32 = arith.constant 7 : i32
      %213 = vector.broadcast %c7_i32 : i32 to vector<16x1xi32>
      %214 = arith.cmpi eq, %93, %213 : vector<16x1xi32>
      %215 = arith.extui %214 : vector<16x1xi1> to vector<16x1xi32>
      %216 = arith.sitofp %215 : vector<16x1xi32> to vector<16x1xf32>
      %217 = arith.subf %212, %216 : vector<16x1xf32>
      %218 = vector.broadcast %217 : vector<16x1xf32> to vector<16x48xf32>
      %219 = vector.broadcast %211 : vector<1x48xf32> to vector<16x48xf32>
      %220 = arith.mulf %218, %219 : vector<16x48xf32>
      %221 = arith.subf %205, %220 : vector<16x48xf32>
      %222 = vector.extract_strided_slice %221 {offsets = [8, 0], sizes = [1, 48], strides = [1, 1]} : vector<16x48xf32> to vector<1x48xf32>
      %223 = vector.extract_strided_slice %221 {offsets = [8, 8], sizes = [1, 1], strides = [1, 1]} : vector<16x48xf32> to vector<1x1xf32>
      %cst_46 = arith.constant 1.000000e+00 : f32
      %224 = vector.broadcast %cst_46 : f32 to vector<1x1xf32>
      %225 = arith.divf %224, %223 : vector<1x1xf32>
      %226 = vector.broadcast %225 : vector<1x1xf32> to vector<1x48xf32>
      %227 = arith.mulf %222, %226 : vector<1x48xf32>
      %228 = vector.extract_strided_slice %221 {offsets = [0, 8], sizes = [16, 1], strides = [1, 1]} : vector<16x48xf32> to vector<16x1xf32>
      %c8_i32 = arith.constant 8 : i32
      %229 = vector.broadcast %c8_i32 : i32 to vector<16x1xi32>
      %230 = arith.cmpi eq, %93, %229 : vector<16x1xi32>
      %231 = arith.extui %230 : vector<16x1xi1> to vector<16x1xi32>
      %232 = arith.sitofp %231 : vector<16x1xi32> to vector<16x1xf32>
      %233 = arith.subf %228, %232 : vector<16x1xf32>
      %234 = vector.broadcast %233 : vector<16x1xf32> to vector<16x48xf32>
      %235 = vector.broadcast %227 : vector<1x48xf32> to vector<16x48xf32>
      %236 = arith.mulf %234, %235 : vector<16x48xf32>
      %237 = arith.subf %221, %236 : vector<16x48xf32>
      %238 = vector.extract_strided_slice %237 {offsets = [9, 0], sizes = [1, 48], strides = [1, 1]} : vector<16x48xf32> to vector<1x48xf32>
      %239 = vector.extract_strided_slice %237 {offsets = [9, 9], sizes = [1, 1], strides = [1, 1]} : vector<16x48xf32> to vector<1x1xf32>
      %cst_47 = arith.constant 1.000000e+00 : f32
      %240 = vector.broadcast %cst_47 : f32 to vector<1x1xf32>
      %241 = arith.divf %240, %239 : vector<1x1xf32>
      %242 = vector.broadcast %241 : vector<1x1xf32> to vector<1x48xf32>
      %243 = arith.mulf %238, %242 : vector<1x48xf32>
      %244 = vector.extract_strided_slice %237 {offsets = [0, 9], sizes = [16, 1], strides = [1, 1]} : vector<16x48xf32> to vector<16x1xf32>
      %c9_i32_48 = arith.constant 9 : i32
      %245 = vector.broadcast %c9_i32_48 : i32 to vector<16x1xi32>
      %246 = arith.cmpi eq, %93, %245 : vector<16x1xi32>
      %247 = arith.extui %246 : vector<16x1xi1> to vector<16x1xi32>
      %248 = arith.sitofp %247 : vector<16x1xi32> to vector<16x1xf32>
      %249 = arith.subf %244, %248 : vector<16x1xf32>
      %250 = vector.broadcast %249 : vector<16x1xf32> to vector<16x48xf32>
      %251 = vector.broadcast %243 : vector<1x48xf32> to vector<16x48xf32>
      %252 = arith.mulf %250, %251 : vector<16x48xf32>
      %253 = arith.subf %237, %252 : vector<16x48xf32>
      %254 = vector.extract_strided_slice %253 {offsets = [10, 0], sizes = [1, 48], strides = [1, 1]} : vector<16x48xf32> to vector<1x48xf32>
      %255 = vector.extract_strided_slice %253 {offsets = [10, 10], sizes = [1, 1], strides = [1, 1]} : vector<16x48xf32> to vector<1x1xf32>
      %cst_49 = arith.constant 1.000000e+00 : f32
      %256 = vector.broadcast %cst_49 : f32 to vector<1x1xf32>
      %257 = arith.divf %256, %255 : vector<1x1xf32>
      %258 = vector.broadcast %257 : vector<1x1xf32> to vector<1x48xf32>
      %259 = arith.mulf %254, %258 : vector<1x48xf32>
      %260 = vector.extract_strided_slice %253 {offsets = [0, 10], sizes = [16, 1], strides = [1, 1]} : vector<16x48xf32> to vector<16x1xf32>
      %c10_i32 = arith.constant 10 : i32
      %261 = vector.broadcast %c10_i32 : i32 to vector<16x1xi32>
      %262 = arith.cmpi eq, %93, %261 : vector<16x1xi32>
      %263 = arith.extui %262 : vector<16x1xi1> to vector<16x1xi32>
      %264 = arith.sitofp %263 : vector<16x1xi32> to vector<16x1xf32>
      %265 = arith.subf %260, %264 : vector<16x1xf32>
      %266 = vector.broadcast %265 : vector<16x1xf32> to vector<16x48xf32>
      %267 = vector.broadcast %259 : vector<1x48xf32> to vector<16x48xf32>
      %268 = arith.mulf %266, %267 : vector<16x48xf32>
      %269 = arith.subf %253, %268 : vector<16x48xf32>
      %270 = vector.extract_strided_slice %269 {offsets = [11, 0], sizes = [1, 48], strides = [1, 1]} : vector<16x48xf32> to vector<1x48xf32>
      %271 = vector.extract_strided_slice %269 {offsets = [11, 11], sizes = [1, 1], strides = [1, 1]} : vector<16x48xf32> to vector<1x1xf32>
      %cst_50 = arith.constant 1.000000e+00 : f32
      %272 = vector.broadcast %cst_50 : f32 to vector<1x1xf32>
      %273 = arith.divf %272, %271 : vector<1x1xf32>
      %274 = vector.broadcast %273 : vector<1x1xf32> to vector<1x48xf32>
      %275 = arith.mulf %270, %274 : vector<1x48xf32>
      %276 = vector.extract_strided_slice %269 {offsets = [0, 11], sizes = [16, 1], strides = [1, 1]} : vector<16x48xf32> to vector<16x1xf32>
      %c11_i32 = arith.constant 11 : i32
      %277 = vector.broadcast %c11_i32 : i32 to vector<16x1xi32>
      %278 = arith.cmpi eq, %93, %277 : vector<16x1xi32>
      %279 = arith.extui %278 : vector<16x1xi1> to vector<16x1xi32>
      %280 = arith.sitofp %279 : vector<16x1xi32> to vector<16x1xf32>
      %281 = arith.subf %276, %280 : vector<16x1xf32>
      %282 = vector.broadcast %281 : vector<16x1xf32> to vector<16x48xf32>
      %283 = vector.broadcast %275 : vector<1x48xf32> to vector<16x48xf32>
      %284 = arith.mulf %282, %283 : vector<16x48xf32>
      %285 = arith.subf %269, %284 : vector<16x48xf32>
      %286 = vector.extract_strided_slice %285 {offsets = [12, 0], sizes = [1, 48], strides = [1, 1]} : vector<16x48xf32> to vector<1x48xf32>
      %287 = vector.extract_strided_slice %285 {offsets = [12, 12], sizes = [1, 1], strides = [1, 1]} : vector<16x48xf32> to vector<1x1xf32>
      %cst_51 = arith.constant 1.000000e+00 : f32
      %288 = vector.broadcast %cst_51 : f32 to vector<1x1xf32>
      %289 = arith.divf %288, %287 : vector<1x1xf32>
      %290 = vector.broadcast %289 : vector<1x1xf32> to vector<1x48xf32>
      %291 = arith.mulf %286, %290 : vector<1x48xf32>
      %292 = vector.extract_strided_slice %285 {offsets = [0, 12], sizes = [16, 1], strides = [1, 1]} : vector<16x48xf32> to vector<16x1xf32>
      %c12_i32 = arith.constant 12 : i32
      %293 = vector.broadcast %c12_i32 : i32 to vector<16x1xi32>
      %294 = arith.cmpi eq, %93, %293 : vector<16x1xi32>
      %295 = arith.extui %294 : vector<16x1xi1> to vector<16x1xi32>
      %296 = arith.sitofp %295 : vector<16x1xi32> to vector<16x1xf32>
      %297 = arith.subf %292, %296 : vector<16x1xf32>
      %298 = vector.broadcast %297 : vector<16x1xf32> to vector<16x48xf32>
      %299 = vector.broadcast %291 : vector<1x48xf32> to vector<16x48xf32>
      %300 = arith.mulf %298, %299 : vector<16x48xf32>
      %301 = arith.subf %285, %300 : vector<16x48xf32>
      %302 = vector.extract_strided_slice %301 {offsets = [13, 0], sizes = [1, 48], strides = [1, 1]} : vector<16x48xf32> to vector<1x48xf32>
      %303 = vector.extract_strided_slice %301 {offsets = [13, 13], sizes = [1, 1], strides = [1, 1]} : vector<16x48xf32> to vector<1x1xf32>
      %cst_52 = arith.constant 1.000000e+00 : f32
      %304 = vector.broadcast %cst_52 : f32 to vector<1x1xf32>
      %305 = arith.divf %304, %303 : vector<1x1xf32>
      %306 = vector.broadcast %305 : vector<1x1xf32> to vector<1x48xf32>
      %307 = arith.mulf %302, %306 : vector<1x48xf32>
      %308 = vector.extract_strided_slice %301 {offsets = [0, 13], sizes = [16, 1], strides = [1, 1]} : vector<16x48xf32> to vector<16x1xf32>
      %c13_i32 = arith.constant 13 : i32
      %309 = vector.broadcast %c13_i32 : i32 to vector<16x1xi32>
      %310 = arith.cmpi eq, %93, %309 : vector<16x1xi32>
      %311 = arith.extui %310 : vector<16x1xi1> to vector<16x1xi32>
      %312 = arith.sitofp %311 : vector<16x1xi32> to vector<16x1xf32>
      %313 = arith.subf %308, %312 : vector<16x1xf32>
      %314 = vector.broadcast %313 : vector<16x1xf32> to vector<16x48xf32>
      %315 = vector.broadcast %307 : vector<1x48xf32> to vector<16x48xf32>
      %316 = arith.mulf %314, %315 : vector<16x48xf32>
      %317 = arith.subf %301, %316 : vector<16x48xf32>
      %318 = vector.extract_strided_slice %317 {offsets = [14, 0], sizes = [1, 48], strides = [1, 1]} : vector<16x48xf32> to vector<1x48xf32>
      %319 = vector.extract_strided_slice %317 {offsets = [14, 14], sizes = [1, 1], strides = [1, 1]} : vector<16x48xf32> to vector<1x1xf32>
      %cst_53 = arith.constant 1.000000e+00 : f32
      %320 = vector.broadcast %cst_53 : f32 to vector<1x1xf32>
      %321 = arith.divf %320, %319 : vector<1x1xf32>
      %322 = vector.broadcast %321 : vector<1x1xf32> to vector<1x48xf32>
      %323 = arith.mulf %318, %322 : vector<1x48xf32>
      %324 = vector.extract_strided_slice %317 {offsets = [0, 14], sizes = [16, 1], strides = [1, 1]} : vector<16x48xf32> to vector<16x1xf32>
      %c14_i32 = arith.constant 14 : i32
      %325 = vector.broadcast %c14_i32 : i32 to vector<16x1xi32>
      %326 = arith.cmpi eq, %93, %325 : vector<16x1xi32>
      %327 = arith.extui %326 : vector<16x1xi1> to vector<16x1xi32>
      %328 = arith.sitofp %327 : vector<16x1xi32> to vector<16x1xf32>
      %329 = arith.subf %324, %328 : vector<16x1xf32>
      %330 = vector.broadcast %329 : vector<16x1xf32> to vector<16x48xf32>
      %331 = vector.broadcast %323 : vector<1x48xf32> to vector<16x48xf32>
      %332 = arith.mulf %330, %331 : vector<16x48xf32>
      %333 = arith.subf %317, %332 : vector<16x48xf32>
      %334 = vector.extract_strided_slice %333 {offsets = [15, 0], sizes = [1, 48], strides = [1, 1]} : vector<16x48xf32> to vector<1x48xf32>
      %335 = vector.extract_strided_slice %333 {offsets = [15, 15], sizes = [1, 1], strides = [1, 1]} : vector<16x48xf32> to vector<1x1xf32>
      %cst_54 = arith.constant 1.000000e+00 : f32
      %336 = vector.broadcast %cst_54 : f32 to vector<1x1xf32>
      %337 = arith.divf %336, %335 : vector<1x1xf32>
      %338 = vector.broadcast %337 : vector<1x1xf32> to vector<1x48xf32>
      %339 = arith.mulf %334, %338 : vector<1x48xf32>
      %340 = vector.extract_strided_slice %333 {offsets = [0, 15], sizes = [16, 1], strides = [1, 1]} : vector<16x48xf32> to vector<16x1xf32>
      %c15_i32 = arith.constant 15 : i32
      %341 = vector.broadcast %c15_i32 : i32 to vector<16x1xi32>
      %342 = arith.cmpi eq, %93, %341 : vector<16x1xi32>
      %343 = arith.extui %342 : vector<16x1xi1> to vector<16x1xi32>
      %344 = arith.sitofp %343 : vector<16x1xi32> to vector<16x1xf32>
      %345 = arith.subf %340, %344 : vector<16x1xf32>
      %346 = vector.broadcast %345 : vector<16x1xf32> to vector<16x48xf32>
      %347 = vector.broadcast %339 : vector<1x48xf32> to vector<16x48xf32>
      %348 = arith.mulf %346, %347 : vector<16x48xf32>
      %349 = arith.subf %333, %348 : vector<16x48xf32>
      %350 = vector.extract_strided_slice %349 {offsets = [0, 16], sizes = [16, 32], strides = [1, 1]} : vector<16x48xf32> to vector<16x32xf32>
      %351 = vector.extract_strided_slice %46 {offsets = [0, 0], sizes = [1, 16], strides = [1, 1]} : vector<1x32xf32> to vector<1x16xf32>
      %352 = arith.subf %88, %351 : vector<1x16xf32>
      %353 = vector.broadcast %85 : f32 to vector<1x16xf32>
      %354 = arith.mulf %353, %352 : vector<1x16xf32>
      %cst_55 = arith.constant dense<0.000000e+00> : vector<1x32xf32>
      %355 = tpu.matmul %354, %350, %cst_55 {dimension_numbers = #tpu.dot_dimension_numbers<[1], [0], [0], [1], [0, 0, 1, 1], [], []>} : vector<1x16xf32>, vector<16x32xf32>, vector<1x32xf32> -> vector<1x32xf32>
      %356 = arith.addf %46, %355 : vector<1x32xf32>
      %cst_56 = arith.constant dense<0.000000e+00> : vector<32x32xf32>
      %357 = tpu.matmul %350, %89, %cst_56 {dimension_numbers = #tpu.dot_dimension_numbers<[0], [0], [1], [1], [0, 1, 1, 1], [], []>} : vector<16x32xf32>, vector<16x32xf32>, vector<32x32xf32> -> vector<32x32xf32>
      %358 = vector.broadcast %85 : f32 to vector<32x32xf32>
      %359 = arith.mulf %358, %357 : vector<32x32xf32>
      %360 = arith.subf %73, %359 : vector<32x32xf32>
      %c1_i32_57 = arith.constant 1 : i32
      %361 = arith.addi %arg10, %c1_i32_57 : i32
      %362 = arith.index_cast %361 : i32 to index
      %c0_58 = arith.constant 0 : index
      %c0_59 = arith.constant 0 : index
      %363 = vector.load %arg6[%362, %c0_58, %c0_59] : memref<10x1x32xf32, #tpu.memory_space<vmem>>, vector<1x1x32xf32>
      %364 = vector.shape_cast %363 : vector<1x1x32xf32> to vector<1x32xf32>
      %365 = vector.shape_cast %356 : vector<1x32xf32> to vector<1x1x32xf32>
      tpu.vector_store %arg6[%362, %c0_58, %c0_59], %365 {strides = array<i32>} : memref<10x1x32xf32, #tpu.memory_space<vmem>>, vector<1x1x32xf32>,
      %c1_i32_60 = arith.constant 1 : i32
      %366 = arith.addi %arg10, %c1_i32_60 : i32
      %367 = arith.index_cast %366 : i32 to index
      %c0_61 = arith.constant 0 : index
      %c0_62 = arith.constant 0 : index
      %368 = vector.load %arg7[%367, %c0_61, %c0_62] : memref<10x32x32xf32, #tpu.memory_space<vmem>>, vector<1x32x32xf32>
      %369 = vector.shape_cast %368 : vector<1x32x32xf32> to vector<32x32xf32>
      %370 = vector.shape_cast %360 : vector<32x32xf32> to vector<1x32x32xf32>
      tpu.vector_store %arg7[%367, %c0_61, %c0_62], %370 {strides = array<i32>} : memref<10x32x32xf32, #tpu.memory_space<vmem>>, vector<1x32x32xf32>,
      scf.yield %356, %360 : vector<1x32xf32>, vector<32x32xf32>
    }
    %c9_i32_18 = arith.constant 9 : i32
    %c9 = arith.constant 9 : index
    %c0_19 = arith.constant 0 : index
    %c0_20 = arith.constant 0 : index
    %28 = vector.load %arg6[%c9, %c0_19, %c0_20] : memref<10x1x32xf32, #tpu.memory_space<vmem>>, vector<1x1x32xf32>
    %29 = vector.shape_cast %28 : vector<1x1x32xf32> to vector<1x32xf32>
    %c9_21 = arith.constant 9 : index
    %c0_22 = arith.constant 0 : index
    %c0_23 = arith.constant 0 : index
    %30 = vector.load %arg7[%c9_21, %c0_22, %c0_23] : memref<10x32x32xf32, #tpu.memory_space<vmem>>, vector<1x32x32xf32>
    %31 = vector.shape_cast %30 : vector<1x32x32xf32> to vector<32x32xf32>
    %c0_i32_24 = arith.constant 0 : i32
    %c9_i32_25 = arith.constant 9 : i32
    %32 = arith.addi %c0_i32_24, %c9_i32_25 : i32
    %c1_i32_26 = arith.constant 1 : i32
    %33:2 = scf.for %arg10 = %c0_i32_24 to %32 step %c1_i32_26 iter_args(%arg11 = %29, %arg12 = %31) -> (vector<1x32xf32>, vector<32x32xf32>)  : i32 {
      %c8_i32 = arith.constant 8 : i32
      %34 = arith.subi %c8_i32, %arg10 : i32
      %35 = arith.index_cast %34 : i32 to index
      %c0_28 = arith.constant 0 : index
      %c0_29 = arith.constant 0 : index
      %36 = vector.load %arg6[%35, %c0_28, %c0_29] : memref<10x1x32xf32, #tpu.memory_space<vmem>>, vector<1x1x32xf32>
      %37 = vector.shape_cast %36 : vector<1x1x32xf32> to vector<1x32xf32>
      %38 = arith.index_cast %34 : i32 to index
      %c0_30 = arith.constant 0 : index
      %c0_31 = arith.constant 0 : index
      %39 = vector.load %arg7[%38, %c0_30, %c0_31] : memref<10x32x32xf32, #tpu.memory_space<vmem>>, vector<1x32x32xf32>
      %40 = vector.shape_cast %39 : vector<1x32x32xf32> to vector<32x32xf32>
      %c1_i32_32 = arith.constant 1 : i32
      %41 = arith.addi %34, %c1_i32_32 : i32
      %42 = arith.index_cast %41 : i32 to index
      %c0_33 = arith.constant 0 : index
      %c0_34 = arith.constant 0 : index
      %43 = vector.load %arg8[%42, %c0_33, %c0_34] : memref<10x1x32xf32, #tpu.memory_space<vmem>>, vector<1x1x32xf32>
      %44 = vector.shape_cast %43 : vector<1x1x32xf32> to vector<1x32xf32>
      %c1_i32_35 = arith.constant 1 : i32
      %45 = arith.addi %34, %c1_i32_35 : i32
      %46 = arith.index_cast %45 : i32 to index
      %c0_36 = arith.constant 0 : index
      %c0_37 = arith.constant 0 : index
      %47 = vector.load %arg9[%46, %c0_36, %c0_37] : memref<10x32x32xf32, #tpu.memory_space<vmem>>, vector<1x32x32xf32>
      %48 = vector.shape_cast %47 : vector<1x32x32xf32> to vector<32x32xf32>
      %49 = vector.extract_strided_slice %40 {offsets = [0, 0], sizes = [16, 32], strides = [1, 1]} : vector<32x32xf32> to vector<16x32xf32>
      %50 = vector.extract_strided_slice %40 {offsets = [16, 0], sizes = [16, 32], strides = [1, 1]} : vector<32x32xf32> to vector<16x32xf32>
      %51 = vector.broadcast %0 : f32 to vector<16x32xf32>
      %52 = arith.mulf %51, %49 : vector<16x32xf32>
      %53 = vector.broadcast %1 : f32 to vector<16x32xf32>
      %54 = arith.mulf %53, %50 : vector<16x32xf32>
      %55 = arith.addf %52, %54 : vector<16x32xf32>
      %56 = vector.broadcast %2 : f32 to vector<16x32xf32>
      %57 = arith.mulf %56, %49 : vector<16x32xf32>
      %58 = vector.broadcast %3 : f32 to vector<16x32xf32>
      %59 = arith.mulf %58, %50 : vector<16x32xf32>
      %60 = arith.addf %57, %59 : vector<16x32xf32>
      %61 = tpu.concatenate %55, %60 in 0 : vector<16x32xf32>, vector<16x32xf32> -> vector<32x32xf32>
      %62 = tpu.concatenate %48, %61 in 1 : vector<32x32xf32>, vector<32x32xf32> -> vector<32x64xf32>
      %63 = tpu.iota {dimensions = array<i32: 0>} : vector<32x1xi32>
      %64 = vector.extract_strided_slice %62 {offsets = [0, 0], sizes = [1, 64], strides = [1, 1]} : vector<32x64xf32> to vector<1x64xf32>
      %65 = vector.extract_strided_slice %62 {offsets = [0, 0], sizes = [1, 1], strides = [1, 1]} : vector<32x64xf32> to vector<1x1xf32>
      %cst_38 = arith.constant 1.000000e+00 : f32
      %66 = vector.broadcast %cst_38 : f32 to vector<1x1xf32>
      %67 = arith.divf %66, %65 : vector<1x1xf32>
      %68 = vector.broadcast %67 : vector<1x1xf32> to vector<1x64xf32>
      %69 = arith.mulf %64, %68 : vector<1x64xf32>
      %70 = vector.extract_strided_slice %62 {offsets = [0, 0], sizes = [32, 1], strides = [1, 1]} : vector<32x64xf32> to vector<32x1xf32>
      %c0_i32_39 = arith.constant 0 : i32
      %71 = vector.broadcast %c0_i32_39 : i32 to vector<32x1xi32>
      %72 = arith.cmpi eq, %63, %71 : vector<32x1xi32>
      %73 = arith.extui %72 : vector<32x1xi1> to vector<32x1xi32>
      %74 = arith.sitofp %73 : vector<32x1xi32> to vector<32x1xf32>
      %75 = arith.subf %70, %74 : vector<32x1xf32>
      %76 = vector.broadcast %75 : vector<32x1xf32> to vector<32x64xf32>
      %77 = vector.broadcast %69 : vector<1x64xf32> to vector<32x64xf32>
      %78 = arith.mulf %76, %77 : vector<32x64xf32>
      %79 = arith.subf %62, %78 : vector<32x64xf32>
      %80 = vector.extract_strided_slice %79 {offsets = [1, 0], sizes = [1, 64], strides = [1, 1]} : vector<32x64xf32> to vector<1x64xf32>
      %81 = vector.extract_strided_slice %79 {offsets = [1, 1], sizes = [1, 1], strides = [1, 1]} : vector<32x64xf32> to vector<1x1xf32>
      %cst_40 = arith.constant 1.000000e+00 : f32
      %82 = vector.broadcast %cst_40 : f32 to vector<1x1xf32>
      %83 = arith.divf %82, %81 : vector<1x1xf32>
      %84 = vector.broadcast %83 : vector<1x1xf32> to vector<1x64xf32>
      %85 = arith.mulf %80, %84 : vector<1x64xf32>
      %86 = vector.extract_strided_slice %79 {offsets = [0, 1], sizes = [32, 1], strides = [1, 1]} : vector<32x64xf32> to vector<32x1xf32>
      %c1_i32_41 = arith.constant 1 : i32
      %87 = vector.broadcast %c1_i32_41 : i32 to vector<32x1xi32>
      %88 = arith.cmpi eq, %63, %87 : vector<32x1xi32>
      %89 = arith.extui %88 : vector<32x1xi1> to vector<32x1xi32>
      %90 = arith.sitofp %89 : vector<32x1xi32> to vector<32x1xf32>
      %91 = arith.subf %86, %90 : vector<32x1xf32>
      %92 = vector.broadcast %91 : vector<32x1xf32> to vector<32x64xf32>
      %93 = vector.broadcast %85 : vector<1x64xf32> to vector<32x64xf32>
      %94 = arith.mulf %92, %93 : vector<32x64xf32>
      %95 = arith.subf %79, %94 : vector<32x64xf32>
      %96 = vector.extract_strided_slice %95 {offsets = [2, 0], sizes = [1, 64], strides = [1, 1]} : vector<32x64xf32> to vector<1x64xf32>
      %97 = vector.extract_strided_slice %95 {offsets = [2, 2], sizes = [1, 1], strides = [1, 1]} : vector<32x64xf32> to vector<1x1xf32>
      %cst_42 = arith.constant 1.000000e+00 : f32
      %98 = vector.broadcast %cst_42 : f32 to vector<1x1xf32>
      %99 = arith.divf %98, %97 : vector<1x1xf32>
      %100 = vector.broadcast %99 : vector<1x1xf32> to vector<1x64xf32>
      %101 = arith.mulf %96, %100 : vector<1x64xf32>
      %102 = vector.extract_strided_slice %95 {offsets = [0, 2], sizes = [32, 1], strides = [1, 1]} : vector<32x64xf32> to vector<32x1xf32>
      %c2_i32 = arith.constant 2 : i32
      %103 = vector.broadcast %c2_i32 : i32 to vector<32x1xi32>
      %104 = arith.cmpi eq, %63, %103 : vector<32x1xi32>
      %105 = arith.extui %104 : vector<32x1xi1> to vector<32x1xi32>
      %106 = arith.sitofp %105 : vector<32x1xi32> to vector<32x1xf32>
      %107 = arith.subf %102, %106 : vector<32x1xf32>
      %108 = vector.broadcast %107 : vector<32x1xf32> to vector<32x64xf32>
      %109 = vector.broadcast %101 : vector<1x64xf32> to vector<32x64xf32>
      %110 = arith.mulf %108, %109 : vector<32x64xf32>
      %111 = arith.subf %95, %110 : vector<32x64xf32>
      %112 = vector.extract_strided_slice %111 {offsets = [3, 0], sizes = [1, 64], strides = [1, 1]} : vector<32x64xf32> to vector<1x64xf32>
      %113 = vector.extract_strided_slice %111 {offsets = [3, 3], sizes = [1, 1], strides = [1, 1]} : vector<32x64xf32> to vector<1x1xf32>
      %cst_43 = arith.constant 1.000000e+00 : f32
      %114 = vector.broadcast %cst_43 : f32 to vector<1x1xf32>
      %115 = arith.divf %114, %113 : vector<1x1xf32>
      %116 = vector.broadcast %115 : vector<1x1xf32> to vector<1x64xf32>
      %117 = arith.mulf %112, %116 : vector<1x64xf32>
      %118 = vector.extract_strided_slice %111 {offsets = [0, 3], sizes = [32, 1], strides = [1, 1]} : vector<32x64xf32> to vector<32x1xf32>
      %c3_i32 = arith.constant 3 : i32
      %119 = vector.broadcast %c3_i32 : i32 to vector<32x1xi32>
      %120 = arith.cmpi eq, %63, %119 : vector<32x1xi32>
      %121 = arith.extui %120 : vector<32x1xi1> to vector<32x1xi32>
      %122 = arith.sitofp %121 : vector<32x1xi32> to vector<32x1xf32>
      %123 = arith.subf %118, %122 : vector<32x1xf32>
      %124 = vector.broadcast %123 : vector<32x1xf32> to vector<32x64xf32>
      %125 = vector.broadcast %117 : vector<1x64xf32> to vector<32x64xf32>
      %126 = arith.mulf %124, %125 : vector<32x64xf32>
      %127 = arith.subf %111, %126 : vector<32x64xf32>
      %128 = vector.extract_strided_slice %127 {offsets = [4, 0], sizes = [1, 64], strides = [1, 1]} : vector<32x64xf32> to vector<1x64xf32>
      %129 = vector.extract_strided_slice %127 {offsets = [4, 4], sizes = [1, 1], strides = [1, 1]} : vector<32x64xf32> to vector<1x1xf32>
      %cst_44 = arith.constant 1.000000e+00 : f32
      %130 = vector.broadcast %cst_44 : f32 to vector<1x1xf32>
      %131 = arith.divf %130, %129 : vector<1x1xf32>
      %132 = vector.broadcast %131 : vector<1x1xf32> to vector<1x64xf32>
      %133 = arith.mulf %128, %132 : vector<1x64xf32>
      %134 = vector.extract_strided_slice %127 {offsets = [0, 4], sizes = [32, 1], strides = [1, 1]} : vector<32x64xf32> to vector<32x1xf32>
      %c4_i32 = arith.constant 4 : i32
      %135 = vector.broadcast %c4_i32 : i32 to vector<32x1xi32>
      %136 = arith.cmpi eq, %63, %135 : vector<32x1xi32>
      %137 = arith.extui %136 : vector<32x1xi1> to vector<32x1xi32>
      %138 = arith.sitofp %137 : vector<32x1xi32> to vector<32x1xf32>
      %139 = arith.subf %134, %138 : vector<32x1xf32>
      %140 = vector.broadcast %139 : vector<32x1xf32> to vector<32x64xf32>
      %141 = vector.broadcast %133 : vector<1x64xf32> to vector<32x64xf32>
      %142 = arith.mulf %140, %141 : vector<32x64xf32>
      %143 = arith.subf %127, %142 : vector<32x64xf32>
      %144 = vector.extract_strided_slice %143 {offsets = [5, 0], sizes = [1, 64], strides = [1, 1]} : vector<32x64xf32> to vector<1x64xf32>
      %145 = vector.extract_strided_slice %143 {offsets = [5, 5], sizes = [1, 1], strides = [1, 1]} : vector<32x64xf32> to vector<1x1xf32>
      %cst_45 = arith.constant 1.000000e+00 : f32
      %146 = vector.broadcast %cst_45 : f32 to vector<1x1xf32>
      %147 = arith.divf %146, %145 : vector<1x1xf32>
      %148 = vector.broadcast %147 : vector<1x1xf32> to vector<1x64xf32>
      %149 = arith.mulf %144, %148 : vector<1x64xf32>
      %150 = vector.extract_strided_slice %143 {offsets = [0, 5], sizes = [32, 1], strides = [1, 1]} : vector<32x64xf32> to vector<32x1xf32>
      %c5_i32 = arith.constant 5 : i32
      %151 = vector.broadcast %c5_i32 : i32 to vector<32x1xi32>
      %152 = arith.cmpi eq, %63, %151 : vector<32x1xi32>
      %153 = arith.extui %152 : vector<32x1xi1> to vector<32x1xi32>
      %154 = arith.sitofp %153 : vector<32x1xi32> to vector<32x1xf32>
      %155 = arith.subf %150, %154 : vector<32x1xf32>
      %156 = vector.broadcast %155 : vector<32x1xf32> to vector<32x64xf32>
      %157 = vector.broadcast %149 : vector<1x64xf32> to vector<32x64xf32>
      %158 = arith.mulf %156, %157 : vector<32x64xf32>
      %159 = arith.subf %143, %158 : vector<32x64xf32>
      %160 = vector.extract_strided_slice %159 {offsets = [6, 0], sizes = [1, 64], strides = [1, 1]} : vector<32x64xf32> to vector<1x64xf32>
      %161 = vector.extract_strided_slice %159 {offsets = [6, 6], sizes = [1, 1], strides = [1, 1]} : vector<32x64xf32> to vector<1x1xf32>
      %cst_46 = arith.constant 1.000000e+00 : f32
      %162 = vector.broadcast %cst_46 : f32 to vector<1x1xf32>
      %163 = arith.divf %162, %161 : vector<1x1xf32>
      %164 = vector.broadcast %163 : vector<1x1xf32> to vector<1x64xf32>
      %165 = arith.mulf %160, %164 : vector<1x64xf32>
      %166 = vector.extract_strided_slice %159 {offsets = [0, 6], sizes = [32, 1], strides = [1, 1]} : vector<32x64xf32> to vector<32x1xf32>
      %c6_i32 = arith.constant 6 : i32
      %167 = vector.broadcast %c6_i32 : i32 to vector<32x1xi32>
      %168 = arith.cmpi eq, %63, %167 : vector<32x1xi32>
      %169 = arith.extui %168 : vector<32x1xi1> to vector<32x1xi32>
      %170 = arith.sitofp %169 : vector<32x1xi32> to vector<32x1xf32>
      %171 = arith.subf %166, %170 : vector<32x1xf32>
      %172 = vector.broadcast %171 : vector<32x1xf32> to vector<32x64xf32>
      %173 = vector.broadcast %165 : vector<1x64xf32> to vector<32x64xf32>
      %174 = arith.mulf %172, %173 : vector<32x64xf32>
      %175 = arith.subf %159, %174 : vector<32x64xf32>
      %176 = vector.extract_strided_slice %175 {offsets = [7, 0], sizes = [1, 64], strides = [1, 1]} : vector<32x64xf32> to vector<1x64xf32>
      %177 = vector.extract_strided_slice %175 {offsets = [7, 7], sizes = [1, 1], strides = [1, 1]} : vector<32x64xf32> to vector<1x1xf32>
      %cst_47 = arith.constant 1.000000e+00 : f32
      %178 = vector.broadcast %cst_47 : f32 to vector<1x1xf32>
      %179 = arith.divf %178, %177 : vector<1x1xf32>
      %180 = vector.broadcast %179 : vector<1x1xf32> to vector<1x64xf32>
      %181 = arith.mulf %176, %180 : vector<1x64xf32>
      %182 = vector.extract_strided_slice %175 {offsets = [0, 7], sizes = [32, 1], strides = [1, 1]} : vector<32x64xf32> to vector<32x1xf32>
      %c7_i32 = arith.constant 7 : i32
      %183 = vector.broadcast %c7_i32 : i32 to vector<32x1xi32>
      %184 = arith.cmpi eq, %63, %183 : vector<32x1xi32>
      %185 = arith.extui %184 : vector<32x1xi1> to vector<32x1xi32>
      %186 = arith.sitofp %185 : vector<32x1xi32> to vector<32x1xf32>
      %187 = arith.subf %182, %186 : vector<32x1xf32>
      %188 = vector.broadcast %187 : vector<32x1xf32> to vector<32x64xf32>
      %189 = vector.broadcast %181 : vector<1x64xf32> to vector<32x64xf32>
      %190 = arith.mulf %188, %189 : vector<32x64xf32>
      %191 = arith.subf %175, %190 : vector<32x64xf32>
      %192 = vector.extract_strided_slice %191 {offsets = [8, 0], sizes = [1, 64], strides = [1, 1]} : vector<32x64xf32> to vector<1x64xf32>
      %193 = vector.extract_strided_slice %191 {offsets = [8, 8], sizes = [1, 1], strides = [1, 1]} : vector<32x64xf32> to vector<1x1xf32>
      %cst_48 = arith.constant 1.000000e+00 : f32
      %194 = vector.broadcast %cst_48 : f32 to vector<1x1xf32>
      %195 = arith.divf %194, %193 : vector<1x1xf32>
      %196 = vector.broadcast %195 : vector<1x1xf32> to vector<1x64xf32>
      %197 = arith.mulf %192, %196 : vector<1x64xf32>
      %198 = vector.extract_strided_slice %191 {offsets = [0, 8], sizes = [32, 1], strides = [1, 1]} : vector<32x64xf32> to vector<32x1xf32>
      %c8_i32_49 = arith.constant 8 : i32
      %199 = vector.broadcast %c8_i32_49 : i32 to vector<32x1xi32>
      %200 = arith.cmpi eq, %63, %199 : vector<32x1xi32>
      %201 = arith.extui %200 : vector<32x1xi1> to vector<32x1xi32>
      %202 = arith.sitofp %201 : vector<32x1xi32> to vector<32x1xf32>
      %203 = arith.subf %198, %202 : vector<32x1xf32>
      %204 = vector.broadcast %203 : vector<32x1xf32> to vector<32x64xf32>
      %205 = vector.broadcast %197 : vector<1x64xf32> to vector<32x64xf32>
      %206 = arith.mulf %204, %205 : vector<32x64xf32>
      %207 = arith.subf %191, %206 : vector<32x64xf32>
      %208 = vector.extract_strided_slice %207 {offsets = [9, 0], sizes = [1, 64], strides = [1, 1]} : vector<32x64xf32> to vector<1x64xf32>
      %209 = vector.extract_strided_slice %207 {offsets = [9, 9], sizes = [1, 1], strides = [1, 1]} : vector<32x64xf32> to vector<1x1xf32>
      %cst_50 = arith.constant 1.000000e+00 : f32
      %210 = vector.broadcast %cst_50 : f32 to vector<1x1xf32>
      %211 = arith.divf %210, %209 : vector<1x1xf32>
      %212 = vector.broadcast %211 : vector<1x1xf32> to vector<1x64xf32>
      %213 = arith.mulf %208, %212 : vector<1x64xf32>
      %214 = vector.extract_strided_slice %207 {offsets = [0, 9], sizes = [32, 1], strides = [1, 1]} : vector<32x64xf32> to vector<32x1xf32>
      %c9_i32_51 = arith.constant 9 : i32
      %215 = vector.broadcast %c9_i32_51 : i32 to vector<32x1xi32>
      %216 = arith.cmpi eq, %63, %215 : vector<32x1xi32>
      %217 = arith.extui %216 : vector<32x1xi1> to vector<32x1xi32>
      %218 = arith.sitofp %217 : vector<32x1xi32> to vector<32x1xf32>
      %219 = arith.subf %214, %218 : vector<32x1xf32>
      %220 = vector.broadcast %219 : vector<32x1xf32> to vector<32x64xf32>
      %221 = vector.broadcast %213 : vector<1x64xf32> to vector<32x64xf32>
      %222 = arith.mulf %220, %221 : vector<32x64xf32>
      %223 = arith.subf %207, %222 : vector<32x64xf32>
      %224 = vector.extract_strided_slice %223 {offsets = [10, 0], sizes = [1, 64], strides = [1, 1]} : vector<32x64xf32> to vector<1x64xf32>
      %225 = vector.extract_strided_slice %223 {offsets = [10, 10], sizes = [1, 1], strides = [1, 1]} : vector<32x64xf32> to vector<1x1xf32>
      %cst_52 = arith.constant 1.000000e+00 : f32
      %226 = vector.broadcast %cst_52 : f32 to vector<1x1xf32>
      %227 = arith.divf %226, %225 : vector<1x1xf32>
      %228 = vector.broadcast %227 : vector<1x1xf32> to vector<1x64xf32>
      %229 = arith.mulf %224, %228 : vector<1x64xf32>
      %230 = vector.extract_strided_slice %223 {offsets = [0, 10], sizes = [32, 1], strides = [1, 1]} : vector<32x64xf32> to vector<32x1xf32>
      %c10_i32 = arith.constant 10 : i32
      %231 = vector.broadcast %c10_i32 : i32 to vector<32x1xi32>
      %232 = arith.cmpi eq, %63, %231 : vector<32x1xi32>
      %233 = arith.extui %232 : vector<32x1xi1> to vector<32x1xi32>
      %234 = arith.sitofp %233 : vector<32x1xi32> to vector<32x1xf32>
      %235 = arith.subf %230, %234 : vector<32x1xf32>
      %236 = vector.broadcast %235 : vector<32x1xf32> to vector<32x64xf32>
      %237 = vector.broadcast %229 : vector<1x64xf32> to vector<32x64xf32>
      %238 = arith.mulf %236, %237 : vector<32x64xf32>
      %239 = arith.subf %223, %238 : vector<32x64xf32>
      %240 = vector.extract_strided_slice %239 {offsets = [11, 0], sizes = [1, 64], strides = [1, 1]} : vector<32x64xf32> to vector<1x64xf32>
      %241 = vector.extract_strided_slice %239 {offsets = [11, 11], sizes = [1, 1], strides = [1, 1]} : vector<32x64xf32> to vector<1x1xf32>
      %cst_53 = arith.constant 1.000000e+00 : f32
      %242 = vector.broadcast %cst_53 : f32 to vector<1x1xf32>
      %243 = arith.divf %242, %241 : vector<1x1xf32>
      %244 = vector.broadcast %243 : vector<1x1xf32> to vector<1x64xf32>
      %245 = arith.mulf %240, %244 : vector<1x64xf32>
      %246 = vector.extract_strided_slice %239 {offsets = [0, 11], sizes = [32, 1], strides = [1, 1]} : vector<32x64xf32> to vector<32x1xf32>
      %c11_i32 = arith.constant 11 : i32
      %247 = vector.broadcast %c11_i32 : i32 to vector<32x1xi32>
      %248 = arith.cmpi eq, %63, %247 : vector<32x1xi32>
      %249 = arith.extui %248 : vector<32x1xi1> to vector<32x1xi32>
      %250 = arith.sitofp %249 : vector<32x1xi32> to vector<32x1xf32>
      %251 = arith.subf %246, %250 : vector<32x1xf32>
      %252 = vector.broadcast %251 : vector<32x1xf32> to vector<32x64xf32>
      %253 = vector.broadcast %245 : vector<1x64xf32> to vector<32x64xf32>
      %254 = arith.mulf %252, %253 : vector<32x64xf32>
      %255 = arith.subf %239, %254 : vector<32x64xf32>
      %256 = vector.extract_strided_slice %255 {offsets = [12, 0], sizes = [1, 64], strides = [1, 1]} : vector<32x64xf32> to vector<1x64xf32>
      %257 = vector.extract_strided_slice %255 {offsets = [12, 12], sizes = [1, 1], strides = [1, 1]} : vector<32x64xf32> to vector<1x1xf32>
      %cst_54 = arith.constant 1.000000e+00 : f32
      %258 = vector.broadcast %cst_54 : f32 to vector<1x1xf32>
      %259 = arith.divf %258, %257 : vector<1x1xf32>
      %260 = vector.broadcast %259 : vector<1x1xf32> to vector<1x64xf32>
      %261 = arith.mulf %256, %260 : vector<1x64xf32>
      %262 = vector.extract_strided_slice %255 {offsets = [0, 12], sizes = [32, 1], strides = [1, 1]} : vector<32x64xf32> to vector<32x1xf32>
      %c12_i32 = arith.constant 12 : i32
      %263 = vector.broadcast %c12_i32 : i32 to vector<32x1xi32>
      %264 = arith.cmpi eq, %63, %263 : vector<32x1xi32>
      %265 = arith.extui %264 : vector<32x1xi1> to vector<32x1xi32>
      %266 = arith.sitofp %265 : vector<32x1xi32> to vector<32x1xf32>
      %267 = arith.subf %262, %266 : vector<32x1xf32>
      %268 = vector.broadcast %267 : vector<32x1xf32> to vector<32x64xf32>
      %269 = vector.broadcast %261 : vector<1x64xf32> to vector<32x64xf32>
      %270 = arith.mulf %268, %269 : vector<32x64xf32>
      %271 = arith.subf %255, %270 : vector<32x64xf32>
      %272 = vector.extract_strided_slice %271 {offsets = [13, 0], sizes = [1, 64], strides = [1, 1]} : vector<32x64xf32> to vector<1x64xf32>
      %273 = vector.extract_strided_slice %271 {offsets = [13, 13], sizes = [1, 1], strides = [1, 1]} : vector<32x64xf32> to vector<1x1xf32>
      %cst_55 = arith.constant 1.000000e+00 : f32
      %274 = vector.broadcast %cst_55 : f32 to vector<1x1xf32>
      %275 = arith.divf %274, %273 : vector<1x1xf32>
      %276 = vector.broadcast %275 : vector<1x1xf32> to vector<1x64xf32>
      %277 = arith.mulf %272, %276 : vector<1x64xf32>
      %278 = vector.extract_strided_slice %271 {offsets = [0, 13], sizes = [32, 1], strides = [1, 1]} : vector<32x64xf32> to vector<32x1xf32>
      %c13_i32 = arith.constant 13 : i32
      %279 = vector.broadcast %c13_i32 : i32 to vector<32x1xi32>
      %280 = arith.cmpi eq, %63, %279 : vector<32x1xi32>
      %281 = arith.extui %280 : vector<32x1xi1> to vector<32x1xi32>
      %282 = arith.sitofp %281 : vector<32x1xi32> to vector<32x1xf32>
      %283 = arith.subf %278, %282 : vector<32x1xf32>
      %284 = vector.broadcast %283 : vector<32x1xf32> to vector<32x64xf32>
      %285 = vector.broadcast %277 : vector<1x64xf32> to vector<32x64xf32>
      %286 = arith.mulf %284, %285 : vector<32x64xf32>
      %287 = arith.subf %271, %286 : vector<32x64xf32>
      %288 = vector.extract_strided_slice %287 {offsets = [14, 0], sizes = [1, 64], strides = [1, 1]} : vector<32x64xf32> to vector<1x64xf32>
      %289 = vector.extract_strided_slice %287 {offsets = [14, 14], sizes = [1, 1], strides = [1, 1]} : vector<32x64xf32> to vector<1x1xf32>
      %cst_56 = arith.constant 1.000000e+00 : f32
      %290 = vector.broadcast %cst_56 : f32 to vector<1x1xf32>
      %291 = arith.divf %290, %289 : vector<1x1xf32>
      %292 = vector.broadcast %291 : vector<1x1xf32> to vector<1x64xf32>
      %293 = arith.mulf %288, %292 : vector<1x64xf32>
      %294 = vector.extract_strided_slice %287 {offsets = [0, 14], sizes = [32, 1], strides = [1, 1]} : vector<32x64xf32> to vector<32x1xf32>
      %c14_i32 = arith.constant 14 : i32
      %295 = vector.broadcast %c14_i32 : i32 to vector<32x1xi32>
      %296 = arith.cmpi eq, %63, %295 : vector<32x1xi32>
      %297 = arith.extui %296 : vector<32x1xi1> to vector<32x1xi32>
      %298 = arith.sitofp %297 : vector<32x1xi32> to vector<32x1xf32>
      %299 = arith.subf %294, %298 : vector<32x1xf32>
      %300 = vector.broadcast %299 : vector<32x1xf32> to vector<32x64xf32>
      %301 = vector.broadcast %293 : vector<1x64xf32> to vector<32x64xf32>
      %302 = arith.mulf %300, %301 : vector<32x64xf32>
      %303 = arith.subf %287, %302 : vector<32x64xf32>
      %304 = vector.extract_strided_slice %303 {offsets = [15, 0], sizes = [1, 64], strides = [1, 1]} : vector<32x64xf32> to vector<1x64xf32>
      %305 = vector.extract_strided_slice %303 {offsets = [15, 15], sizes = [1, 1], strides = [1, 1]} : vector<32x64xf32> to vector<1x1xf32>
      %cst_57 = arith.constant 1.000000e+00 : f32
      %306 = vector.broadcast %cst_57 : f32 to vector<1x1xf32>
      %307 = arith.divf %306, %305 : vector<1x1xf32>
      %308 = vector.broadcast %307 : vector<1x1xf32> to vector<1x64xf32>
      %309 = arith.mulf %304, %308 : vector<1x64xf32>
      %310 = vector.extract_strided_slice %303 {offsets = [0, 15], sizes = [32, 1], strides = [1, 1]} : vector<32x64xf32> to vector<32x1xf32>
      %c15_i32 = arith.constant 15 : i32
      %311 = vector.broadcast %c15_i32 : i32 to vector<32x1xi32>
      %312 = arith.cmpi eq, %63, %311 : vector<32x1xi32>
      %313 = arith.extui %312 : vector<32x1xi1> to vector<32x1xi32>
      %314 = arith.sitofp %313 : vector<32x1xi32> to vector<32x1xf32>
      %315 = arith.subf %310, %314 : vector<32x1xf32>
      %316 = vector.broadcast %315 : vector<32x1xf32> to vector<32x64xf32>
      %317 = vector.broadcast %309 : vector<1x64xf32> to vector<32x64xf32>
      %318 = arith.mulf %316, %317 : vector<32x64xf32>
      %319 = arith.subf %303, %318 : vector<32x64xf32>
      %320 = vector.extract_strided_slice %319 {offsets = [16, 0], sizes = [1, 64], strides = [1, 1]} : vector<32x64xf32> to vector<1x64xf32>
      %321 = vector.extract_strided_slice %319 {offsets = [16, 16], sizes = [1, 1], strides = [1, 1]} : vector<32x64xf32> to vector<1x1xf32>
      %cst_58 = arith.constant 1.000000e+00 : f32
      %322 = vector.broadcast %cst_58 : f32 to vector<1x1xf32>
      %323 = arith.divf %322, %321 : vector<1x1xf32>
      %324 = vector.broadcast %323 : vector<1x1xf32> to vector<1x64xf32>
      %325 = arith.mulf %320, %324 : vector<1x64xf32>
      %326 = vector.extract_strided_slice %319 {offsets = [0, 16], sizes = [32, 1], strides = [1, 1]} : vector<32x64xf32> to vector<32x1xf32>
      %c16_i32 = arith.constant 16 : i32
      %327 = vector.broadcast %c16_i32 : i32 to vector<32x1xi32>
      %328 = arith.cmpi eq, %63, %327 : vector<32x1xi32>
      %329 = arith.extui %328 : vector<32x1xi1> to vector<32x1xi32>
      %330 = arith.sitofp %329 : vector<32x1xi32> to vector<32x1xf32>
      %331 = arith.subf %326, %330 : vector<32x1xf32>
      %332 = vector.broadcast %331 : vector<32x1xf32> to vector<32x64xf32>
      %333 = vector.broadcast %325 : vector<1x64xf32> to vector<32x64xf32>
      %334 = arith.mulf %332, %333 : vector<32x64xf32>
      %335 = arith.subf %319, %334 : vector<32x64xf32>
      %336 = vector.extract_strided_slice %335 {offsets = [17, 0], sizes = [1, 64], strides = [1, 1]} : vector<32x64xf32> to vector<1x64xf32>
      %337 = vector.extract_strided_slice %335 {offsets = [17, 17], sizes = [1, 1], strides = [1, 1]} : vector<32x64xf32> to vector<1x1xf32>
      %cst_59 = arith.constant 1.000000e+00 : f32
      %338 = vector.broadcast %cst_59 : f32 to vector<1x1xf32>
      %339 = arith.divf %338, %337 : vector<1x1xf32>
      %340 = vector.broadcast %339 : vector<1x1xf32> to vector<1x64xf32>
      %341 = arith.mulf %336, %340 : vector<1x64xf32>
      %342 = vector.extract_strided_slice %335 {offsets = [0, 17], sizes = [32, 1], strides = [1, 1]} : vector<32x64xf32> to vector<32x1xf32>
      %c17_i32 = arith.constant 17 : i32
      %343 = vector.broadcast %c17_i32 : i32 to vector<32x1xi32>
      %344 = arith.cmpi eq, %63, %343 : vector<32x1xi32>
      %345 = arith.extui %344 : vector<32x1xi1> to vector<32x1xi32>
      %346 = arith.sitofp %345 : vector<32x1xi32> to vector<32x1xf32>
      %347 = arith.subf %342, %346 : vector<32x1xf32>
      %348 = vector.broadcast %347 : vector<32x1xf32> to vector<32x64xf32>
      %349 = vector.broadcast %341 : vector<1x64xf32> to vector<32x64xf32>
      %350 = arith.mulf %348, %349 : vector<32x64xf32>
      %351 = arith.subf %335, %350 : vector<32x64xf32>
      %352 = vector.extract_strided_slice %351 {offsets = [18, 0], sizes = [1, 64], strides = [1, 1]} : vector<32x64xf32> to vector<1x64xf32>
      %353 = vector.extract_strided_slice %351 {offsets = [18, 18], sizes = [1, 1], strides = [1, 1]} : vector<32x64xf32> to vector<1x1xf32>
      %cst_60 = arith.constant 1.000000e+00 : f32
      %354 = vector.broadcast %cst_60 : f32 to vector<1x1xf32>
      %355 = arith.divf %354, %353 : vector<1x1xf32>
      %356 = vector.broadcast %355 : vector<1x1xf32> to vector<1x64xf32>
      %357 = arith.mulf %352, %356 : vector<1x64xf32>
      %358 = vector.extract_strided_slice %351 {offsets = [0, 18], sizes = [32, 1], strides = [1, 1]} : vector<32x64xf32> to vector<32x1xf32>
      %c18_i32 = arith.constant 18 : i32
      %359 = vector.broadcast %c18_i32 : i32 to vector<32x1xi32>
      %360 = arith.cmpi eq, %63, %359 : vector<32x1xi32>
      %361 = arith.extui %360 : vector<32x1xi1> to vector<32x1xi32>
      %362 = arith.sitofp %361 : vector<32x1xi32> to vector<32x1xf32>
      %363 = arith.subf %358, %362 : vector<32x1xf32>
      %364 = vector.broadcast %363 : vector<32x1xf32> to vector<32x64xf32>
      %365 = vector.broadcast %357 : vector<1x64xf32> to vector<32x64xf32>
      %366 = arith.mulf %364, %365 : vector<32x64xf32>
      %367 = arith.subf %351, %366 : vector<32x64xf32>
      %368 = vector.extract_strided_slice %367 {offsets = [19, 0], sizes = [1, 64], strides = [1, 1]} : vector<32x64xf32> to vector<1x64xf32>
      %369 = vector.extract_strided_slice %367 {offsets = [19, 19], sizes = [1, 1], strides = [1, 1]} : vector<32x64xf32> to vector<1x1xf32>
      %cst_61 = arith.constant 1.000000e+00 : f32
      %370 = vector.broadcast %cst_61 : f32 to vector<1x1xf32>
      %371 = arith.divf %370, %369 : vector<1x1xf32>
      %372 = vector.broadcast %371 : vector<1x1xf32> to vector<1x64xf32>
      %373 = arith.mulf %368, %372 : vector<1x64xf32>
      %374 = vector.extract_strided_slice %367 {offsets = [0, 19], sizes = [32, 1], strides = [1, 1]} : vector<32x64xf32> to vector<32x1xf32>
      %c19_i32 = arith.constant 19 : i32
      %375 = vector.broadcast %c19_i32 : i32 to vector<32x1xi32>
      %376 = arith.cmpi eq, %63, %375 : vector<32x1xi32>
      %377 = arith.extui %376 : vector<32x1xi1> to vector<32x1xi32>
      %378 = arith.sitofp %377 : vector<32x1xi32> to vector<32x1xf32>
      %379 = arith.subf %374, %378 : vector<32x1xf32>
      %380 = vector.broadcast %379 : vector<32x1xf32> to vector<32x64xf32>
      %381 = vector.broadcast %373 : vector<1x64xf32> to vector<32x64xf32>
      %382 = arith.mulf %380, %381 : vector<32x64xf32>
      %383 = arith.subf %367, %382 : vector<32x64xf32>
      %384 = vector.extract_strided_slice %383 {offsets = [20, 0], sizes = [1, 64], strides = [1, 1]} : vector<32x64xf32> to vector<1x64xf32>
      %385 = vector.extract_strided_slice %383 {offsets = [20, 20], sizes = [1, 1], strides = [1, 1]} : vector<32x64xf32> to vector<1x1xf32>
      %cst_62 = arith.constant 1.000000e+00 : f32
      %386 = vector.broadcast %cst_62 : f32 to vector<1x1xf32>
      %387 = arith.divf %386, %385 : vector<1x1xf32>
      %388 = vector.broadcast %387 : vector<1x1xf32> to vector<1x64xf32>
      %389 = arith.mulf %384, %388 : vector<1x64xf32>
      %390 = vector.extract_strided_slice %383 {offsets = [0, 20], sizes = [32, 1], strides = [1, 1]} : vector<32x64xf32> to vector<32x1xf32>
      %c20_i32 = arith.constant 20 : i32
      %391 = vector.broadcast %c20_i32 : i32 to vector<32x1xi32>
      %392 = arith.cmpi eq, %63, %391 : vector<32x1xi32>
      %393 = arith.extui %392 : vector<32x1xi1> to vector<32x1xi32>
      %394 = arith.sitofp %393 : vector<32x1xi32> to vector<32x1xf32>
      %395 = arith.subf %390, %394 : vector<32x1xf32>
      %396 = vector.broadcast %395 : vector<32x1xf32> to vector<32x64xf32>
      %397 = vector.broadcast %389 : vector<1x64xf32> to vector<32x64xf32>
      %398 = arith.mulf %396, %397 : vector<32x64xf32>
      %399 = arith.subf %383, %398 : vector<32x64xf32>
      %400 = vector.extract_strided_slice %399 {offsets = [21, 0], sizes = [1, 64], strides = [1, 1]} : vector<32x64xf32> to vector<1x64xf32>
      %401 = vector.extract_strided_slice %399 {offsets = [21, 21], sizes = [1, 1], strides = [1, 1]} : vector<32x64xf32> to vector<1x1xf32>
      %cst_63 = arith.constant 1.000000e+00 : f32
      %402 = vector.broadcast %cst_63 : f32 to vector<1x1xf32>
      %403 = arith.divf %402, %401 : vector<1x1xf32>
      %404 = vector.broadcast %403 : vector<1x1xf32> to vector<1x64xf32>
      %405 = arith.mulf %400, %404 : vector<1x64xf32>
      %406 = vector.extract_strided_slice %399 {offsets = [0, 21], sizes = [32, 1], strides = [1, 1]} : vector<32x64xf32> to vector<32x1xf32>
      %c21_i32 = arith.constant 21 : i32
      %407 = vector.broadcast %c21_i32 : i32 to vector<32x1xi32>
      %408 = arith.cmpi eq, %63, %407 : vector<32x1xi32>
      %409 = arith.extui %408 : vector<32x1xi1> to vector<32x1xi32>
      %410 = arith.sitofp %409 : vector<32x1xi32> to vector<32x1xf32>
      %411 = arith.subf %406, %410 : vector<32x1xf32>
      %412 = vector.broadcast %411 : vector<32x1xf32> to vector<32x64xf32>
      %413 = vector.broadcast %405 : vector<1x64xf32> to vector<32x64xf32>
      %414 = arith.mulf %412, %413 : vector<32x64xf32>
      %415 = arith.subf %399, %414 : vector<32x64xf32>
      %416 = vector.extract_strided_slice %415 {offsets = [22, 0], sizes = [1, 64], strides = [1, 1]} : vector<32x64xf32> to vector<1x64xf32>
      %417 = vector.extract_strided_slice %415 {offsets = [22, 22], sizes = [1, 1], strides = [1, 1]} : vector<32x64xf32> to vector<1x1xf32>
      %cst_64 = arith.constant 1.000000e+00 : f32
      %418 = vector.broadcast %cst_64 : f32 to vector<1x1xf32>
      %419 = arith.divf %418, %417 : vector<1x1xf32>
      %420 = vector.broadcast %419 : vector<1x1xf32> to vector<1x64xf32>
      %421 = arith.mulf %416, %420 : vector<1x64xf32>
      %422 = vector.extract_strided_slice %415 {offsets = [0, 22], sizes = [32, 1], strides = [1, 1]} : vector<32x64xf32> to vector<32x1xf32>
      %c22_i32 = arith.constant 22 : i32
      %423 = vector.broadcast %c22_i32 : i32 to vector<32x1xi32>
      %424 = arith.cmpi eq, %63, %423 : vector<32x1xi32>
      %425 = arith.extui %424 : vector<32x1xi1> to vector<32x1xi32>
      %426 = arith.sitofp %425 : vector<32x1xi32> to vector<32x1xf32>
      %427 = arith.subf %422, %426 : vector<32x1xf32>
      %428 = vector.broadcast %427 : vector<32x1xf32> to vector<32x64xf32>
      %429 = vector.broadcast %421 : vector<1x64xf32> to vector<32x64xf32>
      %430 = arith.mulf %428, %429 : vector<32x64xf32>
      %431 = arith.subf %415, %430 : vector<32x64xf32>
      %432 = vector.extract_strided_slice %431 {offsets = [23, 0], sizes = [1, 64], strides = [1, 1]} : vector<32x64xf32> to vector<1x64xf32>
      %433 = vector.extract_strided_slice %431 {offsets = [23, 23], sizes = [1, 1], strides = [1, 1]} : vector<32x64xf32> to vector<1x1xf32>
      %cst_65 = arith.constant 1.000000e+00 : f32
      %434 = vector.broadcast %cst_65 : f32 to vector<1x1xf32>
      %435 = arith.divf %434, %433 : vector<1x1xf32>
      %436 = vector.broadcast %435 : vector<1x1xf32> to vector<1x64xf32>
      %437 = arith.mulf %432, %436 : vector<1x64xf32>
      %438 = vector.extract_strided_slice %431 {offsets = [0, 23], sizes = [32, 1], strides = [1, 1]} : vector<32x64xf32> to vector<32x1xf32>
      %c23_i32 = arith.constant 23 : i32
      %439 = vector.broadcast %c23_i32 : i32 to vector<32x1xi32>
      %440 = arith.cmpi eq, %63, %439 : vector<32x1xi32>
      %441 = arith.extui %440 : vector<32x1xi1> to vector<32x1xi32>
      %442 = arith.sitofp %441 : vector<32x1xi32> to vector<32x1xf32>
      %443 = arith.subf %438, %442 : vector<32x1xf32>
      %444 = vector.broadcast %443 : vector<32x1xf32> to vector<32x64xf32>
      %445 = vector.broadcast %437 : vector<1x64xf32> to vector<32x64xf32>
      %446 = arith.mulf %444, %445 : vector<32x64xf32>
      %447 = arith.subf %431, %446 : vector<32x64xf32>
      %448 = vector.extract_strided_slice %447 {offsets = [24, 0], sizes = [1, 64], strides = [1, 1]} : vector<32x64xf32> to vector<1x64xf32>
      %449 = vector.extract_strided_slice %447 {offsets = [24, 24], sizes = [1, 1], strides = [1, 1]} : vector<32x64xf32> to vector<1x1xf32>
      %cst_66 = arith.constant 1.000000e+00 : f32
      %450 = vector.broadcast %cst_66 : f32 to vector<1x1xf32>
      %451 = arith.divf %450, %449 : vector<1x1xf32>
      %452 = vector.broadcast %451 : vector<1x1xf32> to vector<1x64xf32>
      %453 = arith.mulf %448, %452 : vector<1x64xf32>
      %454 = vector.extract_strided_slice %447 {offsets = [0, 24], sizes = [32, 1], strides = [1, 1]} : vector<32x64xf32> to vector<32x1xf32>
      %c24_i32 = arith.constant 24 : i32
      %455 = vector.broadcast %c24_i32 : i32 to vector<32x1xi32>
      %456 = arith.cmpi eq, %63, %455 : vector<32x1xi32>
      %457 = arith.extui %456 : vector<32x1xi1> to vector<32x1xi32>
      %458 = arith.sitofp %457 : vector<32x1xi32> to vector<32x1xf32>
      %459 = arith.subf %454, %458 : vector<32x1xf32>
      %460 = vector.broadcast %459 : vector<32x1xf32> to vector<32x64xf32>
      %461 = vector.broadcast %453 : vector<1x64xf32> to vector<32x64xf32>
      %462 = arith.mulf %460, %461 : vector<32x64xf32>
      %463 = arith.subf %447, %462 : vector<32x64xf32>
      %464 = vector.extract_strided_slice %463 {offsets = [25, 0], sizes = [1, 64], strides = [1, 1]} : vector<32x64xf32> to vector<1x64xf32>
      %465 = vector.extract_strided_slice %463 {offsets = [25, 25], sizes = [1, 1], strides = [1, 1]} : vector<32x64xf32> to vector<1x1xf32>
      %cst_67 = arith.constant 1.000000e+00 : f32
      %466 = vector.broadcast %cst_67 : f32 to vector<1x1xf32>
      %467 = arith.divf %466, %465 : vector<1x1xf32>
      %468 = vector.broadcast %467 : vector<1x1xf32> to vector<1x64xf32>
      %469 = arith.mulf %464, %468 : vector<1x64xf32>
      %470 = vector.extract_strided_slice %463 {offsets = [0, 25], sizes = [32, 1], strides = [1, 1]} : vector<32x64xf32> to vector<32x1xf32>
      %c25_i32 = arith.constant 25 : i32
      %471 = vector.broadcast %c25_i32 : i32 to vector<32x1xi32>
      %472 = arith.cmpi eq, %63, %471 : vector<32x1xi32>
      %473 = arith.extui %472 : vector<32x1xi1> to vector<32x1xi32>
      %474 = arith.sitofp %473 : vector<32x1xi32> to vector<32x1xf32>
      %475 = arith.subf %470, %474 : vector<32x1xf32>
      %476 = vector.broadcast %475 : vector<32x1xf32> to vector<32x64xf32>
      %477 = vector.broadcast %469 : vector<1x64xf32> to vector<32x64xf32>
      %478 = arith.mulf %476, %477 : vector<32x64xf32>
      %479 = arith.subf %463, %478 : vector<32x64xf32>
      %480 = vector.extract_strided_slice %479 {offsets = [26, 0], sizes = [1, 64], strides = [1, 1]} : vector<32x64xf32> to vector<1x64xf32>
      %481 = vector.extract_strided_slice %479 {offsets = [26, 26], sizes = [1, 1], strides = [1, 1]} : vector<32x64xf32> to vector<1x1xf32>
      %cst_68 = arith.constant 1.000000e+00 : f32
      %482 = vector.broadcast %cst_68 : f32 to vector<1x1xf32>
      %483 = arith.divf %482, %481 : vector<1x1xf32>
      %484 = vector.broadcast %483 : vector<1x1xf32> to vector<1x64xf32>
      %485 = arith.mulf %480, %484 : vector<1x64xf32>
      %486 = vector.extract_strided_slice %479 {offsets = [0, 26], sizes = [32, 1], strides = [1, 1]} : vector<32x64xf32> to vector<32x1xf32>
      %c26_i32 = arith.constant 26 : i32
      %487 = vector.broadcast %c26_i32 : i32 to vector<32x1xi32>
      %488 = arith.cmpi eq, %63, %487 : vector<32x1xi32>
      %489 = arith.extui %488 : vector<32x1xi1> to vector<32x1xi32>
      %490 = arith.sitofp %489 : vector<32x1xi32> to vector<32x1xf32>
      %491 = arith.subf %486, %490 : vector<32x1xf32>
      %492 = vector.broadcast %491 : vector<32x1xf32> to vector<32x64xf32>
      %493 = vector.broadcast %485 : vector<1x64xf32> to vector<32x64xf32>
      %494 = arith.mulf %492, %493 : vector<32x64xf32>
      %495 = arith.subf %479, %494 : vector<32x64xf32>
      %496 = vector.extract_strided_slice %495 {offsets = [27, 0], sizes = [1, 64], strides = [1, 1]} : vector<32x64xf32> to vector<1x64xf32>
      %497 = vector.extract_strided_slice %495 {offsets = [27, 27], sizes = [1, 1], strides = [1, 1]} : vector<32x64xf32> to vector<1x1xf32>
      %cst_69 = arith.constant 1.000000e+00 : f32
      %498 = vector.broadcast %cst_69 : f32 to vector<1x1xf32>
      %499 = arith.divf %498, %497 : vector<1x1xf32>
      %500 = vector.broadcast %499 : vector<1x1xf32> to vector<1x64xf32>
      %501 = arith.mulf %496, %500 : vector<1x64xf32>
      %502 = vector.extract_strided_slice %495 {offsets = [0, 27], sizes = [32, 1], strides = [1, 1]} : vector<32x64xf32> to vector<32x1xf32>
      %c27_i32 = arith.constant 27 : i32
      %503 = vector.broadcast %c27_i32 : i32 to vector<32x1xi32>
      %504 = arith.cmpi eq, %63, %503 : vector<32x1xi32>
      %505 = arith.extui %504 : vector<32x1xi1> to vector<32x1xi32>
      %506 = arith.sitofp %505 : vector<32x1xi32> to vector<32x1xf32>
      %507 = arith.subf %502, %506 : vector<32x1xf32>
      %508 = vector.broadcast %507 : vector<32x1xf32> to vector<32x64xf32>
      %509 = vector.broadcast %501 : vector<1x64xf32> to vector<32x64xf32>
      %510 = arith.mulf %508, %509 : vector<32x64xf32>
      %511 = arith.subf %495, %510 : vector<32x64xf32>
      %512 = vector.extract_strided_slice %511 {offsets = [28, 0], sizes = [1, 64], strides = [1, 1]} : vector<32x64xf32> to vector<1x64xf32>
      %513 = vector.extract_strided_slice %511 {offsets = [28, 28], sizes = [1, 1], strides = [1, 1]} : vector<32x64xf32> to vector<1x1xf32>
      %cst_70 = arith.constant 1.000000e+00 : f32
      %514 = vector.broadcast %cst_70 : f32 to vector<1x1xf32>
      %515 = arith.divf %514, %513 : vector<1x1xf32>
      %516 = vector.broadcast %515 : vector<1x1xf32> to vector<1x64xf32>
      %517 = arith.mulf %512, %516 : vector<1x64xf32>
      %518 = vector.extract_strided_slice %511 {offsets = [0, 28], sizes = [32, 1], strides = [1, 1]} : vector<32x64xf32> to vector<32x1xf32>
      %c28_i32 = arith.constant 28 : i32
      %519 = vector.broadcast %c28_i32 : i32 to vector<32x1xi32>
      %520 = arith.cmpi eq, %63, %519 : vector<32x1xi32>
      %521 = arith.extui %520 : vector<32x1xi1> to vector<32x1xi32>
      %522 = arith.sitofp %521 : vector<32x1xi32> to vector<32x1xf32>
      %523 = arith.subf %518, %522 : vector<32x1xf32>
      %524 = vector.broadcast %523 : vector<32x1xf32> to vector<32x64xf32>
      %525 = vector.broadcast %517 : vector<1x64xf32> to vector<32x64xf32>
      %526 = arith.mulf %524, %525 : vector<32x64xf32>
      %527 = arith.subf %511, %526 : vector<32x64xf32>
      %528 = vector.extract_strided_slice %527 {offsets = [29, 0], sizes = [1, 64], strides = [1, 1]} : vector<32x64xf32> to vector<1x64xf32>
      %529 = vector.extract_strided_slice %527 {offsets = [29, 29], sizes = [1, 1], strides = [1, 1]} : vector<32x64xf32> to vector<1x1xf32>
      %cst_71 = arith.constant 1.000000e+00 : f32
      %530 = vector.broadcast %cst_71 : f32 to vector<1x1xf32>
      %531 = arith.divf %530, %529 : vector<1x1xf32>
      %532 = vector.broadcast %531 : vector<1x1xf32> to vector<1x64xf32>
      %533 = arith.mulf %528, %532 : vector<1x64xf32>
      %534 = vector.extract_strided_slice %527 {offsets = [0, 29], sizes = [32, 1], strides = [1, 1]} : vector<32x64xf32> to vector<32x1xf32>
      %c29_i32 = arith.constant 29 : i32
      %535 = vector.broadcast %c29_i32 : i32 to vector<32x1xi32>
      %536 = arith.cmpi eq, %63, %535 : vector<32x1xi32>
      %537 = arith.extui %536 : vector<32x1xi1> to vector<32x1xi32>
      %538 = arith.sitofp %537 : vector<32x1xi32> to vector<32x1xf32>
      %539 = arith.subf %534, %538 : vector<32x1xf32>
      %540 = vector.broadcast %539 : vector<32x1xf32> to vector<32x64xf32>
      %541 = vector.broadcast %533 : vector<1x64xf32> to vector<32x64xf32>
      %542 = arith.mulf %540, %541 : vector<32x64xf32>
      %543 = arith.subf %527, %542 : vector<32x64xf32>
      %544 = vector.extract_strided_slice %543 {offsets = [30, 0], sizes = [1, 64], strides = [1, 1]} : vector<32x64xf32> to vector<1x64xf32>
      %545 = vector.extract_strided_slice %543 {offsets = [30, 30], sizes = [1, 1], strides = [1, 1]} : vector<32x64xf32> to vector<1x1xf32>
      %cst_72 = arith.constant 1.000000e+00 : f32
      %546 = vector.broadcast %cst_72 : f32 to vector<1x1xf32>
      %547 = arith.divf %546, %545 : vector<1x1xf32>
      %548 = vector.broadcast %547 : vector<1x1xf32> to vector<1x64xf32>
      %549 = arith.mulf %544, %548 : vector<1x64xf32>
      %550 = vector.extract_strided_slice %543 {offsets = [0, 30], sizes = [32, 1], strides = [1, 1]} : vector<32x64xf32> to vector<32x1xf32>
      %c30_i32 = arith.constant 30 : i32
      %551 = vector.broadcast %c30_i32 : i32 to vector<32x1xi32>
      %552 = arith.cmpi eq, %63, %551 : vector<32x1xi32>
      %553 = arith.extui %552 : vector<32x1xi1> to vector<32x1xi32>
      %554 = arith.sitofp %553 : vector<32x1xi32> to vector<32x1xf32>
      %555 = arith.subf %550, %554 : vector<32x1xf32>
      %556 = vector.broadcast %555 : vector<32x1xf32> to vector<32x64xf32>
      %557 = vector.broadcast %549 : vector<1x64xf32> to vector<32x64xf32>
      %558 = arith.mulf %556, %557 : vector<32x64xf32>
      %559 = arith.subf %543, %558 : vector<32x64xf32>
      %560 = vector.extract_strided_slice %559 {offsets = [31, 0], sizes = [1, 64], strides = [1, 1]} : vector<32x64xf32> to vector<1x64xf32>
      %561 = vector.extract_strided_slice %559 {offsets = [31, 31], sizes = [1, 1], strides = [1, 1]} : vector<32x64xf32> to vector<1x1xf32>
      %cst_73 = arith.constant 1.000000e+00 : f32
      %562 = vector.broadcast %cst_73 : f32 to vector<1x1xf32>
      %563 = arith.divf %562, %561 : vector<1x1xf32>
      %564 = vector.broadcast %563 : vector<1x1xf32> to vector<1x64xf32>
      %565 = arith.mulf %560, %564 : vector<1x64xf32>
      %566 = vector.extract_strided_slice %559 {offsets = [0, 31], sizes = [32, 1], strides = [1, 1]} : vector<32x64xf32> to vector<32x1xf32>
      %c31_i32 = arith.constant 31 : i32
      %567 = vector.broadcast %c31_i32 : i32 to vector<32x1xi32>
      %568 = arith.cmpi eq, %63, %567 : vector<32x1xi32>
      %569 = arith.extui %568 : vector<32x1xi1> to vector<32x1xi32>
      %570 = arith.sitofp %569 : vector<32x1xi32> to vector<32x1xf32>
      %571 = arith.subf %566, %570 : vector<32x1xf32>
      %572 = vector.broadcast %571 : vector<32x1xf32> to vector<32x64xf32>
      %573 = vector.broadcast %565 : vector<1x64xf32> to vector<32x64xf32>
      %574 = arith.mulf %572, %573 : vector<32x64xf32>
      %575 = arith.subf %559, %574 : vector<32x64xf32>
      %576 = vector.extract_strided_slice %575 {offsets = [0, 32], sizes = [32, 32], strides = [1, 1]} : vector<32x64xf32> to vector<32x32xf32>
      %577 = arith.subf %arg11, %44 : vector<1x32xf32>
      %578 = arith.subf %arg12, %48 : vector<32x32xf32>
      %cst_74 = arith.constant dense<0.000000e+00> : vector<1x32xf32>
      %579 = tpu.matmul %577, %576, %cst_74 {dimension_numbers = #tpu.dot_dimension_numbers<[1], [0], [0], [1], [0, 0, 1, 1], [], []>} : vector<1x32xf32>, vector<32x32xf32>, vector<1x32xf32> -> vector<1x32xf32>
      %580 = arith.addf %37, %579 : vector<1x32xf32>
      %cst_75 = arith.constant dense<0.000000e+00> : vector<32x32xf32>
      %581 = tpu.matmul %578, %576, %cst_75 {dimension_numbers = #tpu.dot_dimension_numbers<[1], [0], [0], [1], [0, 0, 1, 1], [], []>} : vector<32x32xf32>, vector<32x32xf32>, vector<32x32xf32> -> vector<32x32xf32>
      %cst_76 = arith.constant dense<0.000000e+00> : vector<32x32xf32>
      %582 = tpu.matmul %576, %581, %cst_76 {dimension_numbers = #tpu.dot_dimension_numbers<[0], [0], [1], [1], [0, 1, 1, 1], [], []>} : vector<32x32xf32>, vector<32x32xf32>, vector<32x32xf32> -> vector<32x32xf32>
      %583 = arith.addf %40, %582 : vector<32x32xf32>
      %584 = arith.index_cast %34 : i32 to index
      %c0_77 = arith.constant 0 : index
      %c0_78 = arith.constant 0 : index
      %585 = vector.load %arg6[%584, %c0_77, %c0_78] : memref<10x1x32xf32, #tpu.memory_space<vmem>>, vector<1x1x32xf32>
      %586 = vector.shape_cast %585 : vector<1x1x32xf32> to vector<1x32xf32>
      %587 = vector.shape_cast %580 : vector<1x32xf32> to vector<1x1x32xf32>
      tpu.vector_store %arg6[%584, %c0_77, %c0_78], %587 {strides = array<i32>} : memref<10x1x32xf32, #tpu.memory_space<vmem>>, vector<1x1x32xf32>,
      %588 = arith.index_cast %34 : i32 to index
      %c0_79 = arith.constant 0 : index
      %c0_80 = arith.constant 0 : index
      %589 = vector.load %arg7[%588, %c0_79, %c0_80] : memref<10x32x32xf32, #tpu.memory_space<vmem>>, vector<1x32x32xf32>
      %590 = vector.shape_cast %589 : vector<1x32x32xf32> to vector<32x32xf32>
      %591 = vector.shape_cast %583 : vector<32x32xf32> to vector<1x32x32xf32>
      tpu.vector_store %arg7[%588, %c0_79, %c0_80], %591 {strides = array<i32>} : memref<10x32x32xf32, #tpu.memory_space<vmem>>, vector<1x32x32xf32>,
      scf.yield %580, %583 : vector<1x32xf32>, vector<32x32xf32>
    }
    %c9_i32_27 = arith.constant 9 : i32
    return
  }
}

</mosaic_0001>

<bundles_post_ra>
// kernel: spatio_temporal_rcgp_forward.2
= control target key start
LH: loop header
LB: loop body
LE: loop exit
PB: predicated region body
PF: predicated region fallthrough
CT: control target
= control target key end

     0   :  { %8 = vsyncpa [#allocation3], 0  ;;  %s162_s15 = smov [#allocation2]   ;;  %s203_s0 = inlined_call_operand.vmem [shape: f32[2], index: 0, kind: input, shape index: {}]   ;;  %s204_s1 = inlined_call_operand.vmem [shape: f32[16,2], index: 1, kind: input, shape index: {}]   ;;  %s205_s2 = inlined_call_operand.vmem [shape: f32[2,16], index: 2, kind: input, shape index: {}]   ;;  %s206_s3 = inlined_call_operand.vmem [shape: f32[16,16], index: 3, kind: output, shape index: {}]  }
   0x1   :  { %s14_s14 = sshll.u32 %s203_s0, 4  ;;  %s15_s14 = int_to_ptr.vmem [resolvable:$true] %s14_s14 }
   0x2   :  { %17 = dma.vmem_to_smem %s15_s14, 16, %s162_s15, [#allocation3]  }
   0x3   :  { %160 = dma.done.wait [#allocation3], 16  }
   0x4   :  { %161 = vsyncadd [#allocation3], 4294967280 }
   0x5   :  { %26 = sfence }
   0x6   :  { %v29_v0 = vld [vmem:[%s204_s1] sm:$0xff]  ;;  %s27_s18 = sld [smem:[#allocation2]]  ;;  %v163_v1 = vmov 1   ;;  %v164_v2 = vmov 0   ;;  %v30_v4 = vld [vmem:[%s204_s1 + $0x8] sm:$0xff]  ;;  %vm121_vm8 = vcmask 130048  }
   0x7   :  { %136 = vset.pattern.permute.xlu1 %v163_v1  ;;  %135 = vset.pattern.permute.xlu0 %v164_v2  ;;  %v31_v15 = vld [vmem:[%s205_s2] sm:$0x3]  ;;  %s129_s22 = sld [smem:[#allocation2 + $0x1]] }
   0x8   :  { %50 = vperm.xlu1 %136, %v29_v0   ;;  %34 = vperm.xlu0 %135, %v29_v0   ;;  %v57_v16 = vperm.slane %v31_v15, 1  ;;  %v42_v17 = vperm.slane %v31_v15, 0 }
   0xc   :  { %v64_v3 = vstv %s27_s18 }
   0xd   :  { %138 = vrcp.f32 %v64_v3  ;;  %v76_v7 = vand.u32 2147483648, %v64_v3  ;;  %vm70_vm0 = vweird.f32 %v64_v3  ;;  %v74_v9 = vand.u32 2147483647, %v64_v3 }
   0xe   :  { %v110_v58 = vstv %s129_s22 }
   0xf   :  { %v77_v11 = vor.u32 1.1754944e-38, %v76_v7  ;;  %vm75_vm3 = vcmp.eq.f32.partialorder %v74_v9, 8.507059e+37 }
  0x10   :  { %54 = vperm.xlu1 %136, %v30_v4   ;;  %39 = vperm.xlu0 %135, %v30_v4  }
  0x13   :  { %v139_v5 = vpop.eup %138 }
  0x14   :  { %v66_v6 = vmul.f32 %v139_v5, %v64_v3  ;;  %vm71_vm1 = vweird.f32 %v139_v5 }
  0x15   :  { %vm72_vm2 = vmor %vm70_vm0, %vm71_vm1 }
  0x16   :  { %v67_v8 = vsub.f32 1.0, %v66_v6 }
  0x18   :  { %v68_v10 = vmul.f32 %v139_v5, %v67_v8  ;;  %137 = vset.pattern.permute.xlu0 %v163_v1 }
  0x1a   :  { %v69_v12 = vadd.f32 %v139_v5, %v68_v10 }
  0x1c   :  { %v73_v13 = vsel %vm72_vm2, %v139_v5, %v69_v12 }
  0x1d   :  { %v78_v14 = vsel %vm75_vm3, %v77_v11, %v73_v13 }
  0x1e   :  { %130 = vpush %v78_v14 }
  0x4f   :  { %s131_s2 = spop %130 }
  0x50   :  { %s80_s21 = smul.f32 1.7320508, %s131_s2 }
  0x52   :  { %v105_v43 = vstv %s80_s21 }
  0x7a   :  { %v51_v18 = vpop.permute.xlu1 %50  ;;  %v35_v19 = vpop.permute.xlu0 %34 }
  0x7b   :  { %v58_v20 = vsub.f32 %v51_v18, %v57_v16  ;;  %v43_v21 = vsub.f32 %v35_v19, %v42_v17 }
  0x7d   :  { %v60_v22 = vmul.f32 %v58_v20, %v58_v20  ;;  %v45_v23 = vmul.f32 %v43_v21, %v43_v21 }
  0x7f   :  { %v62_v24 = vadd.f32 %v60_v22, %v45_v23 }
  0x81   :  { %140 = vrsqrt.f32 %v62_v24  ;;  %vm88_vm4 = vcmp.eq.f32.partialorder %v62_v24, inf  ;;  %v91_v42 = vand.u32 2147483648, %v62_v24  ;;  %vm90_vm5 = vcmp.eq.f32.partialorder %v62_v24, 0.0 }
  0x82   :  { %v55_v25 = vpop.permute.xlu1 %54  ;;  %v40_v26 = vpop.permute.xlu0 %39 }
  0x83   :  { %v59_v27 = vsub.f32 %v55_v25, %v57_v16  ;;  %v44_v28 = vsub.f32 %v40_v26, %v42_v17 }
  0x85   :  { %v61_v29 = vmul.f32 %v59_v27, %v59_v27  ;;  %v46_v30 = vmul.f32 %v44_v28, %v44_v28 }
  0x87   :  { %v141_v31 = vpop.eup %140  ;;  %v63_v32 = vadd.f32 %v61_v29, %v46_v30 }
  0x88   :  { %v82_v33 = vmul.f32 %v141_v31, %v62_v24 }
  0x89   :  { %142 = vrsqrt.f32 %v63_v32  ;;  %vm100_vm6 = vcmp.eq.f32.partialorder %v63_v32, inf  ;;  %v103_v53 = vand.u32 2147483648, %v63_v32  ;;  %vm102_vm7 = vcmp.eq.f32.partialorder %v63_v32, 0.0 }
  0x8a   :  { %v83_v34 = vmul.f32 %v141_v31, %v82_v33 }
  0x8c   :  { %v84_v35 = vmul.f32 0.5, %v83_v34 }
  0x8e   :  { %v85_v36 = vsub.f32 1.5, %v84_v35 }
  0x8f   :  { %v143_v37 = vpop.eup %142 }
  0x90   :  { %v86_v38 = vmul.f32 %v141_v31, %v85_v36  ;;  %v94_v39 = vmul.f32 %v143_v37, %v63_v32 }
  0x92   :  { %v87_v40 = vmul.f32 %v86_v38, %v62_v24  ;;  %v95_v41 = vmul.f32 %v143_v37, %v94_v39 }
  0x94   :  { %v89_v44 = vsel %vm88_vm4, %v62_v24, %v87_v40  ;;  %v96_v45 = vmul.f32 0.5, %v95_v41 }
  0x95   :  { %v92_v46 = vsel %vm90_vm5, %v91_v42, %v89_v44 }
  0x96   :  { %v97_v47 = vsub.f32 1.5, %v96_v45  ;;  %v106_v48 = vmul.f32 %v105_v43, %v92_v46 }
  0x98   :  { %v98_v49 = vmul.f32 %v143_v37, %v97_v47  ;;  %v113_v50 = vsub.f32 0.0, %v106_v48  ;;  %v108_v56 = vadd.f32 1.0, %v106_v48 }
  0x9a   :  { %v99_v51 = vmul.f32 %v98_v49, %v63_v32  ;;  %v115_v52 = vmul.f32 1.442695, %v113_v50  ;;  %v111_v60 = vmul.f32 %v110_v58, %v108_v56 }
  0x9c   :  { %v101_v54 = vsel %vm100_vm6, %v63_v32, %v99_v51  ;;  %144 = vpow2.f32 %v115_v52 }
  0x9d   :  { %v104_v55 = vsel %vm102_vm7, %v103_v53, %v101_v54 }
  0x9e   :  { %v107_v57 = vmul.f32 %v105_v43, %v104_v55 }
  0xa0   :  { %v114_v59 = vsub.f32 0.0, %v107_v57  ;;  %v109_v0 = vadd.f32 1.0, %v107_v57 }
  0xa2   :  { %v145_v61 = vpop.eup %144  ;;  %v117_v62 = vmul.f32 1.442695, %v114_v59  ;;  %v112_v1 = vmul.f32 %v110_v58, %v109_v0 }
  0xa3   :  { %v119_v63 = vmul.f32 %v145_v61, %v111_v60 }
  0xa4   :  { %146 = vpow2.f32 %v117_v62 }
  0xa5   :  { %122 = vst.msk [vmem:[%s206_s3] sm:$0xff] %vm121_vm8, %v119_v63 }
  0xaa   :  { %v147_v2 = vpop.eup %146 }
  0xab   :  { %v120_v3 = vmul.f32 %v147_v2, %v112_v1 }
  0xad   :  { %123 = vst.msk [vmem:[%s206_s3 + $0x8] sm:$0xff] %vm121_vm8, %v120_v3 }
  0xae   :  { %128 = vsyncpa [#allocation3], 1 }

// kernel: spatio_temporal_rcgp_forward.3
= control target key start
LH: loop header
LB: loop body
LE: loop exit
PB: predicated region body
PF: predicated region fallthrough
CT: control target
= control target key end

     0   :  { %15 = vsyncpa [#allocation3], 0  ;;  %s5267_s0 = inlined_call_operand.vmem [shape: f32[5], index: 0, kind: input, shape index: {}]   ;;  %s5268_s1 = inlined_call_operand.vmem [shape: f32[9], index: 1, kind: input, shape index: {}]   ;;  %s5269_s2 = inlined_call_operand.vmem [shape: f32[1,32], index: 2, kind: input, shape index: {}]   ;;  %s5270_s3 = inlined_call_operand.vmem [shape: f32[32,32], index: 3, kind: input, shape index: {}]   ;;  %s5271_s4 = inlined_call_operand.vmem [shape: f32[32,32], index: 4, kind: input, shape index: {}]   ;;  %s5272_s5 = inlined_call_operand.vmem [shape: f32[9,1,16], index: 5, kind: input, shape index: {}]   ;;  %s5273_s6 = inlined_call_operand.vmem [shape: f32[10,1,32], index: 6, kind: output, shape index: {0}]   ;;  %s5274_s7 = inlined_call_operand.vmem [shape: f32[10,32,32], index: 7, kind: output, shape index: {1}]   ;;  %s5275_s8 = inlined_call_operand.vmem [shape: f32[10,1,32], index: 8, kind: output, shape index: {2}]   ;;  %s5276_s9 = inlined_call_operand.vmem [shape: f32[10,32,32], index: 9, kind: output, shape index: {3}]  }
   0x1   :  { %s22_s11 = sshll.u32 %s5267_s0, 4  ;;  %s23_s11 = int_to_ptr.vmem [resolvable:$true] %s22_s11 }
   0x2   :  { %16 = vsyncpa [#allocation5], 0  ;;  %s31_s14 = sshll.u32 %s5268_s1, 4  ;;  %s4153_s15 = smov [#allocation2]   ;;  %s32_s14 = int_to_ptr.vmem [resolvable:$true] %s31_s14 }
   0x3   :  { %25 = dma.vmem_to_smem %s23_s11, 16, %s4153_s15, [#allocation3]  }
   0x4   :  { %s4154_s16 = smov [#allocation4]  }
   0x5   :  { %34 = dma.vmem_to_smem %s32_s14, 16, %s4154_s16, [#allocation5]  }
   0x6   :  { %4101 = dma.done.wait [#allocation3], 16  }
   0x7   :  { %4102 = vsyncadd [#allocation3], 4294967280 }
   0x8   :  { %4103 = dma.done.wait [#allocation5], 16  }
   0x9   :  { %4104 = vsyncadd [#allocation5], 4294967280 }
   0xa   :  { %51 = sfence }
   0xb   :  { %s4265_s17 = sld [smem:[#allocation2]]  ;;  %v4270_v0 = vld [vmem:[%s5271_s4] sm:$0xff]  ;;  %v4275_v1 = vld [vmem:[%s5271_s4 + $0x8] sm:$0xff]  ;;  %v4280_v2 = vld [vmem:[%s5271_s4 + $0x10] sm:$0xff]  ;;  %v61_v3 = vlaneseq  ;;  %vm76_vm0 = vcmask 253952   ;;  %vm78_vm1 = vcmask 261120  }
   0xc   :  { %s4282_s22 = sld [smem:[#allocation2 + $0x1]]  ;;  %v4287_v4 = vld [vmem:[%s5271_s4 + $0x18] sm:$0xff]  ;;  %v71_v5 = vld [vmem:[%s5269_s2] sm:$0x1]   ;;  %v73_v8 = vld [vmem:[%s5270_s3 + $0x8] sm:$0xff]   ;;  %s4369_s13 = smov 0  }
   0xd   :  { %v72_v6 = vld [vmem:[%s5270_s3] sm:$0xff]   ;;  %s4295_s29 = sld [smem:[#allocation2 + $0x2]]  ;;  %v4297_v7 = vshrl.u32 %v61_v3, 7  ;;  %77 = vst.msk [vmem:[%s5273_s6] sm:$0x1] %vm76_vm0, %v71_v5  ;;  %v65_v10 = vand.u32 127, %v61_v3 }
   0xe   :  { %s4303_s11 = sld [smem:[#allocation2 + $0x3]]  ;;  %83 = vst.msk [vmem:[%s5275_s8] sm:$0x1] %vm76_vm0, %v71_v5  ;;  %v74_v11 = vld [vmem:[%s5270_s3 + $0x10] sm:$0xff]   ;;  %v75_v12 = vld [vmem:[%s5270_s3 + $0x18] sm:$0xff]  }
   0xf   :  { %s3498_s14 = sld [smem:[#allocation2 + $0x4]]  ;;  %v4313_v9 = vadd.s32 8, %v4297_v7  ;;  %79 = vst.msk [vmem:[%s5274_s7] sm:$0xff] %vm78_vm1, %v72_v6  ;;  %vm66_vm2 = vcmp.eq.s32.totalorder %v4297_v7, %v65_v10 }
  0x10   :  { %84 = vst.msk [vmem:[%s5276_s9] sm:$0xff] %vm78_vm1, %v72_v6 }
  0x11   :  { %80 = vst.msk [vmem:[%s5274_s7 + $0x8] sm:$0xff] %vm78_vm1, %v73_v8  ;;  %vm67_vm3 = vcmp.eq.s32.totalorder %v4313_v9, %v65_v10 }
  0x12   :  { %85 = vst.msk [vmem:[%s5276_s9 + $0x8] sm:$0xff] %vm78_vm1, %v73_v8 }
  0x13   :  { %81 = vst.msk [vmem:[%s5274_s7 + $0x10] sm:$0xff] %vm78_vm1, %v74_v11 }
  0x14   :  { %86 = vst.msk [vmem:[%s5276_s9 + $0x10] sm:$0xff] %vm78_vm1, %v74_v11 }
  0x15   :  { %v68_v13 = vstv %s3498_s14  ;;  %82 = vst.msk [vmem:[%s5274_s7 + $0x18] sm:$0xff] %vm78_vm1, %v75_v12 }
  0x16   :  { %v4351_v14 = vsel %vm66_vm2, %v68_v13, 0.0  ;;  %v4353_v15 = vsel %vm67_vm3, %v68_v13, 0.0  ;;  %87 = vst.msk [vmem:[%s5276_s9 + $0x18] sm:$0xff] %vm78_vm1, %v75_v12 }
  0x17 LB: > { %v4390_v16 = vstv %s4265_s17  ;;  %v4393_v17 = vstv %s4282_s22  ;;  %v4400_v20 = vstv %s4303_s11  ;;  %s4155_s14 = smov 112   ;;  %v4407_v24 = vstv %s4295_s29  ;;  %s4156_s15 = smov 16   ;;  %s4127_s13 = sphi %s4369_s13, %s93_s13   ;;  %v4123_v5 = vphi %v71_v5, %v977_v5   ;;  %v4119_v6 = vphi %v72_v6, %v1055_v6   ;;  %v4115_v8 = vphi %v73_v8, %v5277_v8   ;;  %v4111_v11 = vphi %v74_v11, %v1057_v11   ;;  %v4107_v12 = vphi %v75_v12, %v1058_v12  }
  0x18   : > { %v123_v18 = vmul.f32 %v4119_v6, %v4390_v16  ;;  %v125_v19 = vmul.f32 %v4111_v11, %v4393_v17  ;;  %vm121_vm4 = vcmask 130048   ;;  %s3500_s16 = sshll.u32 %s4127_s13, 5  ;;  %v4157_v34 = vmov 0   ;;  %s224_s20 = sld [smem:[#allocation4 + %s4127_s13]] }
  0x19   : > { %s4419_s19 = scalar_lea.vmem %s5276_s9, %s3500_s16  ;;  %3744 = vset.pattern.permute.xlu2 %v4157_v34  ;;  %v124_v35 = vmul.f32 %v4115_v8, %v4390_v16  ;;  %v126_v36 = vmul.f32 %v4107_v12, %v4393_v17  ;;  %vm260_vm9 = vcmp.eq.s32.totalorder %v4297_v7, 0  ;;  %v4158_v52 = vmov 0.0   ;;  %s225_s23 = scalar_lea.vmem %s5272_s5, %s4127_s13 }
  0x1a   : > { %v127_v21 = vadd.f32 %v125_v19, %v123_v18  ;;  %v4443_v53 = vsel %vm260_vm9, 1.0, %v4158_v52  ;;  %v4159_v55 = vmov 1   ;;  %vm304_vm10 = vcmp.eq.s32.totalorder %v4297_v7, 1  ;;  %s3438_s26 = scalar_lea.vmem %s5275_s8, %s4127_s13  ;;  %s3444_s30 = scalar_lea.vmem %s5273_s6, %s4127_s13 }
  0x1b   : > { %v4433_v37 = vadd.f32 %v126_v36, %v124_v35  ;;  %3745 = vset.pattern.permute.xlu0 %v4159_v55  ;;  %3746 = vset.pattern.permute.xlu1 %v4159_v55  ;;  %v4458_v62 = vsel %vm304_vm10, 1.0, %v4158_v52  ;;  %vm348_vm15 = vcmp.eq.s32.totalorder %v4297_v7, 2  ;;  %s3447_s12 = scalar_lea.vmem %s5274_s7, %s3500_s16  ;;  %s93_s13 = sadd.s32 1, %s4127_s13  }
  0x1c   : > { %v167_v22 = vmul.f32 %v127_v21, %v4400_v20  ;;  %v139_v23 = vmul.f32 %v127_v21, %v4393_v17  ;;  %v163_v25 = vmul.f32 %v127_v21, %v4407_v24  ;;  %v135_v28 = vmul.f32 %v127_v21, %v4390_v16  ;;  %p90_p0 = scmp.ge.s32.totalorder %s93_s13, 9  }
  0x1d   : > { %v168_v38 = vmul.f32 %v4433_v37, %v4400_v20  ;;  %v140_v58 = vmul.f32 %v4433_v37, %v4393_v17  ;;  %v136_v35 = vmul.f32 %v4433_v37, %v4390_v16  ;;  %s4740_s5 = smov (%p90_p0), 0  }
  0x1e   : > { %175 = vrot.lane.b32.xlu0 %v167_v22, %s4155_s14 }
  0x26   : > { %147 = vrot.lane.b32.xlu0 %v139_v23, %s4155_s14 }
  0x2e   : > { %177 = vrot.lane.b32.xlu0 %v168_v38, %s4155_s14 }
  0x90   : > { %v176_v26 = vpop.permute.xlu0 %175 }
  0x91   : > { %v187_v27 = vadd.f32 %v176_v26, %v163_v25 }
  0x93   : > { %195 = vrot.lane.b32.xlu1 %v187_v27, %s4156_s15 }
  0x98   : > { %v148_v29 = vpop.permute.xlu0 %147 }
  0x99   : > { %v159_v30 = vadd.f32 %v148_v29, %v135_v28  ;;  %v164_v28 = vmul.f32 %v4433_v37, %v4407_v24 }
  0xa0   : > { %v178_v29 = vpop.permute.xlu0 %177 }
 0x105   : > { %v196_v31 = vpop.permute.xlu1 %195 }
 0x106   : > { %v207_v32 = vsel %vm121_vm4, %v159_v30, %v196_v31  ;;  %v188_v30 = vadd.f32 %v178_v29, %v164_v28  ;;  %v4160_v31 = vmov 2  }
 0x107   : > { %v4422_v33 = vadd.f32 %v207_v32, %v4270_v0 }
 0x109   : > { %231 = vrot.lane.b32.xlu1 %v4422_v33, %s4156_s15  ;;  %3501 = vst.msk [vmem:[%s4419_s19 + $0x20] sm:$0xff] %vm78_vm1, %v4422_v33  ;;  %v227_v39 = vadd.f32 %v4422_v33, %v4351_v14 }
 0x17b   : > { %v232_v40 = vpop.permute.xlu1 %231 }
 0x17c   : > { %v237_v41 = vsel %vm121_vm4, %v227_v39, %v232_v40 }
 0x17d   : > { %3786 = vrcp.f32 %v237_v41  ;;  %v250_v45 = vand.u32 2147483648, %v237_v41  ;;  %v248_v47 = vand.u32 2147483647, %v237_v41  ;;  %vm244_vm6 = vweird.f32 %v237_v41 }
 0x17e   : > { %v266_v54 = vsub.f32 %v237_v41, %v4443_v53 }
 0x17f   : > { %v251_v49 = vor.u32 1.1754944e-38, %v250_v45  ;;  %vm249_vm8 = vcmp.eq.f32.partialorder %v248_v47, 8.507059e+37 }
 0x183   : > { %v3787_v42 = vpop.eup %3786 }
 0x184   : > { %v240_v43 = vmul.f32 %v3787_v42, %v237_v41  ;;  %vm245_vm5 = vweird.f32 %v3787_v42 }
 0x185   : > { %vm246_vm7 = vmor %vm244_vm6, %vm245_vm5 }
 0x186   : > { %v241_v44 = vsub.f32 1.0, %v240_v43 }
 0x188   : > { %v242_v46 = vmul.f32 %v3787_v42, %v241_v44 }
 0x18a   : > { %v243_v48 = vadd.f32 %v3787_v42, %v242_v46  ;;  %v4490_v46 = vsel %vm348_vm15, 1.0, %v4158_v52 }
 0x18c   : > { %v247_v50 = vsel %vm246_vm7, %v3787_v42, %v243_v48 }
 0x18d   : > { %v252_v51 = vsel %vm249_vm8, %v251_v49, %v247_v50 }
 0x18e   : > { %256 = vperm.xlu2 %3744, %v252_v51  }
 0x196   : > { %270 = vperm.xlu2 %3744, %v266_v54  }
 0x19e   : > { %149 = vrot.lane.b32.xlu2 %v140_v58, %s4155_s14 }
 0x19f   : > { %3748 = vset.pattern.permute.xlu2 %v4160_v31 }
 0x1e8   : > { %v257_v56 = vpop.permute.xlu2 %256 }
 0x1e9   : > { %v4448_v57 = vmul.f32 %v257_v56, %v237_v41 }
 0x1eb   : > { %v278_v59 = vperm.slane %v4448_v57, 0 }
 0x1f0   : > { %v271_v60 = vpop.permute.xlu2 %270 }
 0x1f1   : > { %v279_v61 = vmul.f32 %v278_v59, %v271_v60 }
 0x1f3   : > { %v281_v63 = vsub.f32 %v237_v41, %v279_v61 }
 0x1f5   : > { %3788 = vrcp.f32 %v281_v63  ;;  %v310_v3 = vsub.f32 %v281_v63, %v4458_v62  ;;  %v294_v19 = vand.u32 2147483648, %v281_v63  ;;  %v292_v22 = vand.u32 2147483647, %v281_v63 }
 0x1f6   : > { %vm288_vm12 = vweird.f32 %v281_v63 }
 0x1f7   : > { %314 = vperm.xlu0 %3745, %v310_v3   ;;  %v295_v25 = vor.u32 1.1754944e-38, %v294_v19  ;;  %vm293_vm14 = vcmp.eq.f32.partialorder %v292_v22, 8.507059e+37 }
 0x1f8   : > { %v150_v36 = vpop.permute.xlu2 %149 }
 0x1f9   : > { %v160_v41 = vadd.f32 %v150_v36, %v136_v35 }
 0x1fb   : > { %v3789_v10 = vpop.eup %3788 }
 0x1fc   : > { %v284_v13 = vmul.f32 %v3789_v10, %v281_v63  ;;  %vm289_vm11 = vweird.f32 %v3789_v10 }
 0x1fd   : > { %vm290_vm13 = vmor %vm288_vm12, %vm289_vm11  ;;  %vm392_vm11 = vcmp.eq.s32.totalorder %v4297_v7, 3  ;;  %vm436_vm12 = vcmp.eq.s32.totalorder %v4297_v7, 4 }
 0x1fe   : > { %v285_v18 = vsub.f32 1.0, %v284_v13  ;;  %v4161_v13 = vmov 3   ;;  %v4518_v57 = vsel %vm436_vm12, 1.0, %v4158_v52 }
 0x1ff   : > { %3749 = vset.pattern.permute.xlu0 %v4157_v34 }
 0x200   : > { %v286_v21 = vmul.f32 %v3789_v10, %v285_v18 }
 0x202   : > { %v287_v23 = vadd.f32 %v3789_v10, %v286_v21 }
 0x204   : > { %v291_v26 = vsel %vm290_vm13, %v3789_v10, %v287_v23 }
 0x205   : > { %v296_v27 = vsel %vm293_vm14, %v295_v25, %v291_v26 }
 0x206   : > { %300 = vperm.xlu1 %3746, %v296_v27  }
 0x20e   : > { %197 = vrot.lane.b32.xlu1 %v188_v30, %s4156_s15 }
 0x20f   : > { %3747 = vset.pattern.permute.xlu1 %v4160_v31 }
 0x269   : > { %v315_v39 = vpop.permute.xlu0 %314 }
 0x278   : > { %v301_v32 = vpop.permute.xlu1 %300 }
 0x279   : > { %v4466_v34 = vmul.f32 %v301_v32, %v281_v63 }
 0x27b   : > { %v322_v38 = vperm.slane %v4466_v34, 1 }
 0x27d   : > { %v323_v40 = vmul.f32 %v322_v38, %v315_v39 }
 0x27f   : > { %v325_v42 = vsub.f32 %v281_v63, %v323_v40  ;;  %v4505_v40 = vsel %vm392_vm11, 1.0, %v4158_v52 }
 0x280   : > { %v198_v43 = vpop.permute.xlu1 %197 }
 0x281   : > { %3790 = vrcp.f32 %v325_v42  ;;  %v208_v44 = vsel %vm121_vm4, %v160_v41, %v198_v43  ;;  %v354_v48 = vsub.f32 %v325_v42, %v4490_v46  ;;  %v338_v50 = vand.u32 2147483648, %v325_v42 }
 0x282   : > { %v4475_v45 = vadd.f32 %v208_v44, %v4275_v1  ;;  %v336_v54 = vand.u32 2147483647, %v325_v42  ;;  %vm332_vm3 = vweird.f32 %v325_v42 }
 0x283   : > { %v339_v58 = vor.u32 1.1754944e-38, %v338_v50 }
 0x284   : > { %233 = vrot.lane.b32.xlu2 %v4475_v45, %s4156_s15  ;;  %1036 = vmatpush.msra.mxu1 %v4475_v45  ;;  %3502 = vst.msk [vmem:[%s4419_s19 + $0x28] sm:$0xff] %vm78_vm1, %v4475_v45  ;;  %vm337_vm6 = vcmp.eq.f32.partialorder %v336_v54, 8.507059e+37  ;;  %v228_v63 = vadd.f32 %v4475_v45, %v4353_v15 }
 0x285   : > { %3580 = vmatpush.msra.mxu2 %v4475_v45  ;;  %3581 = vmatpush.msra.mxu3 %v4475_v45 }
 0x286   : > { %1037 = vmatpush.msra.mxu1 %v4422_v33 }
 0x287   : > { %v3791_v37 = vpop.eup %3790  ;;  %3582 = vmatpush.msra.mxu2 %v4422_v33  ;;  %3583 = vmatpush.msra.mxu3 %v4422_v33 }
 0x288   : > { %v328_v47 = vmul.f32 %v3791_v37, %v325_v42  ;;  %vm333_vm2 = vweird.f32 %v3791_v37 }
 0x289   : > { %vm334_vm5 = vmor %vm332_vm3, %vm333_vm2  ;;  %vm480_vm3 = vcmp.eq.s32.totalorder %v4297_v7, 5 }
 0x28a   : > { %v329_v49 = vsub.f32 1.0, %v328_v47 }
 0x28c   : > { %358 = vperm.xlu2 %3748, %v354_v48   ;;  %v330_v51 = vmul.f32 %v3791_v37, %v329_v49 }
 0x28e   : > { %v331_v56 = vadd.f32 %v3791_v37, %v330_v51 }
 0x290   : > { %v335_v60 = vsel %vm334_vm5, %v3791_v37, %v331_v56  ;;  %v4162_v37 = vmov 4  }
 0x291   : > { %v340_v61 = vsel %vm337_vm6, %v339_v58, %v335_v60 }
 0x292   : > { %344 = vperm.xlu1 %3747, %v340_v61  }
 0x294   : > { %3750 = vset.pattern.permute.xlu2 %v4159_v55 }
 0x29a   : > { %3751 = vset.pattern.permute.xlu1 %v4161_v13 }
 0x2de   : > { %v234_v3 = vpop.permute.xlu2 %233 }
 0x2df   : > { %v238_v10 = vsel %vm121_vm4, %v228_v63, %v234_v3 }
 0x2e0   : > { %275 = vperm.xlu0 %3749, %v238_v10  }
 0x2e6   : > { %v359_v22 = vpop.permute.xlu2 %358 }
 0x2e8   : > { %3753 = vset.pattern.permute.xlu0 %v4162_v37 }
 0x304   : > { %v345_v18 = vpop.permute.xlu1 %344 }
 0x305   : > { %v4498_v19 = vmul.f32 %v345_v18, %v325_v42 }
 0x307   : > { %v366_v21 = vperm.slane %v4498_v19, 2 }
 0x309   : > { %v367_v23 = vmul.f32 %v366_v21, %v359_v22 }
 0x30b   : > { %v369_v55 = vsub.f32 %v325_v42, %v367_v23 }
 0x30d   : > { %3792 = vrcp.f32 %v369_v55  ;;  %v382_v28 = vand.u32 2147483648, %v369_v55  ;;  %v380_v30 = vand.u32 2147483647, %v369_v55  ;;  %vm376_vm8 = vweird.f32 %v369_v55 }
 0x30e   : > { %v398_v41 = vsub.f32 %v369_v55, %v4505_v40 }
 0x30f   : > { %v383_v35 = vor.u32 1.1754944e-38, %v382_v28  ;;  %vm381_vm10 = vcmp.eq.f32.partialorder %v380_v30, 8.507059e+37 }
 0x313   : > { %v3793_v25 = vpop.eup %3792 }
 0x314   : > { %v372_v26 = vmul.f32 %v3793_v25, %v369_v55  ;;  %vm377_vm7 = vweird.f32 %v3793_v25 }
 0x315   : > { %vm378_vm9 = vmor %vm376_vm8, %vm377_vm7 }
 0x316   : > { %v373_v27 = vsub.f32 1.0, %v372_v26  ;;  %v4163_v26 = vmov 5  }
 0x318   : > { %v374_v29 = vmul.f32 %v3793_v25, %v373_v27 }
 0x31a   : > { %v375_v32 = vadd.f32 %v3793_v25, %v374_v29 }
 0x31c   : > { %v379_v36 = vsel %vm378_vm9, %v3793_v25, %v375_v32 }
 0x31d   : > { %v384_v39 = vsel %vm381_vm10, %v383_v35, %v379_v36  ;;  %v4528_v36 = vsel %vm480_vm3, 1.0, %v4158_v52 }
 0x31e   : > { %388 = vperm.xlu1 %3751, %v384_v39  }
 0x326   : > { %402 = vperm.xlu1 %3751, %v398_v41  }
 0x32e   : > { %3754 = vset.pattern.permute.xlu1 %v4162_v37 }
 0x352   : > { %v276_v42 = vpop.permute.xlu0 %275 }
 0x353   : > { %v280_v43 = vmul.f32 %v278_v59, %v276_v42 }
 0x355   : > { %v282_v44 = vsub.f32 %v238_v10, %v280_v43 }
 0x357   : > { %319 = vperm.xlu2 %3750, %v282_v44  }
 0x35f   : > { %3752 = vset.pattern.permute.xlu2 %v4160_v31 }
 0x390   : > { %v389_v47 = vpop.permute.xlu1 %388 }
 0x391   : > { %v4511_v48 = vmul.f32 %v389_v47, %v369_v55 }
 0x393   : > { %v410_v49 = vperm.slane %v4511_v48, 3 }
 0x398   : > { %v403_v50 = vpop.permute.xlu1 %402 }
 0x399   : > { %v411_v51 = vmul.f32 %v410_v49, %v403_v50 }
 0x39b   : > { %v413_v59 = vsub.f32 %v369_v55, %v411_v51 }
 0x39d   : > { %3794 = vrcp.f32 %v413_v59  ;;  %v442_v31 = vsub.f32 %v413_v59, %v4518_v57  ;;  %v426_v60 = vand.u32 2147483648, %v413_v59  ;;  %v424_v63 = vand.u32 2147483647, %v413_v59 }
 0x39e   : > { %vm420_vm14 = vweird.f32 %v413_v59 }
 0x39f   : > { %446 = vperm.xlu1 %3754, %v442_v31   ;;  %v427_v10 = vor.u32 1.1754944e-38, %v426_v60  ;;  %vm425_vm2 = vcmp.eq.f32.partialorder %v424_v63, 8.507059e+37 }
 0x3a3   : > { %v3795_v54 = vpop.eup %3794 }
 0x3a4   : > { %v416_v56 = vmul.f32 %v3795_v54, %v413_v59  ;;  %vm421_vm13 = vweird.f32 %v3795_v54 }
 0x3a5   : > { %vm422_vm15 = vmor %vm420_vm14, %vm421_vm13  ;;  %vm524_vm13 = vcmp.eq.s32.totalorder %v4297_v7, 6 }
 0x3a6   : > { %v417_v58 = vsub.f32 1.0, %v416_v56  ;;  %v4164_v56 = vmov 6  }
 0x3a7   : > { %3756 = vset.pattern.permute.xlu1 %v4163_v26 }
 0x3a8   : > { %v418_v61 = vmul.f32 %v3795_v54, %v417_v58 }
 0x3aa   : > { %v419_v3 = vadd.f32 %v3795_v54, %v418_v61 }
 0x3ac   : > { %v423_v18 = vsel %vm422_vm15, %v3795_v54, %v419_v3 }
 0x3ad   : > { %v428_v22 = vsel %vm425_vm2, %v427_v10, %v423_v18 }
 0x3ae   : > { %432 = vperm.xlu0 %3753, %v428_v22  }
 0x3b1   : > { %v320_v23 = vpop.permute.xlu2 %319 }
 0x3b2   : > { %v324_v55 = vmul.f32 %v322_v38, %v320_v23 }
 0x3b4   : > { %v326_v25 = vsub.f32 %v282_v44, %v324_v55 }
 0x3b6   : > { %363 = vperm.xlu2 %3752, %v326_v25   ;;  %3758 = vset.pattern.permute.xlu0 %v4163_v26 }
 0x3be   : > { %3755 = vset.pattern.permute.xlu2 %v4161_v13 }
 0x410   : > { %v364_v27 = vpop.permute.xlu2 %363 }
 0x411   : > { %v368_v28 = vmul.f32 %v366_v21, %v364_v27  ;;  %v447_v34 = vpop.permute.xlu1 %446 }
 0x413   : > { %v370_v29 = vsub.f32 %v326_v25, %v368_v28 }
 0x415   : > { %407 = vperm.xlu2 %3755, %v370_v29  }
 0x41d   : > { %3757 = vset.pattern.permute.xlu2 %v4162_v37 }
 0x420   : > { %v433_v30 = vpop.permute.xlu0 %432 }
 0x421   : > { %v435_v32 = vmul.f32 %v433_v30, %v413_v59 }
 0x423   : > { %v454_v35 = vperm.slane %v435_v32, 4 }
 0x425   : > { %v455_v38 = vmul.f32 %v454_v35, %v447_v34  ;;  %v4535_v34 = vsel %vm524_vm13, 1.0, %v4158_v52 }
 0x427   : > { %v457_v13 = vsub.f32 %v413_v59, %v455_v38 }
 0x429   : > { %3796 = vrcp.f32 %v457_v13  ;;  %v486_v39 = vsub.f32 %v457_v13, %v4528_v36  ;;  %v470_v42 = vand.u32 2147483648, %v457_v13  ;;  %v468_v44 = vand.u32 2147483647, %v457_v13 }
 0x42a   : > { %vm464_vm6 = vweird.f32 %v457_v13 }
 0x42b   : > { %490 = vperm.xlu0 %3758, %v486_v39   ;;  %v471_v47 = vor.u32 1.1754944e-38, %v470_v42  ;;  %vm469_vm8 = vcmp.eq.f32.partialorder %v468_v44, 8.507059e+37 }
 0x42f   : > { %v3797_v19 = vpop.eup %3796 }
 0x430   : > { %v460_v21 = vmul.f32 %v3797_v19, %v457_v13  ;;  %vm465_vm5 = vweird.f32 %v3797_v19 }
 0x431   : > { %vm466_vm7 = vmor %vm464_vm6, %vm465_vm5  ;;  %vm613_vm5 = vcmp.eq.s32.totalorder %v4313_v9, 8  ;;  %vm568_vm6 = vcmp.eq.s32.totalorder %v4297_v7, 7 }
 0x432   : > { %v461_v41 = vsub.f32 1.0, %v460_v21 }
 0x434   : > { %v462_v43 = vmul.f32 %v3797_v19, %v461_v41 }
 0x436   : > { %v463_v37 = vadd.f32 %v3797_v19, %v462_v43 }
 0x438   : > { %v467_v50 = vsel %vm466_vm7, %v3797_v19, %v463_v37 }
 0x439   : > { %v472_v51 = vsel %vm469_vm8, %v471_v47, %v467_v50 }
 0x43a   : > { %476 = vperm.xlu1 %3756, %v472_v51  }
 0x46f   : > { %v408_v59 = vpop.permute.xlu2 %407 }
 0x470   : > { %v412_v31 = vmul.f32 %v410_v49, %v408_v59 }
 0x472   : > { %v414_v54 = vsub.f32 %v370_v29, %v412_v31 }
 0x474   : > { %451 = vperm.xlu2 %3757, %v414_v54  }
 0x47c   : > { %3759 = vset.pattern.permute.xlu2 %v4164_v56 }
 0x49d   : > { %v491_v63 = vpop.permute.xlu0 %490 }
 0x4ac   : > { %v477_v58 = vpop.permute.xlu1 %476 }
 0x4ad   : > { %v479_v60 = vmul.f32 %v477_v58, %v457_v13 }
 0x4af   : > { %v498_v61 = vperm.slane %v479_v60, 5 }
 0x4b1   : > { %v499_v3 = vmul.f32 %v498_v61, %v491_v63 }
 0x4b3   : > { %v501_v10 = vsub.f32 %v457_v13, %v499_v3  ;;  %v4165_v13 = vmov 7  }
 0x4b4   : > { %3761 = vset.pattern.permute.xlu0 %v4165_v13 }
 0x4b5   : > { %3798 = vrcp.f32 %v501_v10  ;;  %v514_v55 = vand.u32 2147483648, %v501_v10  ;;  %v512_v26 = vand.u32 2147483647, %v501_v10  ;;  %vm508_vm10 = vweird.f32 %v501_v10 }
 0x4b6   : > { %v530_v38 = vsub.f32 %v501_v10, %v4535_v34 }
 0x4b7   : > { %v515_v49 = vor.u32 1.1754944e-38, %v514_v55  ;;  %vm513_vm12 = vcmp.eq.f32.partialorder %v512_v26, 8.507059e+37 }
 0x4bb   : > { %v3799_v18 = vpop.eup %3798 }
 0x4bc   : > { %v504_v22 = vmul.f32 %v3799_v18, %v501_v10  ;;  %vm509_vm9 = vweird.f32 %v3799_v18 }
 0x4bd   : > { %vm510_vm11 = vmor %vm508_vm10, %vm509_vm9 }
 0x4be   : > { %v505_v23 = vsub.f32 1.0, %v504_v22 }
 0x4c0   : > { %v506_v25 = vmul.f32 %v3799_v18, %v505_v23 }
 0x4c2   : > { %v507_v48 = vadd.f32 %v3799_v18, %v506_v25 }
 0x4c4   : > { %v511_v27 = vsel %vm510_vm11, %v3799_v18, %v507_v48  ;;  %v4166_v18 = vmov 8   ;;  %v4555_v48 = vsel %vm613_vm5, 1.0, %v4158_v52  ;;  %vm657_vm11 = vcmp.eq.s32.totalorder %v4313_v9, 9 }
 0x4c5   : > { %v516_v28 = vsel %vm513_vm12, %v515_v49, %v511_v27 }
 0x4c6   : > { %520 = vperm.xlu2 %3759, %v516_v28  }
 0x4ce   : > { %v452_v29 = vpop.permute.xlu2 %451 }
 0x4cf   : > { %v456_v30 = vmul.f32 %v454_v35, %v452_v29  ;;  %v4560_v29 = vsel %vm568_vm6, 1.0, %v4158_v52 }
 0x4d1   : > { %v458_v32 = vsub.f32 %v414_v54, %v456_v30 }
 0x4d3   : > { %495 = vperm.xlu1 %3756, %v458_v32  }
 0x4db   : > { %3760 = vset.pattern.permute.xlu1 %v4164_v56 }
 0x4dc   : > { %534 = vperm.xlu1 %3760, %v530_v38  }
 0x4e4   : > { %3762 = vset.pattern.permute.xlu1 %v4165_v13 }
 0x520   : > { %v521_v19 = vpop.permute.xlu2 %520 }
 0x521   : > { %v523_v42 = vmul.f32 %v521_v19, %v501_v10 }
 0x523   : > { %v542_v35 = vperm.slane %v523_v42, 6 }
 0x545   : > { %v496_v39 = vpop.permute.xlu1 %495 }
 0x546   : > { %v500_v21 = vmul.f32 %v498_v61, %v496_v39 }
 0x548   : > { %v502_v41 = vsub.f32 %v458_v32, %v500_v21 }
 0x54a   : > { %539 = vperm.xlu2 %3759, %v502_v41  }
 0x54e   : > { %v535_v43 = vpop.permute.xlu1 %534 }
 0x54f   : > { %v543_v44 = vmul.f32 %v542_v35, %v535_v43 }
 0x551   : > { %v4538_v37 = vsub.f32 %v501_v10, %v543_v44  ;;  %v4167_v44 = vmov 9  }
 0x552   : > { %3763 = vset.pattern.permute.xlu2 %v4166_v18 }
 0x553   : > { %3800 = vrcp.f32 %v4538_v37  ;;  %v558_v59 = vand.u32 2147483648, %v4538_v37  ;;  %v556_v54 = vand.u32 2147483647, %v4538_v37  ;;  %vm552_vm15 = vweird.f32 %v4538_v37 }
 0x554   : > { %v574_v32 = vsub.f32 %v4538_v37, %v4560_v29 }
 0x555   : > { %v559_v58 = vor.u32 1.1754944e-38, %v558_v59  ;;  %vm557_vm3 = vcmp.eq.f32.partialorder %v556_v54, 8.507059e+37 }
 0x559   : > { %v3801_v47 = vpop.eup %3800 }
 0x55a   : > { %v548_v50 = vmul.f32 %v3801_v47, %v4538_v37  ;;  %vm553_vm14 = vweird.f32 %v3801_v47 }
 0x55b   : > { %vm554_vm2 = vmor %vm552_vm15, %vm553_vm14 }
 0x55c   : > { %v549_v51 = vsub.f32 1.0, %v548_v50 }
 0x55e   : > { %v550_v31 = vmul.f32 %v3801_v47, %v549_v51 }
 0x560   : > { %v551_v56 = vadd.f32 %v3801_v47, %v550_v31  ;;  %v4571_v31 = vsel %vm657_vm11, 1.0, %v4158_v52 }
 0x562   : > { %v555_v60 = vsel %vm554_vm2, %v3801_v47, %v551_v56  ;;  %vm701_vm2 = vcmp.eq.s32.totalorder %v4313_v9, 10 }
 0x563   : > { %v560_v61 = vsel %vm557_vm3, %v559_v58, %v555_v60 }
 0x564   : > { %564 = vperm.xlu0 %3761, %v560_v61  }
 0x56c   : > { %3766 = vset.pattern.permute.xlu0 %v4167_v44 }
 0x5a4   : > { %v540_v63 = vpop.permute.xlu2 %539 }
 0x5a5   : > { %v544_v3 = vmul.f32 %v542_v35, %v540_v63 }
 0x5a7   : > { %v546_v10 = vsub.f32 %v502_v41, %v544_v3 }
 0x5a9   : > { %583 = vperm.xlu1 %3762, %v546_v10  }
 0x5b1   : > { %3764 = vset.pattern.permute.xlu1 %v4166_v18 }
 0x5d6   : > { %v565_v22 = vpop.permute.xlu0 %564 }
 0x5d7   : > { %v4548_v23 = vmul.f32 %v565_v22, %v4538_v37 }
 0x5d9   : > { %v586_v55 = vperm.slane %v4548_v23, 7 }
 0x61b   : > { %v584_v25 = vpop.permute.xlu1 %583 }
 0x61c   : > { %v588_v26 = vmul.f32 %v586_v55, %v584_v25 }
 0x61e   : > { %v590_v49 = vsub.f32 %v546_v10, %v588_v26 }
 0x620   : > { %3802 = vrcp.f32 %v590_v49  ;;  %v619_v27 = vsub.f32 %v590_v49, %v4555_v48  ;;  %v602_v39 = vand.u32 2147483648, %v590_v49  ;;  %v600_v21 = vand.u32 2147483647, %v590_v49 }
 0x621   : > { %vm596_vm8 = vweird.f32 %v590_v49 }
 0x622   : > { %627 = vperm.xlu1 %3764, %v619_v27   ;;  %v603_v42 = vor.u32 1.1754944e-38, %v602_v39  ;;  %vm601_vm10 = vcmp.eq.f32.partialorder %v600_v21, 8.507059e+37 }
 0x626   : > { %v3803_v28 = vpop.eup %3802 }
 0x627   : > { %v592_v30 = vmul.f32 %v3803_v28, %v590_v49  ;;  %vm597_vm7 = vweird.f32 %v3803_v28 }
 0x628   : > { %vm598_vm9 = vmor %vm596_vm8, %vm597_vm7  ;;  %vm745_vm8 = vcmp.eq.s32.totalorder %v4313_v9, 11 }
 0x629   : > { %v593_v38 = vsub.f32 1.0, %v592_v30 }
 0x62a   : > { %3767 = vset.pattern.permute.xlu1 %v4165_v13 }
 0x62b   : > { %578 = vperm.xlu1 %3767, %v574_v32   ;;  %v594_v19 = vmul.f32 %v3803_v28, %v593_v38 }
 0x62d   : > { %v595_v41 = vadd.f32 %v3803_v28, %v594_v19  ;;  %v4581_v19 = vsel %vm701_vm2, 1.0, %v4158_v52 }
 0x62f   : > { %v599_v35 = vsel %vm598_vm9, %v3803_v28, %v595_v41 }
 0x630   : > { %v604_v43 = vsel %vm601_vm10, %v603_v42, %v599_v35 }
 0x631   : > { %608 = vperm.xlu2 %3763, %v604_v43  }
 0x639   : > { %3765 = vset.pattern.permute.xlu2 %v4167_v44 }
 0x68b   : > { %v609_v47 = vpop.permute.xlu2 %608 }
 0x68c   : > { %v4564_v50 = vmul.f32 %v609_v47, %v590_v49 }
 0x68e   : > { %v630_v13 = vperm.slane %v4564_v50, 0 }
 0x694   : > { %v628_v51 = vpop.permute.xlu1 %627 }
 0x695   : > { %v632_v59 = vmul.f32 %v630_v13, %v628_v51 }
 0x697   : > { %v634_v54 = vsub.f32 %v590_v49, %v632_v59  ;;  %v4168_v49 = vmov 10  }
 0x698   : > { %3769 = vset.pattern.permute.xlu1 %v4168_v49 }
 0x699   : > { %3804 = vrcp.f32 %v634_v54  ;;  %v663_v56 = vsub.f32 %v634_v54, %v4571_v31  ;;  %v646_v63 = vand.u32 2147483648, %v634_v54  ;;  %v644_v10 = vand.u32 2147483647, %v634_v54 }
 0x69a   : > { %vm640_vm13 = vweird.f32 %v634_v54 }
 0x69b   : > { %671 = vperm.xlu0 %3766, %v663_v56   ;;  %v647_v25 = vor.u32 1.1754944e-38, %v646_v63  ;;  %vm645_vm15 = vcmp.eq.f32.partialorder %v644_v10, 8.507059e+37 }
 0x69f   : > { %v3805_v58 = vpop.eup %3804 }
 0x6a0   : > { %v636_v60 = vmul.f32 %v3805_v58, %v634_v54  ;;  %vm641_vm12 = vweird.f32 %v3805_v58 }
 0x6a1   : > { %vm642_vm14 = vmor %vm640_vm13, %vm641_vm12  ;;  %vm789_vm13 = vcmp.eq.s32.totalorder %v4313_v9, 12 }
 0x6a2   : > { %v637_v61 = vsub.f32 1.0, %v636_v60 }
 0x6a4   : > { %v638_v3 = vmul.f32 %v3805_v58, %v637_v61 }
 0x6a6   : > { %v639_v22 = vadd.f32 %v3805_v58, %v638_v3 }
 0x6a8   : > { %v643_v26 = vsel %vm642_vm14, %v3805_v58, %v639_v22 }
 0x6a9   : > { %v648_v27 = vsel %vm645_vm15, %v647_v25, %v643_v26 }
 0x6aa   : > { %652 = vperm.xlu2 %3765, %v648_v27  }
 0x6b2   : > { %3768 = vset.pattern.permute.xlu2 %v4168_v49 }
 0x704   : > { %v653_v28 = vpop.permute.xlu2 %652 }
 0x705   : > { %v4574_v30 = vmul.f32 %v653_v28, %v634_v54 }
 0x707   : > { %v674_v32 = vperm.slane %v4574_v30, 1 }
 0x70d   : > { %v672_v38 = vpop.permute.xlu0 %671 }
 0x70e   : > { %v676_v39 = vmul.f32 %v674_v32, %v672_v38 }
 0x710   : > { %v678_v21 = vsub.f32 %v634_v54, %v676_v39  ;;  %v579_v54 = vpop.permute.xlu1 %578 }
 0x711   : > { %v587_v63 = vmul.f32 %v586_v55, %v579_v54 }
 0x712   : > { %3806 = vrcp.f32 %v678_v21  ;;  %v707_v41 = vsub.f32 %v678_v21, %v4581_v19  ;;  %v690_v47 = vand.u32 2147483648, %v678_v21  ;;  %v688_v59 = vand.u32 2147483647, %v678_v21 }
 0x713   : > { %vm684_vm5 = vweird.f32 %v678_v21  ;;  %v589_v3 = vsub.f32 %v4538_v37, %v587_v63 }
 0x714   : > { %715 = vperm.xlu1 %3769, %v707_v41   ;;  %v691_v58 = vor.u32 1.1754944e-38, %v690_v47  ;;  %vm689_vm7 = vcmp.eq.f32.partialorder %v688_v59, 8.507059e+37  ;;  %v4170_v59 = vmov 12  }
 0x718   : > { %v3807_v42 = vpop.eup %3806 }
 0x719   : > { %v680_v35 = vmul.f32 %v3807_v42, %v678_v21  ;;  %vm685_vm3 = vweird.f32 %v3807_v42 }
 0x71a   : > { %vm686_vm6 = vmor %vm684_vm5, %vm685_vm3 }
 0x71b   : > { %v681_v43 = vsub.f32 1.0, %v680_v35 }
 0x71c   : > { %3772 = vset.pattern.permute.xlu1 %v4167_v44  ;;  %v4169_v44 = vmov 11  }
 0x71d   : > { %v682_v51 = vmul.f32 %v3807_v42, %v681_v43  ;;  %3771 = vset.pattern.permute.xlu0 %v4169_v44 }
 0x71f   : > { %v683_v56 = vadd.f32 %v3807_v42, %v682_v51 }
 0x721   : > { %v687_v60 = vsel %vm686_vm6, %v3807_v42, %v683_v56 }
 0x722   : > { %v692_v61 = vsel %vm689_vm7, %v691_v58, %v687_v60 }
 0x723   : > { %696 = vperm.xlu2 %3768, %v692_v61  }
 0x72b   : > { %3770 = vset.pattern.permute.xlu2 %v4166_v18  ;;  %v4597_v18 = vsel %vm745_vm8, 1.0, %v4158_v52 }
 0x72c   : > { %622 = vperm.xlu2 %3770, %v589_v3  }
 0x734   : > { %3773 = vset.pattern.permute.xlu2 %v4169_v44 }
 0x77d   : > { %v697_v10 = vpop.permute.xlu2 %696 }
 0x77e   : > { %v4588_v22 = vmul.f32 %v697_v10, %v678_v21  ;;  %v4607_v10 = vsel %vm789_vm13, 1.0, %v4158_v52 }
 0x780   : > { %v718_v25 = vperm.slane %v4588_v22, 2 }
 0x786   : > { %v716_v26 = vpop.permute.xlu1 %715  ;;  %v623_v27 = vpop.permute.xlu2 %622 }
 0x787   : > { %v720_v23 = vmul.f32 %v718_v25, %v716_v26  ;;  %v631_v37 = vmul.f32 %v630_v13, %v623_v27 }
 0x789   : > { %v722_v55 = vsub.f32 %v678_v21, %v720_v23  ;;  %v633_v28 = vsub.f32 %v589_v3, %v631_v37 }
 0x78b   : > { %3808 = vrcp.f32 %v722_v55  ;;  %666 = vperm.xlu1 %3772, %v633_v28   ;;  %v751_v38 = vsub.f32 %v722_v55, %v4597_v18  ;;  %v734_v35 = vand.u32 2147483648, %v722_v55  ;;  %v732_v47 = vand.u32 2147483647, %v722_v55 }
 0x78c   : > { %vm728_vm10 = vweird.f32 %v722_v55 }
 0x78d   : > { %759 = vperm.xlu2 %3773, %v751_v38   ;;  %v735_v13 = vor.u32 1.1754944e-38, %v734_v35  ;;  %vm733_vm12 = vcmp.eq.f32.partialorder %v732_v47, 8.507059e+37 }
 0x791   : > { %v3809_v39 = vpop.eup %3808 }
 0x792   : > { %v724_v41 = vmul.f32 %v3809_v39, %v722_v55  ;;  %vm729_vm9 = vweird.f32 %v3809_v39 }
 0x793   : > { %3774 = vset.pattern.permute.xlu1 %v4168_v49  ;;  %vm730_vm11 = vmor %vm728_vm10, %vm729_vm9  ;;  %vm833_vm9 = vcmp.eq.s32.totalorder %v4313_v9, 13  ;;  %vm877_vm10 = vcmp.eq.s32.totalorder %v4313_v9, 14 }
 0x794   : > { %v725_v42 = vsub.f32 1.0, %v724_v41 }
 0x795   : > { %3775 = vset.pattern.permute.xlu2 %v4170_v59 }
 0x796   : > { %v726_v43 = vmul.f32 %v3809_v39, %v725_v42 }
 0x798   : > { %v727_v50 = vadd.f32 %v3809_v39, %v726_v43 }
 0x79a   : > { %v731_v51 = vsel %vm730_vm11, %v3809_v39, %v727_v50 }
 0x79b   : > { %v736_v21 = vsel %vm733_vm12, %v735_v13, %v731_v51 }
 0x79c   : > { %740 = vperm.xlu0 %3771, %v736_v21  }
 0x7a4   : > { %3776 = vset.pattern.permute.xlu0 %v4170_v59 }
 0x7e7   : > { %v760_v63 = vpop.permute.xlu2 %759 }
 0x7fd   : > { %v667_v56 = vpop.permute.xlu1 %666 }
 0x7fe   : > { %v675_v49 = vmul.f32 %v674_v32, %v667_v56 }
 0x800   : > { %v677_v58 = vsub.f32 %v633_v28, %v675_v49 }
 0x802   : > { %710 = vperm.xlu1 %3774, %v677_v58  }
 0x80a   : > { %3777 = vset.pattern.permute.xlu1 %v4169_v44 }
 0x80e   : > { %v741_v60 = vpop.permute.xlu0 %740 }
 0x80f   : > { %v4602_v61 = vmul.f32 %v741_v60, %v722_v55 }
 0x811   : > { %v762_v54 = vperm.slane %v4602_v61, 3 }
 0x813   : > { %v764_v3 = vmul.f32 %v762_v54, %v760_v63 }
 0x815   : > { %v766_v26 = vsub.f32 %v722_v55, %v764_v3  ;;  %v4171_v55 = vmov 13  }
 0x817   : > { %3810 = vrcp.f32 %v766_v26  ;;  %v795_v30 = vsub.f32 %v766_v26, %v4607_v10  ;;  %v778_v23 = vand.u32 2147483648, %v766_v26  ;;  %v776_v28 = vand.u32 2147483647, %v766_v26 }
 0x818   : > { %vm772_vm15 = vweird.f32 %v766_v26 }
 0x819   : > { %803 = vperm.xlu0 %3776, %v795_v30   ;;  %v779_v39 = vor.u32 1.1754944e-38, %v778_v23  ;;  %vm777_vm3 = vcmp.eq.f32.partialorder %v776_v28, 8.507059e+37 }
 0x81d   : > { %v3811_v32 = vpop.eup %3810 }
 0x81e   : > { %v768_v27 = vmul.f32 %v3811_v32, %v766_v26  ;;  %vm773_vm14 = vweird.f32 %v3811_v32 }
 0x81f   : > { %vm774_vm2 = vmor %vm772_vm15, %vm773_vm14 }
 0x820   : > { %v769_v44 = vsub.f32 1.0, %v768_v27 }
 0x821   : > { %3780 = vset.pattern.permute.xlu0 %v4171_v55 }
 0x822   : > { %v770_v37 = vmul.f32 %v3811_v32, %v769_v44  ;;  %v4172_v44 = vmov 14  }
 0x824   : > { %v771_v38 = vadd.f32 %v3811_v32, %v770_v37 }
 0x826   : > { %v775_v41 = vsel %vm774_vm2, %v3811_v32, %v771_v38 }
 0x827   : > { %v780_v42 = vsel %vm777_vm3, %v779_v39, %v775_v41 }
 0x828   : > { %784 = vperm.xlu2 %3775, %v780_v42  }
 0x830   : > { %3779 = vset.pattern.permute.xlu2 %v4171_v55 }
 0x874   : > { %v711_v35 = vpop.permute.xlu1 %710 }
 0x875   : > { %v719_v43 = vmul.f32 %v718_v25, %v711_v35  ;;  %v4619_v35 = vsel %vm877_vm10, 1.0, %v4158_v52 }
 0x877   : > { %v721_v47 = vsub.f32 %v677_v58, %v719_v43  ;;  %v4614_v58 = vsel %vm833_vm9, 1.0, %v4158_v52 }
 0x879   : > { %754 = vperm.xlu1 %3777, %v721_v47  }
 0x881   : > { %3778 = vset.pattern.permute.xlu1 %v4170_v59 }
 0x882   : > { %v785_v50 = vpop.permute.xlu2 %784 }
 0x883   : > { %v787_v13 = vmul.f32 %v785_v50, %v766_v26 }
 0x885   : > { %v806_v51 = vperm.slane %v787_v13, 4 }
 0x88b   : > { %v804_v21 = vpop.permute.xlu0 %803 }
 0x88c   : > { %v808_v56 = vmul.f32 %v806_v51, %v804_v21 }
 0x88e   : > { %v810_v49 = vsub.f32 %v766_v26, %v808_v56 }
 0x890   : > { %3812 = vrcp.f32 %v810_v49  ;;  %v822_v3 = vand.u32 2147483648, %v810_v49  ;;  %v820_v32 = vand.u32 2147483647, %v810_v49  ;;  %vm816_vm6 = vweird.f32 %v810_v49 }
 0x891   : > { %v839_v26 = vsub.f32 %v810_v49, %v4614_v58 }
 0x892   : > { %v823_v22 = vor.u32 1.1754944e-38, %v822_v3  ;;  %vm821_vm8 = vcmp.eq.f32.partialorder %v820_v32, 8.507059e+37 }
 0x896   : > { %v3813_v60 = vpop.eup %3812 }
 0x897   : > { %v812_v61 = vmul.f32 %v3813_v60, %v810_v49  ;;  %vm817_vm5 = vweird.f32 %v3813_v60 }
 0x898   : > { %vm818_vm7 = vmor %vm816_vm6, %vm817_vm5  ;;  %vm921_vm6 = vcmp.eq.s32.totalorder %v4313_v9, 15 }
 0x899   : > { %v813_v63 = vsub.f32 1.0, %v812_v61 }
 0x89b   : > { %v814_v30 = vmul.f32 %v3813_v60, %v813_v63 }
 0x89d   : > { %v815_v27 = vadd.f32 %v3813_v60, %v814_v30 }
 0x89f   : > { %v819_v25 = vsel %vm818_vm7, %v3813_v60, %v815_v27 }
 0x8a0   : > { %v824_v59 = vsel %vm821_vm8, %v823_v22, %v819_v25  ;;  %v4173_v22 = vmov 15  }
 0x8a1   : > { %828 = vperm.xlu2 %3779, %v824_v59  }
 0x8a9   : > { %847 = vperm.xlu2 %3779, %v839_v26  }
 0x8b1   : > { %3782 = vset.pattern.permute.xlu2 %v4172_v44 }
 0x8eb   : > { %v755_v23 = vpop.permute.xlu1 %754 }
 0x8ec   : > { %v763_v37 = vmul.f32 %v762_v54, %v755_v23 }
 0x8ee   : > { %v765_v28 = vsub.f32 %v721_v47, %v763_v37 }
 0x8f0   : > { %798 = vperm.xlu1 %3778, %v765_v28  }
 0x8f8   : > { %3781 = vset.pattern.permute.xlu1 %v4172_v44 }
 0x8fb   : > { %v829_v38 = vpop.permute.xlu2 %828 }
 0x8fc   : > { %v831_v39 = vmul.f32 %v829_v38, %v810_v49 }
 0x8fe   : > { %v850_v41 = vperm.slane %v831_v39, 5 }
 0x903   : > { %v848_v42 = vpop.permute.xlu2 %847 }
 0x904   : > { %v852_v55 = vmul.f32 %v850_v41, %v848_v42 }
 0x906   : > { %v854_v43 = vsub.f32 %v810_v49, %v852_v55 }
 0x908   : > { %3814 = vrcp.f32 %v854_v43  ;;  %v883_v50 = vsub.f32 %v854_v43, %v4619_v35  ;;  %v866_v21 = vand.u32 2147483648, %v854_v43  ;;  %v864_v60 = vand.u32 2147483647, %v854_v43 }
 0x909   : > { %vm860_vm12 = vweird.f32 %v854_v43 }
 0x90a   : > { %891 = vperm.xlu2 %3782, %v883_v50   ;;  %v867_v63 = vor.u32 1.1754944e-38, %v866_v21  ;;  %vm865_vm14 = vcmp.eq.f32.partialorder %v864_v60, 8.507059e+37 }
 0x90e   : > { %v3815_v13 = vpop.eup %3814 }
 0x90f   : > { %v856_v54 = vmul.f32 %v3815_v13, %v854_v43  ;;  %vm861_vm11 = vweird.f32 %v3815_v13 }
 0x910   : > { %vm862_vm13 = vmor %vm860_vm12, %vm861_vm11 }
 0x911   : > { %v857_v47 = vsub.f32 1.0, %v856_v54 }
 0x912   : > { %3783 = vset.pattern.permute.xlu2 %v4173_v22 }
 0x913   : > { %v858_v56 = vmul.f32 %v3815_v13, %v857_v47 }
 0x915   : > { %v859_v61 = vadd.f32 %v3815_v13, %v858_v56 }
 0x917   : > { %v863_v3 = vsel %vm862_vm13, %v3815_v13, %v859_v61 }
 0x918   : > { %v868_v30 = vsel %vm865_vm14, %v867_v63, %v863_v3  ;;  %v111_v63 = vmul.f32 %v4123_v5, %v4400_v20 }
 0x919   : > { %872 = vperm.xlu1 %3781, %v868_v30  }
 0x962   : > { %v799_v49 = vpop.permute.xlu1 %798 }
 0x963   : > { %v807_v32 = vmul.f32 %v806_v51, %v799_v49 }
 0x964   : > { %v892_v44 = vpop.permute.xlu2 %891 }
 0x965   : > { %v809_v27 = vsub.f32 %v765_v28, %v807_v32 }
 0x967   : > { %842 = vperm.xlu0 %3780, %v809_v27  }
 0x96f   : > { %3784 = vset.pattern.permute.xlu0 %v4173_v22 }
 0x98b   : > { %v873_v25 = vpop.permute.xlu1 %872 }
 0x98c   : > { %v875_v59 = vmul.f32 %v873_v25, %v854_v43 }
 0x98e   : > { %v894_v26 = vperm.slane %v875_v59, 6 }
 0x990   : > { %v896_v23 = vmul.f32 %v894_v26, %v892_v44 }
 0x992   : > { %v898_v37 = vsub.f32 %v854_v43, %v896_v23  ;;  %v4624_v43 = vsel %vm921_vm6, 1.0, %v4158_v52 }
 0x994   : > { %3816 = vrcp.f32 %v898_v37  ;;  %v910_v55 = vand.u32 2147483648, %v898_v37  ;;  %v908_v13 = vand.u32 2147483647, %v898_v37  ;;  %vm904_vm2 = vweird.f32 %v898_v37 }
 0x995   : > { %v927_v61 = vsub.f32 %v898_v37, %v4624_v43 }
 0x996   : > { %v911_v28 = vor.u32 1.1754944e-38, %v910_v55  ;;  %vm909_vm5 = vcmp.eq.f32.partialorder %v908_v13, 8.507059e+37 }
 0x99a   : > { %v3817_v38 = vpop.eup %3816 }
 0x99b   : > { %v900_v39 = vmul.f32 %v3817_v38, %v898_v37  ;;  %vm905_vm15 = vweird.f32 %v3817_v38 }
 0x99c   : > { %vm906_vm3 = vmor %vm904_vm2, %vm905_vm15 }
 0x99d   : > { %v901_v42 = vsub.f32 1.0, %v900_v39 }
 0x99f   : > { %v902_v50 = vmul.f32 %v3817_v38, %v901_v42  ;;  %v109_v42 = vmul.f32 %v4123_v5, %v4407_v24 }
 0x9a1   : > { %v903_v51 = vadd.f32 %v3817_v38, %v902_v50  ;;  %v131_v50 = vmul.f32 %v4111_v11, %v4400_v20  ;;  %v100_v11 = vmul.f32 %v4123_v5, %v4390_v16 }
 0x9a3   : > { %v907_v54 = vsel %vm906_vm3, %v3817_v38, %v903_v51  ;;  %v130_v51 = vmul.f32 %v4115_v8, %v4407_v24 }
 0x9a4   : > { %v912_v47 = vsel %vm909_vm5, %v911_v28, %v907_v54  ;;  %v132_v28 = vmul.f32 %v4107_v12, %v4400_v20 }
 0x9a5   : > { %916 = vperm.xlu2 %3783, %v912_v47  }
 0x9a6   : > { %v134_v47 = vadd.f32 %v132_v28, %v130_v51 }
 0x9ad   : > { %113 = vrot.lane.b32.xlu2 %v111_v63, %s4155_s14  ;;  %v944_v63 = vstv %s224_s20 }
 0x9d9   : > { %v843_v21 = vpop.permute.xlu0 %842 }
 0x9da   : > { %v851_v56 = vmul.f32 %v850_v41, %v843_v21  ;;  %v170_v21 = vmul.f32 %v134_v47, %v4400_v20 }
 0x9dc   : > { %v853_v60 = vsub.f32 %v809_v27, %v851_v56  ;;  %v226_v56 = vld [vmem:[%s225_s23] sm:$0x1] }
 0x9de   : > { %886 = vperm.xlu1 %3781, %v853_v60  }
 0x9e6   : > { %3785 = vset.pattern.permute.xlu1 %v4173_v22  ;;  %v102_v22 = vmul.f32 %v4123_v5, %v4393_v17 }
 0x9e7   : > { %935 = vperm.xlu1 %3785, %v927_v61  }
 0x9ff   : > { %v917_v30 = vpop.permute.xlu2 %916 }
 0xa00   : > { %v919_v32 = vmul.f32 %v917_v30, %v898_v37 }
 0xa02   : > { %v938_v27 = vperm.slane %v919_v32, 7 }
 0xa07   : > { %v114_v44 = vpop.permute.xlu2 %113 }
 0xa08   : > { %v116_v55 = vadd.f32 %v114_v44, %v109_v42 }
 0xa50   : > { %v887_v3 = vpop.permute.xlu1 %886 }
 0xa51   : > { %v895_v49 = vmul.f32 %v894_v26, %v887_v3 }
 0xa53   : > { %v897_v41 = vsub.f32 %v853_v60, %v895_v49 }
 0xa55   : > { %930 = vperm.xlu0 %3784, %v897_v41  }
 0xa59   : > { %v936_v25 = vpop.permute.xlu1 %935 }
 0xa5a   : > { %v940_v59 = vmul.f32 %v938_v27, %v936_v25  ;;  %v166_v25 = vmul.f32 %v134_v47, %v4407_v24 }
 0xa5c   : > { %v942_v52 = vsub.f32 %v898_v37, %v940_v59  ;;  %v129_v37 = vmul.f32 %v4119_v6, %v4407_v24 }
 0xa5d   : > { %104 = vrot.lane.b32.xlu0 %v102_v22, %s4155_s14 }
 0xa5e   : > { %950 = vrot.lane.b32.xlu2 %v942_v52, %s4155_s14  ;;  %v133_v13 = vadd.f32 %v131_v50, %v129_v37  ;;  %v138_v50 = vmul.f32 %v134_v47, %v4390_v16 }
 0xa60   : > { %v169_v54 = vmul.f32 %v133_v13, %v4400_v20  ;;  %v141_v49 = vmul.f32 %v133_v13, %v4393_v17  ;;  %v165_v32 = vmul.f32 %v133_v13, %v4407_v24  ;;  %v137_v42 = vmul.f32 %v133_v13, %v4390_v16 }
 0xa65   : > { %179 = vrot.lane.b32.xlu0 %v169_v54, %s4155_s14 }
 0xa6d   : > { %151 = vrot.lane.b32.xlu0 %v141_v49, %s4155_s14 }
 0xab8   : > { %v951_v23 = vpop.permute.xlu2 %950 }
 0xab9   : > { %971 = vmatpush.msra.mxu0 %v951_v23 }
 0xac7   : > { %v931_v38 = vpop.permute.xlu0 %930 }
 0xac8   : > { %v939_v39 = vmul.f32 %v938_v27, %v931_v38 }
 0xaca   : > { %v941_v26 = vsub.f32 %v897_v41, %v939_v39  ;;  %v142_v41 = vmul.f32 %v134_v47, %v4393_v17 }
 0xacc   : > { %948 = vrot.lane.b32.xlu1 %v941_v26, %s4155_s14 }
 0xacf   : > { %v105_v8 = vpop.permute.xlu0 %104 }
 0xad0   : > { %v107_v12 = vadd.f32 %v105_v8, %v100_v11 }
 0xad4   : > { %118 = vrot.lane.b32.xlu1 %v116_v55, %s4156_s15 }
 0xad7   : > { %v180_v27 = vpop.permute.xlu0 %179 }
 0xad8   : > { %v189_v52 = vadd.f32 %v180_v27, %v165_v32 }
 0xada   : > { %199 = vrot.lane.b32.xlu0 %v189_v52, %s4156_s15 }
 0xadc   : > { %181 = vrot.lane.b32.xlu1 %v170_v21, %s4155_s14 }
 0xadf   : > { %v152_v26 = vpop.permute.xlu0 %151 }
 0xae0   : > { %v161_v37 = vadd.f32 %v152_v26, %v137_v42 }
 0xae4   : > { %153 = vrot.lane.b32.xlu1 %v142_v41, %s4155_s14 }
 0xb3e   : > { %v949_v6 = vpop.permute.xlu1 %948 }
 0xb3f   : > { %972 = vmatpush.msra.mxu0 %v949_v6  ;;  %978 = vxpose.xlu2.b32.start [1/2] (short) (narrow) %v949_v6, 32 }
 0xb46   : > { %v119_v60 = vpop.permute.xlu1 %118 }
 0xb47   : > { %v122_v61 = vsel %vm121_vm4, %v107_v12, %v119_v60  ;;  %979 = vxpose.xlu2.b32.end [2/2] (short) (narrow) %v951_v23, 32 }
 0xb48   : > { %3499 = vst.msk [vmem:[%s3438_s26 + $0x1] sm:$0x1] %vm76_vm0, %v122_v61  ;;  %v943_v5 = vsub.f32 %v226_v56, %v122_v61 }
 0xb4a   : > { %v945_v3 = vmul.f32 %v944_v63, %v943_v5 }
 0xb4c   : > { %3521 = vmatmul.msk.f32.vlgmr.msra.gmra.mxu0 %vm121_vm4, %v945_v3  ;;  %v200_v28 = vpop.permute.xlu0 %199 }
 0xb4d   : > { %v209_v54 = vsel %vm121_vm4, %v161_v37, %v200_v28 }
 0xb4e   : > { %v182_v59 = vpop.permute.xlu1 %181  ;;  %v213_v21 = vadd.f32 %v209_v54, %v4280_v2 }
 0xb4f   : > { %v190_v22 = vadd.f32 %v182_v59, %v166_v25 }
 0xb50   : > { %3503 = vst.msk [vmem:[%s4419_s19 + $0x30] sm:$0xff] %vm78_vm1, %v213_v21 }
 0xb51   : > { %201 = vrot.lane.b32.xlu1 %v190_v22, %s4156_s15 }
 0xb56   : > { %v154_v55 = vpop.permute.xlu1 %153 }
 0xb57   : > { %v162_v51 = vadd.f32 %v154_v55, %v138_v50 }
 0xbc3   : > { %v202_v6 = vpop.permute.xlu1 %201 }
 0xbc4   : > { %v210_v11 = vsel %vm121_vm4, %v162_v51, %v202_v6 }
 0xbc5   : > { %v214_v8 = vadd.f32 %v210_v11, %v4287_v4 }
 0xbc7   : > { %3504 = vst.msk [vmem:[%s4419_s19 + $0x38] sm:$0xff] %vm78_vm1, %v214_v8 }
 0xbc9   : > { %v974_v30 = vpop.f32.mrf.mxu0 }
 0xbca   : > { %v977_v5 = vadd.f32 %v974_v30, %v122_v61  }
 0xbcc   : > { %3526 = vst.msk [vmem:[%s3444_s30 + $0x1] sm:$0x1] %vm76_vm0, %v977_v5 }
 0xbd8   : > { %v994_v44 = vpop.trf.xlu2 }
 0xbd9   : > { %3522 = vmatmul.msk.f32.vlgmr.msra.gmra.mxu1 %vm121_vm4, %v994_v44 }
 0xbe0   : > { %v995_v23 = vpop.trf.xlu2 }
 0xbe1   : > { %3523 = vmatmul.msk.f32.vlgmr.msra.gmra.mxu2 %vm121_vm4, %v995_v23 }
 0xbe8   : > { %v996_v38 = vpop.trf.xlu2 }
 0xbe9   : > { %3524 = vmatmul.msk.f32.gmra.mxu2 %vm121_vm4, %v996_v38 }
 0xbf0   : > { %v997_v39 = vpop.trf.xlu2 }
 0xbf1   : > { %3525 = vmatmul.msk.f32.vlgmr.msra.gmra.mxu3 %vm121_vm4, %v997_v39 }
 0xc56   : > { %v1039_v13 = vpop.f32.mrf.mxu1 }
 0xc57   : > { %v1051_v12 = vmul.f32 %v1039_v13, %v944_v63 }
 0xc59   : > { %v1055_v6 = vsub.f32 %v4422_v33, %v1051_v12   ;;  %v3532_v33 = vld [vmem:[%s5273_s6 + $0x9] sm:$0x1] (%p90_p0)  }
 0xc5b   : > { %3528 = vst.msk [vmem:[%s3447_s12 + $0x20] sm:$0xff] %vm78_vm1, %v1055_v6 }
 0xc64   : > { %v1042_v47 = vpop.f32.mrf.mxu2 }
 0xc65   : > { %v1052_v56 = vmul.f32 %v1042_v47, %v944_v63 }
 0xc67   : > { %v1056_v60 = vsub.f32 %v4475_v45, %v1052_v56  }
 0xc69   : > { %3529 = vst.msk [vmem:[%s3447_s12 + $0x28] sm:$0xff] %vm78_vm1, %v1056_v60 }
 0xc6c   : > { %v1045_v61 = vpop.f32.mrf.mxu2 }
 0xc6d   : > { %v1053_v3 = vmul.f32 %v1045_v61, %v944_v63 }
 0xc6f   : > { %v1057_v11 = vsub.f32 %v213_v21, %v1053_v3  }
 0xc71   : > { %3530 = vst.msk [vmem:[%s3447_s12 + $0x30] sm:$0xff] %vm78_vm1, %v1057_v11 }
 0xc74   : > { %v1048_v30 = vpop.f32.mrf.mxu3 }
 0xc75   : > { %v1054_v49 = vmul.f32 %v1048_v30, %v944_v63  ;;  %92 = sbr.rel (!%p90_p0) target bundleno = 23 (0x17), region = 101 }
 0xc77   : > { %v1058_v12 = vsub.f32 %v214_v8, %v1054_v49   ;;  %v5277_v8 = vmov %v1056_v60 }
 0xc79   : > { %3531 = vst.msk [vmem:[%s3447_s12 + $0x38] sm:$0xff] %vm78_vm1, %v1058_v12 }
 0xc80   :  { %v3533_v45 = vld [vmem:[%s5274_s7 + $0x120] sm:$0xff]   ;;  %v3534_v63 = vld [vmem:[%s5274_s7 + $0x128] sm:$0xff]   ;;  %v3535_v41 = vld [vmem:[%s5274_s7 + $0x130] sm:$0xff]  }
 0xc81   :  { %v3536_v5 = vld [vmem:[%s5274_s7 + $0x138] sm:$0xff]  }
 0xc82 LB: > { %s1084_s17 = ssub.s32 8, %s4151_s5  ;;  %s4174_s21 = smov 32   ;;  %v4175_v14 = vmov 0   ;;  %v4176_v37 = vmov 1   ;;  %s4151_s5 = sphi %s4740_s5, %s1078_s5   ;;  %v4147_v33 = vphi %v3532_v33, %v3296_v33   ;;  %v4143_v45 = vphi %v3533_v45, %v3411_v45   ;;  %v4139_v63 = vphi %v3534_v63, %v3412_v63   ;;  %v4135_v41 = vphi %v3535_v41, %v3413_v41   ;;  %v4131_v5 = vphi %v3536_v5, %v3414_v5  }
 0xc83   : > { %s3537_s22 = sshll.u32 %s1084_s17, 5  ;;  %3819 = vset.pattern.permute.xlu1 %v4175_v14  ;;  %3818 = vset.pattern.permute.xlu0 %v4175_v14  ;;  %s1093_s23 = ssub.s32 9, %s4151_s5 }
 0xc84   : > { %s4766_s13 = scalar_lea.vmem %s5274_s7, %s3537_s22  ;;  %s3538_s24 = sshll.u32 %s1093_s23, 5  ;;  %3821 = vset.pattern.permute.xlu2 %v4176_v37 }
 0xc85   : > { %v4769_v0 = vld [vmem:[%s4766_s13] sm:$0xff]  ;;  %v4772_v1 = vld [vmem:[%s4766_s13 + $0x10] sm:$0xff]  ;;  %s4787_s27 = scalar_lea.vmem %s5276_s9, %s3538_s24  ;;  %v4798_v11 = vld [vmem:[%s4766_s13 + $0x8] sm:$0xff]  ;;  %s4208_s28 = smov 96  }
 0xc86   : > { %v1103_v2 = vmul.f32 %v4769_v0, %v4390_v16  ;;  %v1106_v4 = vmul.f32 %v4772_v1, %v4393_v17  ;;  %v1098_v15 = vld [vmem:[%s4787_s27] sm:$0xff]  ;;  %v4801_v8 = vld [vmem:[%s4766_s13 + $0x18] sm:$0xff]  ;;  %v1104_v12 = vmul.f32 %v4798_v11, %v4390_v16  ;;  %s1094_s4 = scalar_lea.vmem %s5275_s8, %s1093_s23  ;;  %s1085_s2 = scalar_lea.vmem %s5273_s6, %s1084_s17 }
 0xc87   : > { %v1107_v47 = vmul.f32 %v4801_v8, %v4393_v17  ;;  %s1078_s5 = sadd.s32 1, %s4151_s5  }
 0xc88   : > { %v1108_v9 = vadd.f32 %v1106_v4, %v1103_v2  ;;  %p1075_p1 = scmp.ge.s32.totalorder %s1078_s5, 9  }
 0xc89   : > { %v1109_v60 = vadd.f32 %v1107_v47, %v1104_v12 }
 0xc8a   : > { %1122 = vrot.lane.b32.xlu0 %v1108_v9, %s4174_s21 }
 0xcfc   : > { %v1123_v32 = vpop.permute.xlu0 %1122 }
 0xcfd   : > { %v1134_v27 = vsel %vm78_vm1, %v1098_v15, %v1123_v32 }
 0xcfe   : > { %3957 = vrcp.f32 %v1134_v27  ;;  %v1173_v25 = vsub.f32 %v1134_v27, %v4443_v53  ;;  %v1151_v44 = vand.u32 2147483648, %v1134_v27  ;;  %v1149_v38 = vand.u32 2147483647, %v1134_v27 }
 0xcff   : > { %vm1145_vm7 = vweird.f32 %v1134_v27 }
 0xd00   : > { %1179 = vperm.xlu1 %3819, %v1173_v25   ;;  %v1152_v26 = vor.u32 1.1754944e-38, %v1151_v44  ;;  %vm1150_vm9 = vcmp.eq.f32.partialorder %v1149_v38, 8.507059e+37  ;;  %v1099_v25 = vld [vmem:[%s4787_s27 + $0x8] sm:$0xff] }
 0xd04   : > { %v3958_v59 = vpop.eup %3957 }
 0xd05   : > { %v1141_v52 = vmul.f32 %v3958_v59, %v1134_v27  ;;  %vm1146_vm4 = vweird.f32 %v3958_v59 }
 0xd06   : > { %vm1147_vm8 = vmor %vm1145_vm7, %vm1146_vm4 }
 0xd07   : > { %v1142_v22 = vsub.f32 1.0, %v1141_v52 }
 0xd08   : > { %3820 = vset.pattern.permute.xlu1 %v4176_v37 }
 0xd09   : > { %v1143_v23 = vmul.f32 %v3958_v59, %v1142_v22  ;;  %v4177_v22 = vmov 2  }
 0xd0b   : > { %v1144_v39 = vadd.f32 %v3958_v59, %v1143_v23 }
 0xd0d   : > { %v1148_v42 = vsel %vm1147_vm8, %v3958_v59, %v1144_v39 }
 0xd0e   : > { %v1153_v55 = vsel %vm1150_vm9, %v1152_v26, %v1148_v42 }
 0xd0f   : > { %1157 = vperm.xlu0 %3818, %v1153_v55  }
 0xd72   : > { %v1180_v54 = vpop.permute.xlu1 %1179 }
 0xd81   : > { %v1158_v50 = vpop.permute.xlu0 %1157 }
 0xd82   : > { %v1160_v51 = vmul.f32 %v1158_v50, %v1134_v27 }
 0xd84   : > { %v4794_v28 = vperm.slane %v1160_v51, 0 }
 0xd86   : > { %v1198_v21 = vmul.f32 %v4794_v28, %v1180_v54 }
 0xd88   : > { %v1202_v6 = vsub.f32 %v1134_v27, %v1198_v21 }
 0xd8a   : > { %3959 = vrcp.f32 %v1202_v6  ;;  %v1239_v13 = vsub.f32 %v1202_v6, %v4458_v62  ;;  %v1217_v30 = vand.u32 2147483648, %v1202_v6  ;;  %v1215_v2 = vand.u32 2147483647, %v1202_v6 }
 0xd8b   : > { %vm1211_vm11 = vweird.f32 %v1202_v6 }
 0xd8c   : > { %1245 = vperm.xlu2 %3821, %v1239_v13   ;;  %v1218_v9 = vor.u32 1.1754944e-38, %v1217_v30  ;;  %vm1216_vm13 = vcmp.eq.f32.partialorder %v1215_v2, 8.507059e+37  ;;  %v4178_v30 = vmov 3  }
 0xd90   : > { %v3960_v56 = vpop.eup %3959 }
 0xd91   : > { %v1207_v61 = vmul.f32 %v3960_v56, %v1202_v6  ;;  %vm1212_vm10 = vweird.f32 %v3960_v56 }
 0xd92   : > { %vm1213_vm12 = vmor %vm1211_vm11, %vm1212_vm10 }
 0xd93   : > { %v1208_v3 = vsub.f32 1.0, %v1207_v61 }
 0xd94   : > { %1124 = vrot.lane.b32.xlu2 %v1109_v60, %s4174_s21 }
 0xd95   : > { %v1209_v49 = vmul.f32 %v3960_v56, %v1208_v3  ;;  %3823 = vset.pattern.permute.xlu2 %v4177_v22 }
 0xd97   : > { %v1210_v4 = vadd.f32 %v3960_v56, %v1209_v49 }
 0xd99   : > { %v1214_v15 = vsel %vm1213_vm12, %v3960_v56, %v1210_v4 }
 0xd9a   : > { %v1219_v32 = vsel %vm1216_vm13, %v1218_v9, %v1214_v15 }
 0xd9b   : > { %1223 = vperm.xlu1 %3820, %v1219_v32  }
 0xda3   : > { %3822 = vset.pattern.permute.xlu1 %v4177_v22 }
 0xde6   : > { %v1246_v27 = vpop.permute.xlu2 %1245 }
 0xdee   : > { %v1125_v59 = vpop.permute.xlu2 %1124 }
 0xdef   : > { %v1135_v52 = vsel %vm78_vm1, %v1099_v25, %v1125_v59 }
 0xdf0   : > { %1184 = vperm.xlu0 %3818, %v1135_v52  }
 0xdf8   : > { %3826 = vset.pattern.permute.xlu0 %v4178_v30 }
 0xe0d   : > { %v1224_v44 = vpop.permute.xlu1 %1223 }
 0xe0e   : > { %v1226_v23 = vmul.f32 %v1224_v44, %v1202_v6 }
 0xe10   : > { %v4813_v38 = vperm.slane %v1226_v23, 1 }
 0xe12   : > { %v1264_v39 = vmul.f32 %v4813_v38, %v1246_v27 }
 0xe14   : > { %v1268_v26 = vsub.f32 %v1202_v6, %v1264_v39 }
 0xe16   : > { %3961 = vrcp.f32 %v1268_v26  ;;  %v1305_v42 = vsub.f32 %v1268_v26, %v4490_v46  ;;  %v1283_v54 = vand.u32 2147483648, %v1268_v26  ;;  %v1281_v13 = vand.u32 2147483647, %v1268_v26 }
 0xe17   : > { %vm1277_vm15 = vweird.f32 %v1268_v26 }
 0xe18   : > { %1311 = vperm.xlu2 %3823, %v1305_v42   ;;  %v1284_v47 = vor.u32 1.1754944e-38, %v1283_v54  ;;  %vm1282_vm3 = vcmp.eq.f32.partialorder %v1281_v13, 8.507059e+37  ;;  %v4179_v13 = vmov 4  }
 0xe1c   : > { %v3962_v55 = vpop.eup %3961 }
 0xe1d   : > { %v1273_v50 = vmul.f32 %v3962_v55, %v1268_v26  ;;  %vm1278_vm14 = vweird.f32 %v3962_v55 }
 0xe1e   : > { %vm1279_vm2 = vmor %vm1277_vm15, %vm1278_vm14 }
 0xe1f   : > { %v1274_v51 = vsub.f32 1.0, %v1273_v50 }
 0xe20   : > { %3825 = vset.pattern.permute.xlu2 %v4176_v37 }
 0xe21   : > { %v1275_v21 = vmul.f32 %v3962_v55, %v1274_v51 }
 0xe23   : > { %v1276_v12 = vadd.f32 %v3962_v55, %v1275_v21 }
 0xe25   : > { %v1280_v56 = vsel %vm1279_vm2, %v3962_v55, %v1276_v12 }
 0xe26   : > { %v1285_v6 = vsel %vm1282_vm3, %v1284_v47, %v1280_v56 }
 0xe27   : > { %1289 = vperm.xlu1 %3822, %v1285_v6  }
 0xe2f   : > { %3824 = vset.pattern.permute.xlu1 %v4178_v30 }
 0xe62   : > { %v1185_v60 = vpop.permute.xlu0 %1184 }
 0xe63   : > { %v1199_v61 = vmul.f32 %v4794_v28, %v1185_v60 }
 0xe65   : > { %v1203_v3 = vsub.f32 %v1135_v52, %v1199_v61 }
 0xe67   : > { %1250 = vperm.xlu2 %3825, %v1203_v3  }
 0xe6f   : > { %3828 = vset.pattern.permute.xlu2 %v4179_v13 }
 0xe72   : > { %v1312_v9 = vpop.permute.xlu2 %1311 }
 0xe99   : > { %v1290_v49 = vpop.permute.xlu1 %1289 }
 0xe9a   : > { %v1292_v2 = vmul.f32 %v1290_v49, %v1268_v26 }
 0xe9c   : > { %v4821_v4 = vperm.slane %v1292_v2, 2 }
 0xe9e   : > { %v1330_v15 = vmul.f32 %v4821_v4, %v1312_v9 }
 0xea0   : > { %v1334_v32 = vsub.f32 %v1268_v26, %v1330_v15 }
 0xea2   : > { %3963 = vrcp.f32 %v1334_v32  ;;  %v1371_v27 = vsub.f32 %v1334_v32, %v4505_v40  ;;  %v1349_v44 = vand.u32 2147483648, %v1334_v32  ;;  %v1347_v39 = vand.u32 2147483647, %v1334_v32 }
 0xea3   : > { %vm1343_vm6 = vweird.f32 %v1334_v32 }
 0xea4   : > { %1377 = vperm.xlu0 %3826, %v1371_v27   ;;  %v1350_v55 = vor.u32 1.1754944e-38, %v1349_v44  ;;  %vm1348_vm7 = vcmp.eq.f32.partialorder %v1347_v39, 8.507059e+37 }
 0xea8   : > { %v3964_v25 = vpop.eup %3963 }
 0xea9   : > { %v1339_v59 = vmul.f32 %v3964_v25, %v1334_v32  ;;  %vm1344_vm5 = vweird.f32 %v3964_v25 }
 0xeaa   : > { %vm1345_vm4 = vmor %vm1343_vm6, %vm1344_vm5 }
 0xeab   : > { %v1340_v52 = vsub.f32 1.0, %v1339_v59 }
 0xead   : > { %v1341_v23 = vmul.f32 %v3964_v25, %v1340_v52 }
 0xeaf   : > { %v1342_v42 = vadd.f32 %v3964_v25, %v1341_v23 }
 0xeb1   : > { %v1346_v50 = vsel %vm1345_vm4, %v3964_v25, %v1342_v42 }
 0xeb2   : > { %v1351_v51 = vsel %vm1348_vm7, %v1350_v55, %v1346_v50  ;;  %v1111_v55 = vmul.f32 %v4769_v0, %v4407_v24  ;;  %v1114_v50 = vmul.f32 %v4772_v1, %v4400_v20 }
 0xeb3   : > { %1355 = vperm.xlu1 %3824, %v1351_v51  }
 0xeb4   : > { %v1116_v51 = vadd.f32 %v1114_v50, %v1111_v55  ;;  %v4181_v50 = vmov 6  }
 0xebb   : > { %3827 = vset.pattern.permute.xlu1 %v4177_v22 }
 0xec1   : > { %v1251_v26 = vpop.permute.xlu2 %1250 }
 0xec2   : > { %v1265_v54 = vmul.f32 %v4813_v38, %v1251_v26  ;;  %v4180_v26 = vmov 5  }
 0xec4   : > { %v1269_v21 = vsub.f32 %v1203_v3, %v1265_v54 }
 0xec6   : > { %1316 = vperm.xlu1 %3827, %v1269_v21  }
 0xece   : > { %3829 = vset.pattern.permute.xlu1 %v4179_v13 }
 0xf16   : > { %v1378_v6 = vpop.permute.xlu0 %1377 }
 0xf25   : > { %v1356_v12 = vpop.permute.xlu1 %1355 }
 0xf26   : > { %v1358_v47 = vmul.f32 %v1356_v12, %v1334_v32  ;;  %v1100_v12 = vld [vmem:[%s4787_s27 + $0x10] sm:$0xff] }
 0xf28   : > { %v4829_v56 = vperm.slane %v1358_v47, 3 }
 0xf2a   : > { %v1396_v60 = vmul.f32 %v4829_v56, %v1378_v6 }
 0xf2c   : > { %v1400_v61 = vsub.f32 %v1334_v32, %v1396_v60 }
 0xf2e   : > { %3965 = vrcp.f32 %v1400_v61  ;;  %v1437_v49 = vsub.f32 %v1400_v61, %v4518_v57  ;;  %v1415_v27 = vand.u32 2147483648, %v1400_v61  ;;  %v1413_v52 = vand.u32 2147483647, %v1400_v61 }
 0xf2f   : > { %vm1409_vm9 = vweird.f32 %v1400_v61 }
 0xf30   : > { %1443 = vperm.xlu1 %3829, %v1437_v49   ;;  %v1416_v32 = vor.u32 1.1754944e-38, %v1415_v27  ;;  %vm1414_vm11 = vcmp.eq.f32.partialorder %v1413_v52, 8.507059e+37 }
 0xf34   : > { %v3966_v2 = vpop.eup %3965 }
 0xf35   : > { %v1405_v3 = vmul.f32 %v3966_v2, %v1400_v61  ;;  %vm1410_vm8 = vweird.f32 %v3966_v2 }
 0xf36   : > { %vm1411_vm10 = vmor %vm1409_vm9, %vm1410_vm8 }
 0xf37   : > { %v1406_v9 = vsub.f32 1.0, %v1405_v3 }
 0xf38   : > { %v1317_v15 = vpop.permute.xlu1 %1316  ;;  %3830 = vset.pattern.permute.xlu1 %v4175_v14 }
 0xf39   : > { %v1331_v25 = vmul.f32 %v4821_v4, %v1317_v15  ;;  %v1407_v59 = vmul.f32 %v3966_v2, %v1406_v9 }
 0xf3b   : > { %v1335_v44 = vsub.f32 %v1269_v21, %v1331_v25  ;;  %v1408_v23 = vadd.f32 %v3966_v2, %v1407_v59 }
 0xf3d   : > { %1382 = vperm.xlu0 %3826, %v1335_v44   ;;  %v1412_v39 = vsel %vm1411_vm10, %v3966_v2, %v1408_v23 }
 0xf3e   : > { %v1417_v42 = vsel %vm1414_vm11, %v1416_v32, %v1412_v39 }
 0xf3f   : > { %1421 = vperm.xlu2 %3828, %v1417_v42  }
 0xf45   : > { %3832 = vset.pattern.permute.xlu0 %v4179_v13 }
 0xf47   : > { %1126 = vrot.lane.b32.xlu2 %v1116_v51, %s4174_s21 }
 0xf48   : > { %3831 = vset.pattern.permute.xlu2 %v4180_v26 }
 0xf99   : > { %v1422_v54 = vpop.permute.xlu2 %1421 }
 0xf9a   : > { %v1424_v21 = vmul.f32 %v1422_v54, %v1400_v61 }
 0xf9c   : > { %v4843_v47 = vperm.slane %v1424_v21, 4 }
 0xfa1   : > { %v1127_v6 = vpop.permute.xlu2 %1126 }
 0xfa2   : > { %v1444_v60 = vpop.permute.xlu1 %1443  ;;  %v1136_v0 = vsel %vm78_vm1, %v1100_v12, %v1127_v6 }
 0xfa3   : > { %v1462_v49 = vmul.f32 %v4843_v47, %v1444_v60  ;;  %1189 = vperm.xlu1 %3830, %v1136_v0  }
 0xfa5   : > { %v1466_v1 = vsub.f32 %v1400_v61, %v1462_v49 }
 0xfa7   : > { %3967 = vrcp.f32 %v1466_v1  ;;  %v1503_v2 = vsub.f32 %v1466_v1, %v4528_v36  ;;  %v1481_v59 = vand.u32 2147483648, %v1466_v1  ;;  %v1479_v32 = vand.u32 2147483647, %v1466_v1 }
 0xfa8   : > { %vm1475_vm13 = vweird.f32 %v1466_v1 }
 0xfa9   : > { %v1482_v61 = vor.u32 1.1754944e-38, %v1481_v59  ;;  %vm1480_vm15 = vcmp.eq.f32.partialorder %v1479_v32, 8.507059e+37 }
 0xfab   : > { %3833 = vset.pattern.permute.xlu1 %v4180_v26 }
 0xfac   : > { %1509 = vperm.xlu1 %3833, %v1503_v2  }
 0xfad   : > { %v3968_v3 = vpop.eup %3967 }
 0xfae   : > { %v1471_v9 = vmul.f32 %v3968_v3, %v1466_v1  ;;  %vm1476_vm12 = vweird.f32 %v3968_v3 }
 0xfaf   : > { %v1383_v15 = vpop.permute.xlu0 %1382  ;;  %vm1477_vm14 = vmor %vm1475_vm13, %vm1476_vm12 }
 0xfb0   : > { %v1397_v27 = vmul.f32 %v4829_v56, %v1383_v15  ;;  %v1472_v25 = vsub.f32 1.0, %v1471_v9 }
 0xfb2   : > { %v1401_v52 = vsub.f32 %v1335_v44, %v1397_v27  ;;  %v1473_v23 = vmul.f32 %v3968_v3, %v1472_v25 }
 0xfb4   : > { %1448 = vperm.xlu0 %3832, %v1401_v52   ;;  %v1474_v39 = vadd.f32 %v3968_v3, %v1473_v23 }
 0xfb6   : > { %v1478_v42 = vsel %vm1477_vm14, %v3968_v3, %v1474_v39 }
 0xfb7   : > { %v1483_v55 = vsel %vm1480_vm15, %v1482_v61, %v1478_v42 }
 0xfb8   : > { %1487 = vperm.xlu2 %3831, %v1483_v55  }
 0xfbc   : > { %3836 = vset.pattern.permute.xlu0 %v4181_v50 }
 0xfc0   : > { %3834 = vset.pattern.permute.xlu2 %v4176_v37 }
0x1012   : > { %v1488_v54 = vpop.permute.xlu2 %1487 }
0x1013   : > { %v1490_v12 = vmul.f32 %v1488_v54, %v1466_v1 }
0x1015   : > { %v1190_v51 = vpop.permute.xlu1 %1189  ;;  %v4853_v6 = vperm.slane %v1490_v12, 5  ;;  %v1115_v12 = vmul.f32 %v4801_v8, %v4400_v20 }
0x1016   : > { %v1200_v44 = vmul.f32 %v4794_v28, %v1190_v51 }
0x1018   : > { %v1204_v21 = vsub.f32 %v1136_v0, %v1200_v44  ;;  %v1112_v44 = vmul.f32 %v4798_v11, %v4407_v24 }
0x101a   : > { %1255 = vperm.xlu2 %3834, %v1204_v21  }
0x101e   : > { %v1510_v60 = vpop.permute.xlu1 %1509 }
0x101f   : > { %v1528_v49 = vmul.f32 %v4853_v6, %v1510_v60  ;;  %v1117_v60 = vadd.f32 %v1115_v12, %v1112_v44 }
0x1021   : > { %v1532_v2 = vsub.f32 %v1466_v1, %v1528_v49  ;;  %v4182_v49 = vmov 7  }
0x1022   : > { %3835 = vset.pattern.permute.xlu2 %v4181_v50 }
0x1023   : > { %3969 = vrcp.f32 %v1532_v2  ;;  %v1569_v3 = vsub.f32 %v1532_v2, %v4535_v34  ;;  %v1547_v23 = vand.u32 2147483648, %v1532_v2  ;;  %v1545_v39 = vand.u32 2147483647, %v1532_v2 }
0x1024   : > { %vm1541_vm3 = vweird.f32 %v1532_v2 }
0x1025   : > { %1575 = vperm.xlu0 %3836, %v1569_v3   ;;  %v1548_v1 = vor.u32 1.1754944e-38, %v1547_v23  ;;  %vm1546_vm6 = vcmp.eq.f32.partialorder %v1545_v39, 8.507059e+37 }
0x1026   : > { %v1449_v9 = vpop.permute.xlu0 %1448 }
0x1027   : > { %v1463_v15 = vmul.f32 %v4843_v47, %v1449_v9 }
0x1029   : > { %v3970_v27 = vpop.eup %3969  ;;  %v1467_v25 = vsub.f32 %v1401_v52, %v1463_v15 }
0x102a   : > { %v1537_v0 = vmul.f32 %v3970_v27, %v1532_v2  ;;  %vm1542_vm2 = vweird.f32 %v3970_v27 }
0x102b   : > { %1514 = vperm.xlu1 %3833, %v1467_v25   ;;  %vm1543_vm5 = vmor %vm1541_vm3, %vm1542_vm2 }
0x102c   : > { %v1538_v59 = vsub.f32 1.0, %v1537_v0 }
0x102d   : > { %3839 = vset.pattern.permute.xlu0 %v4182_v49 }
0x102e   : > { %v1539_v32 = vmul.f32 %v3970_v27, %v1538_v59 }
0x1030   : > { %v1540_v61 = vadd.f32 %v3970_v27, %v1539_v32 }
0x1032   : > { %v1544_v42 = vsel %vm1543_vm5, %v3970_v27, %v1540_v61 }
0x1033   : > { %v1549_v55 = vsel %vm1546_vm6, %v1548_v1, %v1544_v42  ;;  %3837 = vset.pattern.permute.xlu1 %v4177_v22 }
0x1034   : > { %1553 = vperm.xlu2 %3835, %v1549_v55  }
0x1074   : > { %v1256_v51 = vpop.permute.xlu2 %1255 }
0x1075   : > { %v1266_v52 = vmul.f32 %v4813_v38, %v1256_v51 }
0x1077   : > { %v1270_v54 = vsub.f32 %v1204_v21, %v1266_v52 }
0x1079   : > { %1321 = vperm.xlu1 %3837, %v1270_v54  }
0x1081   : > { %1128 = vrot.lane.b32.xlu1 %v1117_v60, %s4174_s21 }
0x1082   : > { %3840 = vset.pattern.permute.xlu1 %v4182_v49 }
0x108e   : > { %v1554_v3 = vpop.permute.xlu2 %1553 }
0x108f   : > { %v1556_v9 = vmul.f32 %v1554_v3, %v1532_v2  ;;  %v1101_v3 = vld [vmem:[%s4787_s27 + $0x18] sm:$0xff] }
0x1091   : > { %v4868_v15 = vperm.slane %v1556_v9, 6 }
0x1097   : > { %v1576_v21 = vpop.permute.xlu0 %1575 }
0x1098   : > { %v1594_v27 = vmul.f32 %v4868_v15, %v1576_v21 }
0x109a   : > { %v4871_v0 = vsub.f32 %v1532_v2, %v1594_v27 }
0x109c   : > { %3971 = vrcp.f32 %v4871_v0  ;;  %v1613_v61 = vand.u32 2147483648, %v4871_v0  ;;  %v1611_v42 = vand.u32 2147483647, %v4871_v0  ;;  %vm1607_vm7 = vweird.f32 %v4871_v0 }
0x109d   : > { %v1515_v11 = vpop.permute.xlu1 %1514 }
0x109e   : > { %v1529_v8 = vmul.f32 %v4853_v6, %v1515_v11  ;;  %v1614_v55 = vor.u32 1.1754944e-38, %v1613_v61  ;;  %vm1612_vm9 = vcmp.eq.f32.partialorder %v1611_v42, 8.507059e+37 }
0x10a0   : > { %v1533_v59 = vsub.f32 %v1467_v25, %v1529_v8 }
0x10a2   : > { %v3972_v23 = vpop.eup %3971  ;;  %1580 = vperm.xlu2 %3835, %v1533_v59  }
0x10a3   : > { %v1603_v32 = vmul.f32 %v3972_v23, %v4871_v0  ;;  %vm1608_vm4 = vweird.f32 %v3972_v23 }
0x10a4   : > { %vm1609_vm8 = vmor %vm1607_vm7, %vm1608_vm4 }
0x10a5   : > { %v1604_v39 = vsub.f32 1.0, %v1603_v32 }
0x10a7   : > { %v1605_v1 = vmul.f32 %v3972_v23, %v1604_v39 }
0x10a9   : > { %v1606_v2 = vadd.f32 %v3972_v23, %v1605_v1 }
0x10aa   : > { %3838 = vset.pattern.permute.xlu2 %v4178_v30 }
0x10ab   : > { %v1610_v25 = vsel %vm1609_vm8, %v3972_v23, %v1606_v2 }
0x10ac   : > { %v1615_v51 = vsel %vm1612_vm9, %v1614_v55, %v1610_v25 }
0x10ad   : > { %1619 = vperm.xlu0 %3839, %v1615_v51  }
0x10eb   : > { %v1322_v52 = vpop.permute.xlu1 %1321 }
0x10ec   : > { %v1332_v44 = vmul.f32 %v4821_v4, %v1322_v52 }
0x10ee   : > { %v1336_v12 = vsub.f32 %v1270_v54, %v1332_v44 }
0x10f0   : > { %1387 = vperm.xlu2 %3838, %v1336_v12  }
0x10f3   : > { %v1129_v60 = vpop.permute.xlu1 %1128 }
0x10f4   : > { %v1137_v9 = vsel %vm78_vm1, %v1101_v3, %v1129_v60 }
0x10f8   : > { %3841 = vset.pattern.permute.xlu2 %v4175_v14  ;;  %v4183_v14 = vmov 8  }
0x10f9   : > { %1194 = vperm.xlu2 %3841, %v1137_v9   ;;  %3844 = vset.pattern.permute.xlu0 %v4183_v14 }
0x10fc   : > { %v1581_v21 = vpop.permute.xlu2 %1580 }
0x10fd   : > { %v1595_v27 = vmul.f32 %v4868_v15, %v1581_v21 }
0x10ff   : > { %v1599_v11 = vsub.f32 %v1533_v59, %v1595_v27 }
0x1101   : > { %1646 = vperm.xlu1 %3840, %v1599_v11   ;;  %3843 = vset.pattern.permute.xlu2 %v4183_v14 }
0x1109   : > { %3842 = vset.pattern.permute.xlu1 %v4179_v13 }
0x111f   : > { %v1620_v59 = vpop.permute.xlu0 %1619 }
0x1120   : > { %v1622_v1 = vmul.f32 %v1620_v59, %v4871_v0  ;;  %v4184_v59 = vmov 9  }
0x1122   : > { %v4893_v42 = vperm.slane %v1622_v1, 7 }
0x114a   : > { %v1388_v8 = vpop.permute.xlu2 %1387 }
0x114b   : > { %v1398_v23 = vmul.f32 %v4829_v56, %v1388_v8 }
0x114d   : > { %v1402_v32 = vsub.f32 %v1336_v12, %v1398_v23 }
0x114f   : > { %1453 = vperm.xlu1 %3842, %v1402_v32  }
0x1153   : > { %v1195_v54 = vpop.permute.xlu2 %1194 }
0x1154   : > { %v1201_v39 = vmul.f32 %v4794_v28, %v1195_v54 }
0x1156   : > { %v1205_v61 = vsub.f32 %v1137_v9, %v1201_v39 }
0x1157   : > { %3845 = vset.pattern.permute.xlu1 %v4176_v37 }
0x1158   : > { %1260 = vperm.xlu1 %3845, %v1205_v61  }
0x1160   : > { %3847 = vset.pattern.permute.xlu1 %v4177_v22 }
0x1173   : > { %v1647_v2 = vpop.permute.xlu1 %1646 }
0x1174   : > { %v1661_v55 = vmul.f32 %v4893_v42, %v1647_v2 }
0x1176   : > { %v1665_v28 = vsub.f32 %v1599_v11, %v1661_v55 }
0x1178   : > { %3973 = vrcp.f32 %v1665_v28  ;;  %v1702_v37 = vsub.f32 %v1665_v28, %v4555_v48  ;;  %v1679_v44 = vand.u32 2147483648, %v1665_v28  ;;  %v1677_v12 = vand.u32 2147483647, %v1665_v28 }
0x1179   : > { %vm1673_vm11 = vweird.f32 %v1665_v28 }
0x117a   : > { %1712 = vperm.xlu0 %3844, %v1702_v37   ;;  %v1680_v3 = vor.u32 1.1754944e-38, %v1679_v44  ;;  %vm1678_vm13 = vcmp.eq.f32.partialorder %v1677_v12, 8.507059e+37 }
0x117e   : > { %v3974_v25 = vpop.eup %3973 }
0x117f   : > { %v1669_v51 = vmul.f32 %v3974_v25, %v1665_v28  ;;  %vm1674_vm10 = vweird.f32 %v3974_v25 }
0x1180   : > { %vm1675_vm12 = vmor %vm1673_vm11, %vm1674_vm10 }
0x1181   : > { %v1670_v52 = vsub.f32 1.0, %v1669_v51 }
0x1182   : > { %3849 = vset.pattern.permute.xlu0 %v4181_v50 }
0x1183   : > { %v1671_v22 = vmul.f32 %v3974_v25, %v1670_v52 }
0x1185   : > { %v1672_v60 = vadd.f32 %v3974_v25, %v1671_v22 }
0x1187   : > { %v1676_v9 = vsel %vm1675_vm12, %v3974_v25, %v1672_v60 }
0x1188   : > { %v1681_v21 = vsel %vm1678_vm13, %v1680_v3, %v1676_v9 }
0x1189   : > { %1685 = vperm.xlu2 %3843, %v1681_v21  }
0x1191   : > { %3846 = vset.pattern.permute.xlu2 %v4180_v26 }
0x11c1   : > { %v1454_v27 = vpop.permute.xlu1 %1453 }
0x11c2   : > { %v1464_v11 = vmul.f32 %v4843_v47, %v1454_v27 }
0x11c4   : > { %v1468_v8 = vsub.f32 %v1402_v32, %v1464_v11 }
0x11c6   : > { %1519 = vperm.xlu2 %3846, %v1468_v8  }
0x11ca   : > { %v1261_v23 = vpop.permute.xlu1 %1260 }
0x11cb   : > { %v1267_v54 = vmul.f32 %v4813_v38, %v1261_v23 }
0x11cd   : > { %v1271_v39 = vsub.f32 %v1205_v61, %v1267_v54 }
0x11ce   : > { %3848 = vset.pattern.permute.xlu2 %v4184_v59 }
0x11cf   : > { %1326 = vperm.xlu1 %3847, %v1271_v39  }
0x11d7   : > { %3850 = vset.pattern.permute.xlu1 %v4184_v59 }
0x11e3   : > { %v1686_v1 = vpop.permute.xlu2 %1685 }
0x11e4   : > { %v1688_v2 = vmul.f32 %v1686_v1, %v1665_v28 }
0x11e6   : > { %v4903_v55 = vperm.slane %v1688_v2, 0  ;;  %v4185_v2 = vmov 10  }
0x11ec   : > { %v1713_v37 = vpop.permute.xlu0 %1712 }
0x11ed   : > { %v1727_v25 = vmul.f32 %v4903_v55, %v1713_v37 }
0x11ef   : > { %v1731_v51 = vsub.f32 %v1665_v28, %v1727_v25 }
0x11f1   : > { %3975 = vrcp.f32 %v1731_v51  ;;  %v1768_v32 = vsub.f32 %v1731_v51, %v4571_v31  ;;  %v1745_v44 = vand.u32 2147483648, %v1731_v51  ;;  %v1743_v12 = vand.u32 2147483647, %v1731_v51 }
0x11f2   : > { %vm1739_vm15 = vweird.f32 %v1731_v51 }
0x11f3   : > { %1778 = vperm.xlu1 %3850, %v1768_v32   ;;  %v1746_v3 = vor.u32 1.1754944e-38, %v1745_v44  ;;  %vm1744_vm3 = vcmp.eq.f32.partialorder %v1743_v12, 8.507059e+37 }
0x11f7   : > { %v3976_v38 = vpop.eup %3975 }
0x11f8   : > { %v1735_v61 = vmul.f32 %v3976_v38, %v1731_v51  ;;  %vm1740_vm14 = vweird.f32 %v3976_v38 }
0x11f9   : > { %vm1741_vm2 = vmor %vm1739_vm15, %vm1740_vm14 }
0x11fa   : > { %v1736_v52 = vsub.f32 1.0, %v1735_v61 }
0x11fb   : > { %3852 = vset.pattern.permute.xlu1 %v4182_v49 }
0x11fc   : > { %v1737_v22 = vmul.f32 %v3976_v38, %v1736_v52 }
0x11fe   : > { %v1738_v60 = vadd.f32 %v3976_v38, %v1737_v22 }
0x1200   : > { %v1742_v9 = vsel %vm1741_vm2, %v3976_v38, %v1738_v60 }
0x1201   : > { %v1747_v28 = vsel %vm1744_vm3, %v1746_v3, %v1742_v9 }
0x1202   : > { %1751 = vperm.xlu2 %3848, %v1747_v28  }
0x120a   : > { %3851 = vset.pattern.permute.xlu2 %v4178_v30 }
0x1220   : > { %v1520_v21 = vpop.permute.xlu2 %1519 }
0x1221   : > { %v1530_v27 = vmul.f32 %v4853_v6, %v1520_v21 }
0x1223   : > { %v1534_v11 = vsub.f32 %v1468_v8, %v1530_v27 }
0x1225   : > { %1585 = vperm.xlu0 %3849, %v1534_v11  }
0x122d   : > { %3854 = vset.pattern.permute.xlu0 %v4185_v2 }
0x1241   : > { %v1327_v23 = vpop.permute.xlu1 %1326 }
0x1242   : > { %v1333_v54 = vmul.f32 %v4821_v4, %v1327_v23 }
0x1244   : > { %v1337_v1 = vsub.f32 %v1271_v39, %v1333_v54 }
0x1246   : > { %1392 = vperm.xlu2 %3851, %v1337_v1  }
0x124e   : > { %3853 = vset.pattern.permute.xlu2 %v4185_v2 }
0x125c   : > { %v1752_v37 = vpop.permute.xlu2 %1751 }
0x125d   : > { %v1754_v25 = vmul.f32 %v1752_v37, %v1731_v51 }
0x125f   : > { %v4913_v32 = vperm.slane %v1754_v25, 1 }
0x1265   : > { %v1779_v30 = vpop.permute.xlu1 %1778 }
0x1266   : > { %v1793_v38 = vmul.f32 %v4913_v32, %v1779_v30 }
0x1268   : > { %v1797_v61 = vsub.f32 %v1731_v51, %v1793_v38 }
0x126a   : > { %3977 = vrcp.f32 %v1797_v61  ;;  %v1834_v8 = vsub.f32 %v1797_v61, %v4581_v19  ;;  %v1811_v44 = vand.u32 2147483648, %v1797_v61  ;;  %v1809_v12 = vand.u32 2147483647, %v1797_v61 }
0x126b   : > { %vm1805_vm6 = vweird.f32 %v1797_v61 }
0x126c   : > { %1844 = vperm.xlu0 %3854, %v1834_v8   ;;  %v1812_v3 = vor.u32 1.1754944e-38, %v1811_v44  ;;  %vm1810_vm7 = vcmp.eq.f32.partialorder %v1809_v12, 8.507059e+37 }
0x1270   : > { %v3978_v4 = vpop.eup %3977 }
0x1271   : > { %v1801_v39 = vmul.f32 %v3978_v4, %v1797_v61  ;;  %vm1806_vm5 = vweird.f32 %v3978_v4 }
0x1272   : > { %vm1807_vm4 = vmor %vm1805_vm6, %vm1806_vm5 }
0x1273   : > { %v1802_v52 = vsub.f32 1.0, %v1801_v39 }
0x1274   : > { %3859 = vset.pattern.permute.xlu0 %v4184_v59 }
0x1275   : > { %v1803_v22 = vmul.f32 %v3978_v4, %v1802_v52 }
0x1277   : > { %v1804_v60 = vadd.f32 %v3978_v4, %v1803_v22 }
0x1279   : > { %v1808_v9 = vsel %vm1807_vm4, %v3978_v4, %v1804_v60 }
0x127a   : > { %v1813_v51 = vsel %vm1810_vm7, %v1812_v3, %v1808_v9 }
0x127b   : > { %1817 = vperm.xlu2 %3853, %v1813_v51  }
0x1283   : > { %3856 = vset.pattern.permute.xlu2 %v4183_v14 }
0x1297   : > { %v1586_v28 = vpop.permute.xlu0 %1585 }
0x1298   : > { %v1596_v21 = vmul.f32 %v4868_v15, %v1586_v28 }
0x129a   : > { %v1600_v27 = vsub.f32 %v1534_v11, %v1596_v21  ;;  %v4186_v21 = vmov 11  }
0x129c   : > { %1651 = vperm.xlu1 %3852, %v1600_v27  }
0x12a0   : > { %v1393_v23 = vpop.permute.xlu2 %1392 }
0x12a1   : > { %v1399_v54 = vmul.f32 %v4829_v56, %v1393_v23 }
0x12a3   : > { %v1403_v37 = vsub.f32 %v1337_v1, %v1399_v54 }
0x12a4   : > { %3855 = vset.pattern.permute.xlu1 %v4179_v13 }
0x12a5   : > { %1458 = vperm.xlu1 %3855, %v1403_v37  }
0x12ad   : > { %3857 = vset.pattern.permute.xlu1 %v4180_v26 }
0x12d5   : > { %v1818_v25 = vpop.permute.xlu2 %1817 }
0x12d6   : > { %v1820_v30 = vmul.f32 %v1818_v25, %v1797_v61  ;;  %v4187_v25 = vmov 12  }
0x12d8   : > { %v4923_v8 = vperm.slane %v1820_v30, 2 }
0x12de   : > { %v1845_v38 = vpop.permute.xlu0 %1844 }
0x12df   : > { %v1859_v4 = vmul.f32 %v4923_v8, %v1845_v38 }
0x12e1   : > { %v1863_v39 = vsub.f32 %v1797_v61, %v1859_v4 }
0x12e3   : > { %3979 = vrcp.f32 %v1863_v39  ;;  %v1877_v26 = vand.u32 2147483648, %v1863_v39  ;;  %vm1871_vm9 = vweird.f32 %v1863_v39  ;;  %v1875_v60 = vand.u32 2147483647, %v1863_v39 }
0x12e5   : > { %v1878_v51 = vor.u32 1.1754944e-38, %v1877_v26  ;;  %vm1876_vm11 = vcmp.eq.f32.partialorder %v1875_v60, 8.507059e+37 }
0x12e9   : > { %v3980_v11 = vpop.eup %3979 }
0x12ea   : > { %v1867_v52 = vmul.f32 %v3980_v11, %v1863_v39  ;;  %vm1872_vm8 = vweird.f32 %v3980_v11 }
0x12eb   : > { %vm1873_vm10 = vmor %vm1871_vm9, %vm1872_vm8 }
0x12ec   : > { %v1868_v44 = vsub.f32 1.0, %v1867_v52 }
0x12ee   : > { %v1869_v1 = vmul.f32 %v3980_v11, %v1868_v44 }
0x12f0   : > { %v1870_v12 = vadd.f32 %v3980_v11, %v1869_v1 }
0x12f2   : > { %v1874_v61 = vsel %vm1873_vm10, %v3980_v11, %v1870_v12 }
0x12f3   : > { %v1879_v23 = vsel %vm1876_vm11, %v1878_v51, %v1874_v61 }
0x130e   : > { %v1652_v22 = vpop.permute.xlu1 %1651 }
0x130f   : > { %v1662_v56 = vmul.f32 %v4893_v42, %v1652_v22 }
0x1311   : > { %v1666_v13 = vsub.f32 %v1600_v27, %v1662_v56  ;;  %v1900_v27 = vsub.f32 %v1863_v39, %v4597_v18 }
0x1313   : > { %1717 = vperm.xlu2 %3856, %v1666_v13  }
0x1317   : > { %v1459_v3 = vpop.permute.xlu1 %1458 }
0x1318   : > { %v1465_v9 = vmul.f32 %v4843_v47, %v1459_v3 }
0x131a   : > { %v1469_v28 = vsub.f32 %v1403_v37, %v1465_v9 }
0x131b   : > { %3858 = vset.pattern.permute.xlu2 %v4186_v21 }
0x131c   : > { %1883 = vperm.xlu2 %3858, %v1879_v23   ;;  %1524 = vperm.xlu1 %3857, %v1469_v28  }
0x1324   : > { %3860 = vset.pattern.permute.xlu1 %v4186_v21  ;;  %3861 = vset.pattern.permute.xlu2 %v4181_v50 }
0x1325   : > { %1910 = vperm.xlu1 %3860, %v1900_v27  }
0x132d   : > { %3862 = vset.pattern.permute.xlu1 %v4185_v2 }
0x136d   : > { %v1718_v47 = vpop.permute.xlu2 %1717 }
0x136e   : > { %v1728_v54 = vmul.f32 %v4903_v55, %v1718_v47 }
0x1370   : > { %v1732_v37 = vsub.f32 %v1666_v13, %v1728_v54 }
0x1372   : > { %1783 = vperm.xlu0 %3859, %v1732_v37  }
0x1376   : > { %v1884_v38 = vpop.permute.xlu2 %1883 }
0x1377   : > { %v1886_v52 = vmul.f32 %v1884_v38, %v1863_v39 }
0x1379   : > { %v4936_v44 = vperm.slane %v1886_v52, 3 }
0x137a   : > { %3864 = vset.pattern.permute.xlu0 %v4187_v25 }
0x138e   : > { %v1525_v30 = vpop.permute.xlu1 %1524 }
0x138f   : > { %v1531_v4 = vmul.f32 %v4853_v6, %v1525_v30 }
0x1391   : > { %v1535_v11 = vsub.f32 %v1469_v28, %v1531_v4 }
0x1393   : > { %1590 = vperm.xlu2 %3861, %v1535_v11  }
0x1397   : > { %v1911_v50 = vpop.permute.xlu1 %1910 }
0x1398   : > { %v1925_v22 = vmul.f32 %v4936_v44, %v1911_v50 }
0x139a   : > { %v1929_v56 = vsub.f32 %v1863_v39, %v1925_v22 }
0x139b   : > { %3863 = vset.pattern.permute.xlu2 %v4187_v25 }
0x139c   : > { %3981 = vrcp.f32 %v1929_v56  ;;  %v1966_v1 = vsub.f32 %v1929_v56, %v4607_v10  ;;  %v1943_v60 = vand.u32 2147483648, %v1929_v56  ;;  %v1941_v3 = vand.u32 2147483647, %v1929_v56 }
0x139d   : > { %vm1937_vm13 = vweird.f32 %v1929_v56 }
0x139e   : > { %1976 = vperm.xlu0 %3864, %v1966_v1   ;;  %v1944_v61 = vor.u32 1.1754944e-38, %v1943_v60  ;;  %vm1942_vm15 = vcmp.eq.f32.partialorder %v1941_v3, 8.507059e+37 }
0x13a2   : > { %v3982_v13 = vpop.eup %3981 }
0x13a3   : > { %v1933_v12 = vmul.f32 %v3982_v13, %v1929_v56  ;;  %vm1938_vm12 = vweird.f32 %v3982_v13 }
0x13a4   : > { %vm1939_vm14 = vmor %vm1937_vm13, %vm1938_vm12 }
0x13a5   : > { %v1934_v26 = vsub.f32 1.0, %v1933_v12 }
0x13a7   : > { %v1935_v6 = vmul.f32 %v3982_v13, %v1934_v26 }
0x13a9   : > { %v1936_v9 = vadd.f32 %v3982_v13, %v1935_v6 }
0x13ab   : > { %v1940_v51 = vsel %vm1939_vm14, %v3982_v13, %v1936_v9 }
0x13ac   : > { %v1945_v39 = vsel %vm1942_vm15, %v1944_v61, %v1940_v51 }
0x13ad   : > { %1949 = vperm.xlu2 %3863, %v1945_v39  }
0x13b5   : > { %3866 = vset.pattern.permute.xlu2 %v4186_v21 }
0x13e4   : > { %v1784_v28 = vpop.permute.xlu0 %1783 }
0x13e5   : > { %v1794_v23 = vmul.f32 %v4913_v32, %v1784_v28 }
0x13e7   : > { %v1798_v27 = vsub.f32 %v1732_v37, %v1794_v23  ;;  %v4188_v23 = vmov 13  }
0x13e9   : > { %1849 = vperm.xlu1 %3862, %v1798_v27  }
0x13ed   : > { %v1591_v47 = vpop.permute.xlu2 %1590 }
0x13ee   : > { %v1597_v54 = vmul.f32 %v4868_v15, %v1591_v47 }
0x13f0   : > { %v1601_v30 = vsub.f32 %v1535_v11, %v1597_v54 }
0x13f1   : > { %3865 = vset.pattern.permute.xlu1 %v4182_v49 }
0x13f2   : > { %1656 = vperm.xlu1 %3865, %v1601_v30  }
0x13fa   : > { %3867 = vset.pattern.permute.xlu1 %v4183_v14 }
0x1407   : > { %v1950_v38 = vpop.permute.xlu2 %1949 }
0x1408   : > { %v1952_v4 = vmul.f32 %v1950_v38, %v1929_v56 }
0x140a   : > { %v4946_v50 = vperm.slane %v1952_v4, 4 }
0x1410   : > { %v1977_v52 = vpop.permute.xlu0 %1976 }
0x1411   : > { %v1991_v22 = vmul.f32 %v4946_v50, %v1977_v52 }
0x1413   : > { %v1995_v1 = vsub.f32 %v1929_v56, %v1991_v22 }
0x1415   : > { %3983 = vrcp.f32 %v1995_v1  ;;  %v2009_v3 = vand.u32 2147483648, %v1995_v1  ;;  %vm2003_vm3 = vweird.f32 %v1995_v1  ;;  %v2007_v9 = vand.u32 2147483647, %v1995_v1 }
0x1417   : > { %v2010_v39 = vor.u32 1.1754944e-38, %v2009_v3  ;;  %vm2008_vm6 = vcmp.eq.f32.partialorder %v2007_v9, 8.507059e+37 }
0x141b   : > { %v3984_v37 = vpop.eup %3983 }
0x141c   : > { %v1999_v13 = vmul.f32 %v3984_v37, %v1995_v1  ;;  %vm2004_vm2 = vweird.f32 %v3984_v37 }
0x141d   : > { %vm2005_vm5 = vmor %vm2003_vm3, %vm2004_vm2 }
0x141e   : > { %v2000_v12 = vsub.f32 1.0, %v1999_v13 }
0x1420   : > { %v2001_v11 = vmul.f32 %v3984_v37, %v2000_v12 }
0x1422   : > { %v2002_v6 = vadd.f32 %v3984_v37, %v2001_v11 }
0x1424   : > { %v2006_v56 = vsel %vm2005_vm5, %v3984_v37, %v2002_v6 }
0x1425   : > { %v2011_v47 = vsel %vm2008_vm6, %v2010_v39, %v2006_v56 }
0x145b   : > { %v1850_v26 = vpop.permute.xlu1 %1849 }
0x145c   : > { %v1860_v15 = vmul.f32 %v4923_v8, %v1850_v26 }
0x145e   : > { %v1864_v60 = vsub.f32 %v1798_v27, %v1860_v15  ;;  %v2032_v27 = vsub.f32 %v1995_v1, %v4614_v58 }
0x1460   : > { %1915 = vperm.xlu2 %3866, %v1864_v60  }
0x1464   : > { %v1657_v61 = vpop.permute.xlu1 %1656 }
0x1465   : > { %v1663_v51 = vmul.f32 %v4893_v42, %v1657_v61 }
0x1467   : > { %v1667_v28 = vsub.f32 %v1601_v30, %v1663_v51  ;;  %v4189_v30 = vmov 14  }
0x1468   : > { %3868 = vset.pattern.permute.xlu2 %v4188_v23 }
0x1469   : > { %2015 = vperm.xlu2 %3868, %v2011_v47   ;;  %1722 = vperm.xlu1 %3867, %v1667_v28  }
0x1471   : > { %3869 = vset.pattern.permute.xlu1 %v4188_v23  ;;  %3870 = vset.pattern.permute.xlu2 %v4184_v59 }
0x1472   : > { %2042 = vperm.xlu1 %3869, %v2032_v27  }
0x147a   : > { %3872 = vset.pattern.permute.xlu1 %v4189_v30 }
0x14ba   : > { %v1916_v54 = vpop.permute.xlu2 %1915 }
0x14bb   : > { %v1926_v38 = vmul.f32 %v4936_v44, %v1916_v54 }
0x14bd   : > { %v1930_v4 = vsub.f32 %v1864_v60, %v1926_v38 }
0x14bf   : > { %1981 = vperm.xlu0 %3864, %v1930_v4  }
0x14c3   : > { %v2016_v22 = vpop.permute.xlu2 %2015 }
0x14c4   : > { %v2018_v12 = vmul.f32 %v2016_v22, %v1995_v1 }
0x14c6   : > { %v4959_v26 = vperm.slane %v2018_v12, 5 }
0x14c7   : > { %3871 = vset.pattern.permute.xlu0 %v4188_v23 }
0x14db   : > { %v1723_v52 = vpop.permute.xlu1 %1722 }
0x14dc   : > { %v1729_v37 = vmul.f32 %v4903_v55, %v1723_v52 }
0x14de   : > { %v1733_v13 = vsub.f32 %v1667_v28, %v1729_v37 }
0x14e0   : > { %1788 = vperm.xlu2 %3870, %v1733_v13  }
0x14e4   : > { %v2043_v15 = vpop.permute.xlu1 %2042 }
0x14e5   : > { %v2057_v11 = vmul.f32 %v4959_v26, %v2043_v15  ;;  %v4190_v15 = vmov 15  }
0x14e7   : > { %v2061_v6 = vsub.f32 %v1995_v1, %v2057_v11 }
0x14e8   : > { %3873 = vset.pattern.permute.xlu2 %v4189_v30 }
0x14e9   : > { %3985 = vrcp.f32 %v2061_v6  ;;  %v2098_v60 = vsub.f32 %v2061_v6, %v4619_v35  ;;  %v2075_v51 = vand.u32 2147483648, %v2061_v6  ;;  %v2073_v39 = vand.u32 2147483647, %v2061_v6 }
0x14ea   : > { %vm2069_vm7 = vweird.f32 %v2061_v6 }
0x14eb   : > { %2108 = vperm.xlu2 %3873, %v2098_v60   ;;  %v2076_v47 = vor.u32 1.1754944e-38, %v2075_v51  ;;  %vm2074_vm9 = vcmp.eq.f32.partialorder %v2073_v39, 8.507059e+37 }
0x14ef   : > { %v3986_v3 = vpop.eup %3985 }
0x14f0   : > { %v2065_v9 = vmul.f32 %v3986_v3, %v2061_v6  ;;  %vm2070_vm4 = vweird.f32 %v3986_v3 }
0x14f1   : > { %vm2071_vm8 = vmor %vm2069_vm7, %vm2070_vm4 }
0x14f2   : > { %v2066_v61 = vsub.f32 1.0, %v2065_v9 }
0x14f4   : > { %v2067_v56 = vmul.f32 %v3986_v3, %v2066_v61 }
0x14f6   : > { %v2068_v28 = vadd.f32 %v3986_v3, %v2067_v56 }
0x14f8   : > { %v2072_v27 = vsel %vm2071_vm8, %v3986_v3, %v2068_v28 }
0x14f9   : > { %v2077_v1 = vsel %vm2074_vm9, %v2076_v47, %v2072_v27 }
0x14fa   : > { %2081 = vperm.xlu1 %3872, %v2077_v1  }
0x1502   : > { %3874 = vset.pattern.permute.xlu1 %v4185_v2 }
0x1531   : > { %v1982_v54 = vpop.permute.xlu0 %1981 }
0x1532   : > { %v1992_v38 = vmul.f32 %v4946_v50, %v1982_v54 }
0x1534   : > { %v1996_v52 = vsub.f32 %v1930_v4, %v1992_v38 }
0x1536   : > { %2047 = vperm.xlu0 %3871, %v1996_v52  }
0x153a   : > { %v1789_v22 = vpop.permute.xlu2 %1788 }
0x153b   : > { %v1795_v37 = vmul.f32 %v4913_v32, %v1789_v22 }
0x153d   : > { %v1799_v12 = vsub.f32 %v1733_v13, %v1795_v37 }
0x153e   : > { %3875 = vset.pattern.permute.xlu0 %v4186_v21 }
0x153f   : > { %1854 = vperm.xlu1 %3874, %v1799_v12  }
0x1545   : > { %v2109_v9 = vpop.permute.xlu2 %2108 }
0x1547   : > { %3877 = vset.pattern.permute.xlu1 %v4190_v15 }
0x156c   : > { %v2082_v11 = vpop.permute.xlu1 %2081 }
0x156d   : > { %v2084_v60 = vmul.f32 %v2082_v11, %v2061_v6 }
0x156f   : > { %v4969_v3 = vperm.slane %v2084_v60, 6 }
0x1571   : > { %v2123_v61 = vmul.f32 %v4969_v3, %v2109_v9 }
0x1573   : > { %v4972_v51 = vsub.f32 %v2061_v6, %v2123_v61  ;;  %v1635_v61 = vsub.f32 %v4871_v0, %v4560_v29 }
0x1575   : > { %3987 = vrcp.f32 %v4972_v51  ;;  %v2141_v39 = vand.u32 2147483648, %v4972_v51  ;;  %v2139_v47 = vand.u32 2147483647, %v4972_v51  ;;  %vm2135_vm11 = vweird.f32 %v4972_v51 }
0x1577   : > { %v2142_v1 = vor.u32 1.1754944e-38, %v2141_v39  ;;  %vm2140_vm13 = vcmp.eq.f32.partialorder %v2139_v47, 8.507059e+37 }
0x157b   : > { %v3988_v4 = vpop.eup %3987 }
0x157c   : > { %v2131_v13 = vmul.f32 %v3988_v4, %v4972_v51  ;;  %vm2136_vm10 = vweird.f32 %v3988_v4 }
0x157d   : > { %vm2137_vm12 = vmor %vm2135_vm11, %vm2136_vm10 }
0x157e   : > { %v2132_v56 = vsub.f32 1.0, %v2131_v13 }
0x1580   : > { %v2133_v28 = vmul.f32 %v3988_v4, %v2132_v56 }
0x1582   : > { %v2134_v27 = vadd.f32 %v3988_v4, %v2133_v28 }
0x1584   : > { %v2138_v54 = vsel %vm2137_vm12, %v3988_v4, %v2134_v27  ;;  %v4191_v27 = vmov 16  }
0x1585   : > { %v2143_v6 = vsel %vm2140_vm13, %v2142_v1, %v2138_v54  ;;  %v4994_v54 = vadd.s32 16, %v4297_v7 }
0x1586   : > { %2147 = vperm.xlu1 %3877, %v2143_v6  }
0x1587   : > { %vm2219_vm14 = vcmp.eq.s32.totalorder %v4994_v54, 16  ;;  %vm2285_vm6 = vcmp.eq.s32.totalorder %v4994_v54, 17  ;;  %vm2351_vm10 = vcmp.eq.s32.totalorder %v4994_v54, 18 }
0x15a8   : > { %v2048_v38 = vpop.permute.xlu0 %2047 }
0x15a9   : > { %v2058_v22 = vmul.f32 %v4959_v26, %v2048_v38  ;;  %v4192_v38 = vmov 0.0  }
0x15ab   : > { %v2062_v37 = vsub.f32 %v1996_v52, %v2058_v22  ;;  %v3555_v22 = vsel %vm2219_vm14, 1.0, %v4192_v38 }
0x15ad   : > { %2113 = vperm.xlu2 %3873, %v2062_v37  }
0x15b1   : > { %v1855_v11 = vpop.permute.xlu1 %1854 }
0x15b2   : > { %v1861_v60 = vmul.f32 %v4923_v8, %v1855_v11 }
0x15b4   : > { %v1865_v9 = vsub.f32 %v1799_v12, %v1861_v60 }
0x15b5   : > { %3876 = vset.pattern.permute.xlu2 %v4182_v49 }
0x15b6   : > { %1641 = vperm.xlu2 %3876, %v1635_v61   ;;  %1920 = vperm.xlu0 %3875, %v1865_v9  }
0x15be   : > { %3879 = vset.pattern.permute.xlu0 %v4183_v14  ;;  %3878 = vset.pattern.permute.xlu2 %v4187_v25 }
0x15f8   : > { %v2148_v14 = vpop.permute.xlu1 %2147 }
0x15f9   : > { %v2150_v1 = vmul.f32 %v2148_v14, %v4972_v51 }
0x1607   : > { %v2114_v4 = vpop.permute.xlu2 %2113 }
0x1608   : > { %v2124_v13 = vmul.f32 %v4969_v3, %v2114_v4 }
0x160a   : > { %v2128_v52 = vsub.f32 %v2062_v37, %v2124_v13 }
0x160c   : > { %2179 = vperm.xlu1 %3877, %v2128_v52  }
0x1610   : > { %v1642_v56 = vpop.permute.xlu2 %1641 }
0x1611   : > { %v1660_v39 = vmul.f32 %v4893_v42, %v1642_v56  ;;  %v4996_v42 = vperm.slane %v2150_v1, 7 }
0x1613   : > { %v1664_v12 = vsub.f32 %v4871_v0, %v1660_v39 }
0x1614   : > { %3880 = vset.pattern.permute.xlu1 %v4191_v27 }
0x1615   : > { %1707 = vperm.xlu0 %3879, %v1664_v12  }
0x1628   : > { %v1921_v28 = vpop.permute.xlu0 %1920 }
0x1629   : > { %v1927_v49 = vmul.f32 %v4936_v44, %v1921_v28 }
0x162b   : > { %v1931_v47 = vsub.f32 %v1865_v9, %v1927_v49 }
0x162d   : > { %1986 = vperm.xlu2 %3878, %v1931_v47  }
0x1635   : > { %3881 = vset.pattern.permute.xlu2 %v4191_v27 }
0x167e   : > { %v2180_v0 = vpop.permute.xlu1 %2179 }
0x167f   : > { %v2190_v6 = vmul.f32 %v4996_v42, %v2180_v0 }
0x1681   : > { %v2194_v37 = vsub.f32 %v2128_v52, %v2190_v6 }
0x1683   : > { %3989 = vrcp.f32 %v2194_v37  ;;  %v2231_v11 = vsub.f32 %v2194_v37, %v3555_v22  ;;  %v2207_v39 = vand.u32 2147483648, %v2194_v37  ;;  %v2205_v49 = vand.u32 2147483647, %v2194_v37 }
0x1684   : > { %vm2201_vm2 = vweird.f32 %v2194_v37 }
0x1685   : > { %2245 = vperm.xlu2 %3881, %v2231_v11   ;;  %v2208_v52 = vor.u32 1.1754944e-38, %v2207_v39  ;;  %vm2206_vm5 = vcmp.eq.f32.partialorder %v2205_v49, 8.507059e+37 }
0x1687   : > { %v1708_v60 = vpop.permute.xlu0 %1707  ;;  %v1987_v6 = vpop.permute.xlu2 %1986 }
0x1688   : > { %v1726_v9 = vmul.f32 %v4903_v55, %v1708_v60  ;;  %v1993_v55 = vmul.f32 %v4946_v50, %v1987_v6 }
0x1689   : > { %v3990_v61 = vpop.eup %3989 }
0x168a   : > { %v2197_v4 = vmul.f32 %v3990_v61, %v2194_v37  ;;  %v1730_v13 = vsub.f32 %v1664_v12, %v1726_v9  ;;  %vm2202_vm15 = vweird.f32 %v3990_v61  ;;  %v1997_v12 = vsub.f32 %v1931_v47, %v1993_v55 }
0x168b   : > { %vm2203_vm3 = vmor %vm2201_vm2, %vm2202_vm15  ;;  %v4193_v9 = vmov 17  }
0x168c   : > { %v2198_v56 = vsub.f32 1.0, %v2197_v4  ;;  %3884 = vset.pattern.permute.xlu0 %v4193_v9 }
0x168d   : > { %3883 = vset.pattern.permute.xlu2 %v4184_v59 }
0x168e   : > { %1773 = vperm.xlu2 %3883, %v1730_v13   ;;  %v2199_v28 = vmul.f32 %v3990_v61, %v2198_v56 }
0x1690   : > { %v2200_v14 = vadd.f32 %v3990_v61, %v2199_v28 }
0x1692   : > { %v2204_v1 = vsel %vm2203_vm3, %v3990_v61, %v2200_v14  ;;  %v3556_v14 = vsel %vm2285_vm6, 1.0, %v4192_v38  ;;  %vm2417_vm6 = vcmp.eq.s32.totalorder %v4994_v54, 19 }
0x1693   : > { %v2209_v0 = vsel %vm2206_vm5, %v2208_v52, %v2204_v1 }
0x1694   : > { %2213 = vperm.xlu1 %3880, %v2209_v0  }
0x1696   : > { %3886 = vset.pattern.permute.xlu2 %v4185_v2 }
0x169c   : > { %3882 = vset.pattern.permute.xlu1 %v4188_v23 }
0x169d   : > { %2052 = vperm.xlu1 %3882, %v1997_v12  }
0x16a5   : > { %3885 = vset.pattern.permute.xlu1 %v4189_v30 }
0x16df   : > { %v2246_v59 = vpop.permute.xlu2 %2245 }
0x16e8   : > { %v1774_v22 = vpop.permute.xlu2 %1773 }
0x16e9   : > { %v1792_v11 = vmul.f32 %v4913_v32, %v1774_v22 }
0x16eb   : > { %v1796_v60 = vsub.f32 %v1730_v13, %v1792_v11 }
0x16ed   : > { %1839 = vperm.xlu2 %3886, %v1796_v60  }
0x16f5   : > { %3888 = vset.pattern.permute.xlu2 %v4190_v15 }
0x1706   : > { %v2214_v2 = vpop.permute.xlu1 %2213 }
0x1707   : > { %v2216_v61 = vmul.f32 %v2214_v2, %v2194_v37 }
0x1709   : > { %v5010_v4 = vperm.slane %v2216_v61, 0 }
0x170b   : > { %v2256_v47 = vmul.f32 %v5010_v4, %v2246_v59 }
0x170d   : > { %v2260_v56 = vsub.f32 %v2194_v37, %v2256_v47  ;;  %v4194_v47 = vmov 18  }
0x170f   : > { %3991 = vrcp.f32 %v2260_v56  ;;  %v2053_v39 = vpop.permute.xlu1 %2052  ;;  %v2273_v1 = vand.u32 2147483648, %v2260_v56  ;;  %v2271_v6 = vand.u32 2147483647, %v2260_v56  ;;  %v2297_v55 = vsub.f32 %v2260_v56, %v3556_v14 }
0x1710   : > { %v2059_v28 = vmul.f32 %v4959_v26, %v2053_v39  ;;  %vm2267_vm7 = vweird.f32 %v2260_v56 }
0x1711   : > { %vm2272_vm9 = vcmp.eq.f32.partialorder %v2271_v6, 8.507059e+37 }
0x1712   : > { %v2063_v49 = vsub.f32 %v1997_v12, %v2059_v28  ;;  %v2274_v12 = vor.u32 1.1754944e-38, %v2273_v1 }
0x1714   : > { %2118 = vperm.xlu1 %3885, %v2063_v49  }
0x1715   : > { %v3992_v32 = vpop.eup %3991 }
0x1716   : > { %v2263_v13 = vmul.f32 %v3992_v32, %v2260_v56  ;;  %vm2268_vm4 = vweird.f32 %v3992_v32 }
0x1717   : > { %vm2269_vm8 = vmor %vm2267_vm7, %vm2268_vm4  ;;  %vm2483_vm4 = vcmp.eq.s32.totalorder %v4994_v54, 20 }
0x1718   : > { %v2264_v52 = vsub.f32 1.0, %v2263_v13 }
0x171a   : > { %v2265_v0 = vmul.f32 %v3992_v32, %v2264_v52 }
0x171c   : > { %3887 = vset.pattern.permute.xlu1 %v4193_v9  ;;  %v2266_v37 = vadd.f32 %v3992_v32, %v2265_v0 }
0x171d   : > { %2311 = vperm.xlu1 %3887, %v2297_v55  }
0x171e   : > { %v2270_v59 = vsel %vm2269_vm8, %v3992_v32, %v2266_v37 }
0x171f   : > { %v2275_v22 = vsel %vm2272_vm9, %v2274_v12, %v2270_v59 }
0x1720   : > { %2279 = vperm.xlu0 %3884, %v2275_v22  }
0x1725   : > { %3890 = vset.pattern.permute.xlu1 %v4194_v47 }
0x1728   : > { %3889 = vset.pattern.permute.xlu0 %v4186_v21 }
0x1747   : > { %v1840_v11 = vpop.permute.xlu2 %1839 }
0x1748   : > { %v1858_v2 = vmul.f32 %v4923_v8, %v1840_v11 }
0x174a   : > { %v1862_v61 = vsub.f32 %v1796_v60, %v1858_v2  ;;  %v3557_v60 = vsel %vm2351_vm10, 1.0, %v4192_v38 }
0x174c   : > { %1905 = vperm.xlu0 %3889, %v1862_v61  }
0x1786   : > { %v2119_v39 = vpop.permute.xlu1 %2118 }
0x1787   : > { %v2125_v28 = vmul.f32 %v4969_v3, %v2119_v39 }
0x1789   : > { %v2129_v13 = vsub.f32 %v2063_v49, %v2125_v28 }
0x178b   : > { %2184 = vperm.xlu2 %3888, %v2129_v13  }
0x178f   : > { %v2312_v21 = vpop.permute.xlu1 %2311 }
0x1792   : > { %v2280_v14 = vpop.permute.xlu0 %2279 }
0x1793   : > { %v2282_v32 = vmul.f32 %v2280_v14, %v2260_v56  ;;  %3891 = vset.pattern.permute.xlu2 %v4194_v47 }
0x1795   : > { %v5022_v52 = vperm.slane %v2282_v32, 1 }
0x1797   : > { %v2322_v8 = vmul.f32 %v5022_v52, %v2312_v21 }
0x1799   : > { %v2326_v1 = vsub.f32 %v2260_v56, %v2322_v8  ;;  %v4195_v8 = vmov 19  }
0x179a   : > { %3894 = vset.pattern.permute.xlu0 %v4195_v8 }
0x179b   : > { %3993 = vrcp.f32 %v2326_v1  ;;  %v2363_v0 = vsub.f32 %v2326_v1, %v3557_v60  ;;  %v2339_v37 = vand.u32 2147483648, %v2326_v1  ;;  %v2337_v59 = vand.u32 2147483647, %v2326_v1 }
0x179c   : > { %vm2333_vm12 = vweird.f32 %v2326_v1 }
0x179d   : > { %2377 = vperm.xlu2 %3891, %v2363_v0   ;;  %v2340_v11 = vor.u32 1.1754944e-38, %v2339_v37  ;;  %vm2338_vm14 = vcmp.eq.f32.partialorder %v2337_v59, 8.507059e+37 }
0x17a1   : > { %v3994_v6 = vpop.eup %3993 }
0x17a2   : > { %v2329_v49 = vmul.f32 %v3994_v6, %v2326_v1  ;;  %vm2334_vm11 = vweird.f32 %v3994_v6 }
0x17a3   : > { %vm2335_vm13 = vmor %vm2333_vm12, %vm2334_vm11  ;;  %vm2549_vm11 = vcmp.eq.s32.totalorder %v4994_v54, 21 }
0x17a4   : > { %v2330_v55 = vsub.f32 1.0, %v2329_v49 }
0x17a5   : > { %3893 = vset.pattern.permute.xlu2 %v4187_v25 }
0x17a6   : > { %v2331_v12 = vmul.f32 %v3994_v6, %v2330_v55 }
0x17a8   : > { %v2332_v22 = vadd.f32 %v3994_v6, %v2331_v12 }
0x17aa   : > { %v2336_v2 = vsel %vm2335_vm13, %v3994_v6, %v2332_v22 }
0x17ab   : > { %v2341_v39 = vsel %vm2338_vm14, %v2340_v11, %v2336_v2 }
0x17ac   : > { %2345 = vperm.xlu1 %3890, %v2341_v39  }
0x17b4   : > { %3892 = vset.pattern.permute.xlu1 %v4191_v27 }
0x17be   : > { %v1906_v56 = vpop.permute.xlu0 %1905 }
0x17bf   : > { %v1924_v28 = vmul.f32 %v4936_v44, %v1906_v56 }
0x17c1   : > { %v1928_v14 = vsub.f32 %v1862_v61, %v1924_v28 }
0x17c3   : > { %1971 = vperm.xlu2 %3893, %v1928_v14  }
0x17cb   : > { %3896 = vset.pattern.permute.xlu2 %v4188_v23 }
0x17e5   : > { %v2185_v25 = vpop.permute.xlu2 %2184 }
0x17e6   : > { %v2191_v32 = vmul.f32 %v4996_v42, %v2185_v25 }
0x17e8   : > { %v2195_v21 = vsub.f32 %v2129_v13, %v2191_v32  ;;  %v3558_v32 = vsel %vm2417_vm6, 1.0, %v4192_v38 }
0x17ea   : > { %2250 = vperm.xlu1 %3892, %v2195_v21  }
0x17f2   : > { %3895 = vset.pattern.permute.xlu1 %v4193_v9 }
0x17f7   : > { %v2378_v60 = vpop.permute.xlu2 %2377 }
0x181d   : > { %v1972_v0 = vpop.permute.xlu2 %1971 }
0x181e   : > { %v1990_v6 = vmul.f32 %v4946_v50, %v1972_v0  ;;  %v2346_v49 = vpop.permute.xlu1 %2345 }
0x181f   : > { %v2348_v44 = vmul.f32 %v2346_v49, %v2326_v1 }
0x1820   : > { %v1994_v61 = vsub.f32 %v1928_v14, %v1990_v6 }
0x1821   : > { %v5035_v55 = vperm.slane %v2348_v44, 2 }
0x1822   : > { %2037 = vperm.xlu2 %3896, %v1994_v61  }
0x1823   : > { %v2388_v23 = vmul.f32 %v5035_v55, %v2378_v60 }
0x1825   : > { %v2392_v37 = vsub.f32 %v2326_v1, %v2388_v23 }
0x1827   : > { %3995 = vrcp.f32 %v2392_v37  ;;  %v2405_v22 = vand.u32 2147483648, %v2392_v37  ;;  %v2403_v2 = vand.u32 2147483647, %v2392_v37  ;;  %vm2399_vm2 = vweird.f32 %v2392_v37 }
0x1828   : > { %v2429_v60 = vsub.f32 %v2392_v37, %v3558_v32 }
0x1829   : > { %v2406_v39 = vor.u32 1.1754944e-38, %v2405_v22  ;;  %vm2404_vm5 = vcmp.eq.f32.partialorder %v2403_v2, 8.507059e+37 }
0x182a   : > { %3898 = vset.pattern.permute.xlu2 %v4194_v47 }
0x182d   : > { %v3996_v13 = vpop.eup %3995 }
0x182e   : > { %v2395_v12 = vmul.f32 %v3996_v13, %v2392_v37  ;;  %vm2400_vm15 = vweird.f32 %v3996_v13 }
0x182f   : > { %vm2401_vm3 = vmor %vm2399_vm2, %vm2400_vm15  ;;  %vm2615_vm2 = vcmp.eq.s32.totalorder %v4994_v54, 22 }
0x1830   : > { %v2396_v59 = vsub.f32 1.0, %v2395_v12 }
0x1832   : > { %v2397_v11 = vmul.f32 %v3996_v13, %v2396_v59 }
0x1834   : > { %v2398_v50 = vadd.f32 %v3996_v13, %v2397_v11 }
0x1836   : > { %v2402_v56 = vsel %vm2401_vm3, %v3996_v13, %v2398_v50 }
0x1837   : > { %v2407_v28 = vsel %vm2404_vm5, %v2406_v39, %v2402_v56 }
0x1838   : > { %2411 = vperm.xlu0 %3894, %v2407_v28  }
0x1840   : > { %3899 = vset.pattern.permute.xlu0 %v4189_v30  ;;  %v4196_v30 = vmov 20  }
0x185c   : > { %v2251_v1 = vpop.permute.xlu1 %2250 }
0x185d   : > { %v2257_v14 = vmul.f32 %v5010_v4, %v2251_v1 }
0x185f   : > { %v2261_v25 = vsub.f32 %v2195_v21, %v2257_v14 }
0x1861   : > { %2316 = vperm.xlu1 %3895, %v2261_v25  }
0x1869   : > { %3897 = vset.pattern.permute.xlu1 %v4195_v8 }
0x186a   : > { %2443 = vperm.xlu1 %3897, %v2429_v60  }
0x1872   : > { %3900 = vset.pattern.permute.xlu1 %v4196_v30 }
0x187c   : > { %v2038_v0 = vpop.permute.xlu2 %2037 }
0x187d   : > { %v2056_v6 = vmul.f32 %v4959_v26, %v2038_v0 }
0x187f   : > { %v2060_v49 = vsub.f32 %v1994_v61, %v2056_v6  ;;  %v3559_v61 = vsel %vm2483_vm4, 1.0, %v4192_v38 }
0x1881   : > { %2103 = vperm.xlu0 %3899, %v2060_v49  }
0x1889   : > { %3904 = vset.pattern.permute.xlu0 %v4190_v15 }
0x18aa   : > { %v2412_v44 = vpop.permute.xlu0 %2411 }
0x18ab   : > { %v2414_v12 = vmul.f32 %v2412_v44, %v2392_v37  ;;  %v2164_v44 = vsub.f32 %v4972_v51, %v4624_v43 }
0x18ad   : > { %v5048_v59 = vperm.slane %v2414_v12, 3 }
0x18d3   : > { %v2317_v21 = vpop.permute.xlu1 %2316 }
0x18d4   : > { %v2323_v23 = vmul.f32 %v5022_v52, %v2317_v21 }
0x18d6   : > { %v2327_v13 = vsub.f32 %v2261_v25, %v2323_v23 }
0x18d8   : > { %2382 = vperm.xlu2 %3898, %v2327_v13  }
0x18dc   : > { %v2444_v22 = vpop.permute.xlu1 %2443 }
0x18dd   : > { %v2454_v26 = vmul.f32 %v5048_v59, %v2444_v22 }
0x18df   : > { %v2458_v11 = vsub.f32 %v2392_v37, %v2454_v26  ;;  %v4197_v26 = vmov 21  }
0x18e0   : > { %3901 = vset.pattern.permute.xlu2 %v4196_v30 }
0x18e1   : > { %3997 = vrcp.f32 %v2458_v11  ;;  %v2495_v2 = vsub.f32 %v2458_v11, %v3559_v61  ;;  %v2471_v28 = vand.u32 2147483648, %v2458_v11  ;;  %v2469_v14 = vand.u32 2147483647, %v2458_v11 }
0x18e2   : > { %vm2465_vm8 = vweird.f32 %v2458_v11 }
0x18e3   : > { %2509 = vperm.xlu2 %3901, %v2495_v2   ;;  %v2472_v32 = vor.u32 1.1754944e-38, %v2471_v28  ;;  %vm2470_vm10 = vcmp.eq.f32.partialorder %v2469_v14, 8.507059e+37 }
0x18e7   : > { %v3998_v50 = vpop.eup %3997 }
0x18e8   : > { %v2461_v39 = vmul.f32 %v3998_v50, %v2458_v11  ;;  %vm2466_vm7 = vweird.f32 %v3998_v50 }
0x18e9   : > { %vm2467_vm9 = vmor %vm2465_vm8, %vm2466_vm7 }
0x18ea   : > { %v2462_v56 = vsub.f32 1.0, %v2461_v39 }
0x18eb   : > { %3903 = vset.pattern.permute.xlu2 %v4195_v8 }
0x18ec   : > { %v2463_v1 = vmul.f32 %v3998_v50, %v2462_v56 }
0x18ee   : > { %v2464_v25 = vadd.f32 %v3998_v50, %v2463_v1 }
0x18f0   : > { %v2468_v60 = vsel %vm2467_vm9, %v3998_v50, %v2464_v25 }
0x18f1   : > { %v2473_v37 = vsel %vm2470_vm10, %v2472_v32, %v2468_v60  ;;  %v3560_v32 = vsel %vm2549_vm11, 1.0, %v4192_v38 }
0x18f2   : > { %2477 = vperm.xlu1 %3900, %v2473_v37  }
0x18f3   : > { %v2104_v0 = vpop.permute.xlu0 %2103 }
0x18f4   : > { %v2122_v6 = vmul.f32 %v4969_v3, %v2104_v0 }
0x18f6   : > { %v2126_v21 = vsub.f32 %v2060_v49, %v2122_v6 }
0x18f8   : > { %2169 = vperm.xlu0 %3904, %v2126_v21  }
0x18fa   : > { %3902 = vset.pattern.permute.xlu1 %v4190_v15 }
0x18fb   : > { %2174 = vperm.xlu1 %3902, %v2164_v44  }
0x1900   : > { %3909 = vset.pattern.permute.xlu0 %v4191_v27 }
0x1903   : > { %3906 = vset.pattern.permute.xlu1 %v4197_v26 }
0x1932   : > { %v2383_v23 = vpop.permute.xlu2 %2382 }
0x1933   : > { %v2389_v12 = vmul.f32 %v5035_v55, %v2383_v23 }
0x1935   : > { %v2393_v22 = vsub.f32 %v2327_v13, %v2389_v12 }
0x1937   : > { %2448 = vperm.xlu2 %3903, %v2393_v22  }
0x193d   : > { %v2510_v2 = vpop.permute.xlu2 %2509 }
0x193f   : > { %3905 = vset.pattern.permute.xlu2 %v4191_v27 }
0x1964   : > { %v2478_v3 = vpop.permute.xlu1 %2477 }
0x1965   : > { %v2480_v49 = vmul.f32 %v2478_v3, %v2458_v11 }
0x1967   : > { %v5063_v61 = vperm.slane %v2480_v49, 4 }
0x1969   : > { %v2520_v15 = vmul.f32 %v5063_v61, %v2510_v2 }
0x196a   : > { %v2170_v50 = vpop.permute.xlu0 %2169 }
0x196b   : > { %v2524_v39 = vsub.f32 %v2458_v11, %v2520_v15  ;;  %v2188_v56 = vmul.f32 %v4996_v42, %v2170_v50  ;;  %v4198_v50 = vmov 22  }
0x196d   : > { %3999 = vrcp.f32 %v2524_v39  ;;  %v2192_v28 = vsub.f32 %v2126_v21, %v2188_v56  ;;  %v2175_v13 = vpop.permute.xlu1 %2174  ;;  %v2537_v37 = vand.u32 2147483648, %v2524_v39  ;;  %v2535_v0 = vand.u32 2147483647, %v2524_v39 }
0x196e   : > { %v2189_v1 = vmul.f32 %v4996_v42, %v2175_v13  ;;  %v2561_v6 = vsub.f32 %v2524_v39, %v3560_v32  ;;  %vm2531_vm13 = vweird.f32 %v2524_v39  ;;  %v3561_v32 = vsel %vm2615_vm2, 1.0, %v4192_v38 }
0x196f   : > { %2235 = vperm.xlu0 %3909, %v2192_v28   ;;  %vm2536_vm15 = vcmp.eq.f32.partialorder %v2535_v0, 8.507059e+37 }
0x1970   : > { %v2193_v27 = vsub.f32 %v4972_v51, %v2189_v1  ;;  %v2538_v51 = vor.u32 1.1754944e-38, %v2537_v37 }
0x1972   : > { %2240 = vperm.xlu2 %3905, %v2193_v27  }
0x1973   : > { %v4000_v14 = vpop.eup %3999 }
0x1974   : > { %v2527_v25 = vmul.f32 %v4000_v14, %v2524_v39  ;;  %vm2532_vm12 = vweird.f32 %v4000_v14 }
0x1975   : > { %vm2533_vm14 = vmor %vm2531_vm13, %vm2532_vm12 }
0x1976   : > { %v2528_v60 = vsub.f32 1.0, %v2527_v25 }
0x1977   : > { %3912 = vset.pattern.permute.xlu0 %v4198_v50 }
0x1978   : > { %v2529_v11 = vmul.f32 %v4000_v14, %v2528_v60 }
0x197a   : > { %3908 = vset.pattern.permute.xlu2 %v4197_v26  ;;  %v2530_v21 = vadd.f32 %v4000_v14, %v2529_v11 }
0x197b   : > { %2575 = vperm.xlu2 %3908, %v2561_v6  }
0x197c   : > { %v2534_v42 = vsel %vm2533_vm14, %v4000_v14, %v2530_v21 }
0x197d   : > { %v2539_v44 = vsel %vm2536_vm15, %v2538_v51, %v2534_v42 }
0x197e   : > { %2543 = vperm.xlu1 %3906, %v2539_v44  }
0x1986   : > { %3907 = vset.pattern.permute.xlu1 %v4196_v30 }
0x1991   : > { %v2449_v23 = vpop.permute.xlu2 %2448 }
0x1992   : > { %v2455_v12 = vmul.f32 %v5048_v59, %v2449_v23 }
0x1994   : > { %v2459_v3 = vsub.f32 %v2393_v22, %v2455_v12 }
0x1996   : > { %2514 = vperm.xlu1 %3907, %v2459_v3  }
0x199e   : > { %3910 = vset.pattern.permute.xlu1 %v4193_v9 }
0x19cc   : > { %v2241_v49 = vpop.permute.xlu2 %2240 }
0x19cd   : > { %v2255_v2 = vmul.f32 %v5010_v4, %v2241_v49 }
0x19cf   : > { %v2259_v15 = vsub.f32 %v2193_v27, %v2255_v2 }
0x19d1   : > { %2306 = vperm.xlu1 %3910, %v2259_v15  }
0x19d5   : > { %v2576_v9 = vpop.permute.xlu2 %2575 }
0x19e1   : > { %v2236_v56 = vpop.permute.xlu0 %2235 }
0x19e2   : > { %v2254_v13 = vmul.f32 %v5010_v4, %v2236_v56 }
0x19e4   : > { %v2258_v1 = vsub.f32 %v2192_v28, %v2254_v13 }
0x19e6   : > { %2301 = vperm.xlu1 %3910, %v2258_v1  }
0x19ee   : > { %3913 = vset.pattern.permute.xlu1 %v4194_v47 }
0x19f0   : > { %v2544_v14 = vpop.permute.xlu1 %2543 }
0x19f1   : > { %v2546_v22 = vmul.f32 %v2544_v14, %v2524_v39 }
0x19f3   : > { %v5079_v25 = vperm.slane %v2546_v22, 5  ;;  %v4199_v22 = vmov 23  }
0x19f5   : > { %v2586_v27 = vmul.f32 %v5079_v25, %v2576_v9 }
0x19f7   : > { %v2590_v60 = vsub.f32 %v2524_v39, %v2586_v27 }
0x19f9   : > { %4001 = vrcp.f32 %v2590_v60  ;;  %v2627_v37 = vsub.f32 %v2590_v60, %v3561_v32  ;;  %v2603_v42 = vand.u32 2147483648, %v2590_v60  ;;  %vm2597_vm5 = vweird.f32 %v2590_v60 }
0x19fa   : > { %v2601_v44 = vand.u32 2147483647, %v2590_v60 }
0x19fb   : > { %2641 = vperm.xlu0 %3912, %v2627_v37   ;;  %v2604_v23 = vor.u32 1.1754944e-38, %v2603_v42 }
0x19fc   : > { %vm2602_vm4 = vcmp.eq.f32.partialorder %v2601_v44, 8.507059e+37 }
0x19ff   : > { %v4002_v4 = vpop.eup %4001 }
0x1a00   : > { %v2593_v28 = vmul.f32 %v4002_v4, %v2590_v60  ;;  %vm2598_vm3 = vweird.f32 %v4002_v4 }
0x1a01   : > { %vm2599_vm6 = vmor %vm2597_vm5, %vm2598_vm3 }
0x1a02   : > { %v2594_v47 = vsub.f32 1.0, %v2593_v28 }
0x1a03   : > { %3914 = vset.pattern.permute.xlu0 %v4195_v8 }
0x1a04   : > { %v2595_v6 = vmul.f32 %v4002_v4, %v2594_v47 }
0x1a06   : > { %v2596_v51 = vadd.f32 %v4002_v4, %v2595_v6 }
0x1a08   : > { %v2515_v11 = vpop.permute.xlu1 %2514  ;;  %v2600_v39 = vsel %vm2599_vm6, %v4002_v4, %v2596_v51 }
0x1a09   : > { %v2521_v0 = vmul.f32 %v5063_v61, %v2515_v11  ;;  %v2605_v12 = vsel %vm2602_vm4, %v2604_v23, %v2600_v39 }
0x1a0b   : > { %v2525_v21 = vsub.f32 %v2459_v3, %v2521_v0 }
0x1a0d   : > { %2580 = vperm.xlu2 %3908, %v2525_v21  }
0x1a15   : > { %3911 = vset.pattern.permute.xlu2 %v4198_v50 }
0x1a16   : > { %2609 = vperm.xlu2 %3911, %v2605_v12  }
0x1a43   : > { %v2307_v49 = vpop.permute.xlu1 %2306 }
0x1a44   : > { %v2321_v2 = vmul.f32 %v5022_v52, %v2307_v49 }
0x1a46   : > { %v2325_v56 = vsub.f32 %v2259_v15, %v2321_v2 }
0x1a48   : > { %2372 = vperm.xlu1 %3913, %v2325_v56  }
0x1a58   : > { %v2302_v3 = vpop.permute.xlu1 %2301 }
0x1a59   : > { %v2320_v13 = vmul.f32 %v5022_v52, %v2302_v3 }
0x1a5b   : > { %v2324_v14 = vsub.f32 %v2258_v1, %v2320_v13 }
0x1a5d   : > { %2367 = vperm.xlu1 %3913, %v2324_v14  }
0x1a65   : > { %3915 = vset.pattern.permute.xlu1 %v4199_v22 }
0x1a67   : > { %v2581_v9 = vpop.permute.xlu2 %2580 }
0x1a68   : > { %v2587_v27 = vmul.f32 %v5079_v25, %v2581_v9 }
0x1a6a   : > { %v2591_v32 = vsub.f32 %v2525_v21, %v2587_v27 }
0x1a6c   : > { %2646 = vperm.xlu2 %3911, %v2591_v32  }
0x1a6d   : > { %v2642_v47 = vpop.permute.xlu0 %2641 }
0x1a70   : > { %v2610_v37 = vpop.permute.xlu2 %2609 }
0x1a71   : > { %v2612_v4 = vmul.f32 %v2610_v37, %v2590_v60 }
0x1a73   : > { %v5091_v28 = vperm.slane %v2612_v4, 6 }
0x1a74   : > { %3916 = vset.pattern.permute.xlu2 %v4199_v22 }
0x1a75   : > { %v2652_v15 = vmul.f32 %v5091_v28, %v2642_v47 }
0x1a77   : > { %v5095_v52 = vsub.f32 %v2590_v60, %v2652_v15 }
0x1a79   : > { %4003 = vrcp.f32 %v5095_v52  ;;  %v2669_v6 = vand.u32 2147483648, %v5095_v52  ;;  %v2667_v51 = vand.u32 2147483647, %v5095_v52  ;;  %vm2663_vm8 = vweird.f32 %v5095_v52 }
0x1a7b   : > { %v2670_v44 = vor.u32 1.1754944e-38, %v2669_v6  ;;  %vm2668_vm10 = vcmp.eq.f32.partialorder %v2667_v51, 8.507059e+37 }
0x1a7f   : > { %v4004_v1 = vpop.eup %4003 }
0x1a80   : > { %v2659_v11 = vmul.f32 %v4004_v1, %v5095_v52  ;;  %vm2664_vm7 = vweird.f32 %v4004_v1 }
0x1a81   : > { %vm2665_vm9 = vmor %vm2663_vm8, %vm2664_vm7  ;;  %vm2681_vm7 = vcmp.eq.s32.totalorder %v4994_v54, 23 }
0x1a82   : > { %v2660_v0 = vsub.f32 1.0, %v2659_v11 }
0x1a84   : > { %v2661_v21 = vmul.f32 %v4004_v1, %v2660_v0 }
0x1a86   : > { %v2662_v42 = vadd.f32 %v4004_v1, %v2661_v21 }
0x1a88   : > { %v2666_v39 = vsel %vm2665_vm9, %v4004_v1, %v2662_v42 }
0x1a89   : > { %v2671_v60 = vsel %vm2668_vm10, %v2670_v44, %v2666_v39 }
0x1a8a   : > { %2675 = vperm.xlu2 %3916, %v2671_v60  }
0x1a92   : > { %3917 = vset.pattern.permute.xlu2 %v4195_v8  ;;  %v4200_v8 = vmov 24  }
0x1aba   : > { %v2373_v23 = vpop.permute.xlu1 %2372 }
0x1abb   : > { %v2387_v12 = vmul.f32 %v5035_v55, %v2373_v23 }
0x1abd   : > { %v2391_v49 = vsub.f32 %v2325_v56, %v2387_v12 }
0x1abf   : > { %2438 = vperm.xlu0 %3914, %v2391_v49  }
0x1ac6   : > { %v2647_v2 = vpop.permute.xlu2 %2646 }
0x1ac7   : > { %v2653_v3 = vmul.f32 %v5091_v28, %v2647_v2  ;;  %3920 = vset.pattern.permute.xlu0 %v4200_v8 }
0x1ac9   : > { %v2657_v13 = vsub.f32 %v2591_v32, %v2653_v3 }
0x1acb   : > { %2712 = vperm.xlu1 %3915, %v2657_v13  }
0x1acf   : > { %v2368_v9 = vpop.permute.xlu1 %2367 }
0x1ad0   : > { %v2386_v27 = vmul.f32 %v5035_v55, %v2368_v9 }
0x1ad2   : > { %v2390_v37 = vsub.f32 %v2324_v14, %v2386_v27  ;;  %v5113_v14 = vadd.s32 24, %v4297_v7 }
0x1ad3   : > { %3918 = vset.pattern.permute.xlu1 %v4196_v30 }
0x1ad4   : > { %2433 = vperm.xlu2 %3917, %v2390_v37   ;;  %vm2748_vm11 = vcmp.eq.s32.totalorder %v5113_v14, 24  ;;  %vm2814_vm2 = vcmp.eq.s32.totalorder %v5113_v14, 25 }
0x1adc   : > { %3919 = vset.pattern.permute.xlu2 %v4196_v30 }
0x1ae4   : > { %v2676_v4 = vpop.permute.xlu2 %2675 }
0x1ae5   : > { %v2678_v55 = vmul.f32 %v2676_v4, %v5095_v52 }
0x1ae7   : > { %v5116_v30 = vperm.slane %v2678_v55, 7 }
0x1b2e   : > { %v2434_v56 = vpop.permute.xlu2 %2433 }
0x1b2f   : > { %v2452_v47 = vmul.f32 %v5048_v59, %v2434_v56 }
0x1b31   : > { %v2456_v15 = vsub.f32 %v2390_v37, %v2452_v47  ;;  %v2439_v1 = vpop.permute.xlu0 %2438  ;;  %v4201_v47 = vmov 25  }
0x1b32   : > { %v2453_v32 = vmul.f32 %v5048_v59, %v2439_v1  ;;  %v3563_v59 = vsel %vm2748_vm11, 1.0, %v4192_v38 }
0x1b33   : > { %2499 = vperm.xlu2 %3919, %v2456_v15  }
0x1b34   : > { %v2457_v11 = vsub.f32 %v2391_v49, %v2453_v32 }
0x1b36   : > { %2504 = vperm.xlu1 %3918, %v2457_v11  }
0x1b3b   : > { %3922 = vset.pattern.permute.xlu2 %v4197_v26 }
0x1b3d   : > { %v2713_v0 = vpop.permute.xlu1 %2712 }
0x1b3e   : > { %v2719_v6 = vmul.f32 %v5116_v30, %v2713_v0  ;;  %3921 = vset.pattern.permute.xlu1 %v4200_v8 }
0x1b40   : > { %v2723_v21 = vsub.f32 %v2657_v13, %v2719_v6  ;;  %v3564_v6 = vsel %vm2814_vm2, 1.0, %v4192_v38 }
0x1b42   : > { %4005 = vrcp.f32 %v2723_v21  ;;  %v2760_v51 = vsub.f32 %v2723_v21, %v3563_v59  ;;  %v2735_v60 = vand.u32 2147483648, %v2723_v21  ;;  %v2733_v12 = vand.u32 2147483647, %v2723_v21 }
0x1b43   : > { %vm2729_vm13 = vweird.f32 %v2723_v21 }
0x1b44   : > { %2778 = vperm.xlu1 %3921, %v2760_v51   ;;  %v2736_v2 = vor.u32 1.1754944e-38, %v2735_v60  ;;  %vm2734_vm15 = vcmp.eq.f32.partialorder %v2733_v12, 8.507059e+37 }
0x1b48   : > { %v4006_v42 = vpop.eup %4005 }
0x1b49   : > { %v2725_v44 = vmul.f32 %v4006_v42, %v2723_v21  ;;  %vm2730_vm12 = vweird.f32 %v4006_v42 }
0x1b4a   : > { %vm2731_vm14 = vmor %vm2729_vm13, %vm2730_vm12  ;;  %vm2880_vm12 = vcmp.eq.s32.totalorder %v5113_v14, 26 }
0x1b4b   : > { %v2726_v39 = vsub.f32 1.0, %v2725_v44 }
0x1b4c   : > { %3923 = vset.pattern.permute.xlu1 %v4197_v26 }
0x1b4d   : > { %v2727_v23 = vmul.f32 %v4006_v42, %v2726_v39 }
0x1b4f   : > { %v2728_v49 = vadd.f32 %v4006_v42, %v2727_v23 }
0x1b51   : > { %v2732_v3 = vsel %vm2731_vm14, %v4006_v42, %v2728_v49 }
0x1b52   : > { %v2737_v9 = vsel %vm2734_vm15, %v2736_v2, %v2732_v3 }
0x1b53   : > { %2741 = vperm.xlu0 %3920, %v2737_v9  }
0x1b5b   : > { %3924 = vset.pattern.permute.xlu0 %v4201_v47 }
0x1b8d   : > { %v2500_v13 = vpop.permute.xlu2 %2499 }
0x1b8e   : > { %v2518_v27 = vmul.f32 %v5063_v61, %v2500_v13 }
0x1b90   : > { %v2522_v37 = vsub.f32 %v2456_v15, %v2518_v27 }
0x1b92   : > { %2565 = vperm.xlu1 %3923, %v2522_v37  }
0x1b9a   : > { %3925 = vset.pattern.permute.xlu1 %v4198_v50 }
0x1ba8   : > { %v2505_v4 = vpop.permute.xlu1 %2504 }
0x1ba9   : > { %v2519_v26 = vmul.f32 %v5063_v61, %v2505_v4 }
0x1bab   : > { %v2523_v56 = vsub.f32 %v2457_v11, %v2519_v26  ;;  %v3562_v26 = vsel %vm2681_vm7, 1.0, %v4192_v38 }
0x1bad   : > { %2570 = vperm.xlu2 %3922, %v2523_v56  }
0x1bb5   : > { %3926 = vset.pattern.permute.xlu2 %v4201_v47 }
0x1bb6   : > { %v2779_v15 = vpop.permute.xlu1 %2778 }
0x1bc5   : > { %v2742_v1 = vpop.permute.xlu0 %2741 }
0x1bc6   : > { %v2744_v32 = vmul.f32 %v2742_v1, %v2723_v21  ;;  %v2693_v1 = vsub.f32 %v5095_v52, %v3562_v26 }
0x1bc8   : > { %v5128_v55 = vperm.slane %v2744_v32, 0 }
0x1bca   : > { %v2785_v0 = vmul.f32 %v5128_v55, %v2779_v15 }
0x1bcc   : > { %v2789_v59 = vsub.f32 %v2723_v21, %v2785_v0 }
0x1bce   : > { %4007 = vrcp.f32 %v2789_v59  ;;  %v2826_v61 = vsub.f32 %v2789_v59, %v3564_v6  ;;  %v2801_v44 = vand.u32 2147483648, %v2789_v59  ;;  %v2799_v60 = vand.u32 2147483647, %v2789_v59 }
0x1bcf   : > { %vm2795_vm5 = vweird.f32 %v2789_v59 }
0x1bd0   : > { %2844 = vperm.xlu0 %3924, %v2826_v61   ;;  %v2802_v12 = vor.u32 1.1754944e-38, %v2801_v44  ;;  %vm2800_vm4 = vcmp.eq.f32.partialorder %v2799_v60, 8.507059e+37 }
0x1bd4   : > { %v4008_v11 = vpop.eup %4007 }
0x1bd5   : > { %v2791_v51 = vmul.f32 %v4008_v11, %v2789_v59  ;;  %vm2796_vm3 = vweird.f32 %v4008_v11 }
0x1bd6   : > { %vm2797_vm6 = vmor %vm2795_vm5, %vm2796_vm3  ;;  %vm2946_vm3 = vcmp.eq.s32.totalorder %v5113_v14, 27  ;;  %vm3012_vm5 = vcmp.eq.s32.totalorder %v5113_v14, 28 }
0x1bd7   : > { %v2792_v42 = vsub.f32 1.0, %v2791_v51 }
0x1bd8   : > { %3930 = vset.pattern.permute.xlu0 %v4199_v22 }
0x1bd9   : > { %v2793_v39 = vmul.f32 %v4008_v11, %v2792_v42 }
0x1bdb   : > { %v2794_v23 = vadd.f32 %v4008_v11, %v2793_v39 }
0x1bdd   : > { %v2798_v49 = vsel %vm2797_vm6, %v4008_v11, %v2794_v23 }
0x1bde   : > { %v2803_v2 = vsel %vm2800_vm4, %v2802_v12, %v2798_v49 }
0x1bdf   : > { %2807 = vperm.xlu2 %3926, %v2803_v2  }
0x1be7   : > { %3927 = vset.pattern.permute.xlu2 %v4198_v50  ;;  %v4202_v50 = vmov 26  }
0x1c04   : > { %v2566_v21 = vpop.permute.xlu1 %2565 }
0x1c05   : > { %v2584_v3 = vmul.f32 %v5079_v25, %v2566_v21 }
0x1c07   : > { %v2588_v9 = vsub.f32 %v2522_v37, %v2584_v3  ;;  %v2571_v13 = vpop.permute.xlu2 %2570 }
0x1c08   : > { %v2585_v27 = vmul.f32 %v5079_v25, %v2571_v13  ;;  %v3565_v13 = vsel %vm2880_vm12, 1.0, %v4192_v38 }
0x1c09   : > { %2631 = vperm.xlu2 %3927, %v2588_v9  }
0x1c0a   : > { %v2589_v4 = vsub.f32 %v2523_v56, %v2585_v27 }
0x1c0c   : > { %2636 = vperm.xlu1 %3925, %v2589_v4  }
0x1c11   : > { %3929 = vset.pattern.permute.xlu2 %v4199_v22 }
0x1c14   : > { %3928 = vset.pattern.permute.xlu1 %v4199_v22 }
0x1c15   : > { %2707 = vperm.xlu1 %3928, %v2693_v1  }
0x1c1d   : > { %3931 = vset.pattern.permute.xlu1 %v4202_v50 }
0x1c39   : > { %v2808_v37 = vpop.permute.xlu2 %2807 }
0x1c3a   : > { %v2810_v32 = vmul.f32 %v2808_v37, %v2789_v59 }
0x1c3c   : > { %v5143_v25 = vperm.slane %v2810_v32, 1 }
0x1c42   : > { %v2845_v56 = vpop.permute.xlu0 %2844 }
0x1c43   : > { %v2851_v15 = vmul.f32 %v5143_v25, %v2845_v56 }
0x1c45   : > { %v2855_v54 = vsub.f32 %v2789_v59, %v2851_v15 }
0x1c47   : > { %4009 = vrcp.f32 %v2855_v54  ;;  %v2867_v11 = vand.u32 2147483648, %v2855_v54  ;;  %v2865_v22 = vand.u32 2147483647, %v2855_v54  ;;  %vm2861_vm9 = vweird.f32 %v2855_v54 }
0x1c48   : > { %v2892_v1 = vsub.f32 %v2855_v54, %v3565_v13 }
0x1c49   : > { %v2868_v44 = vor.u32 1.1754944e-38, %v2867_v11  ;;  %vm2866_vm11 = vcmp.eq.f32.partialorder %v2865_v22, 8.507059e+37 }
0x1c4d   : > { %v4010_v0 = vpop.eup %4009 }
0x1c4e   : > { %v2857_v6 = vmul.f32 %v4010_v0, %v2855_v54  ;;  %vm2862_vm8 = vweird.f32 %v4010_v0 }
0x1c4f   : > { %vm2863_vm10 = vmor %vm2861_vm9, %vm2862_vm8  ;;  %vm3078_vm9 = vcmp.eq.s32.totalorder %v5113_v14, 29 }
0x1c50   : > { %v2858_v61 = vsub.f32 1.0, %v2857_v6 }
0x1c52   : > { %v2859_v51 = vmul.f32 %v4010_v0, %v2858_v61 }
0x1c54   : > { %v2860_v42 = vadd.f32 %v4010_v0, %v2859_v51 }
0x1c56   : > { %v2864_v39 = vsel %vm2863_vm10, %v4010_v0, %v2860_v42 }
0x1c57   : > { %v2869_v60 = vsel %vm2866_vm11, %v2868_v44, %v2864_v39 }
0x1c58   : > { %2873 = vperm.xlu1 %3931, %v2869_v60  }
0x1c60   : > { %3933 = vset.pattern.permute.xlu1 %v4200_v8 }
0x1c63   : > { %v2632_v23 = vpop.permute.xlu2 %2631 }
0x1c64   : > { %v2650_v59 = vmul.f32 %v5091_v28, %v2632_v23 }
0x1c66   : > { %v2654_v12 = vsub.f32 %v2588_v9, %v2650_v59  ;;  %v4203_v9 = vmov 27  }
0x1c68   : > { %2697 = vperm.xlu0 %3930, %v2654_v12  }
0x1c70   : > { %3935 = vset.pattern.permute.xlu0 %v4200_v8 }
0x1c7e   : > { %v2637_v49 = vpop.permute.xlu1 %2636 }
0x1c7f   : > { %v2651_v2 = vmul.f32 %v5091_v28, %v2637_v49  ;;  %v3566_v49 = vsel %vm2946_vm3, 1.0, %v4192_v38 }
0x1c81   : > { %v2655_v21 = vsub.f32 %v2589_v4, %v2651_v2 }
0x1c83   : > { %2702 = vperm.xlu2 %3929, %v2655_v21  }
0x1c87   : > { %v2708_v3 = vpop.permute.xlu1 %2707 }
0x1c88   : > { %v2718_v27 = vmul.f32 %v5116_v30, %v2708_v3 }
0x1c8a   : > { %v2722_v26 = vsub.f32 %v5095_v52, %v2718_v27 }
0x1c8b   : > { %3932 = vset.pattern.permute.xlu2 %v4202_v50 }
0x1c8c   : > { %2910 = vperm.xlu2 %3932, %v2892_v1   ;;  %2773 = vperm.xlu1 %3933, %v2722_v26  }
0x1c94   : > { %3934 = vset.pattern.permute.xlu2 %v4200_v8  ;;  %3937 = vset.pattern.permute.xlu1 %v4203_v9 }
0x1cca   : > { %v2874_v56 = vpop.permute.xlu1 %2873 }
0x1ccb   : > { %v2876_v0 = vmul.f32 %v2874_v56, %v2855_v54  ;;  %v4204_v56 = vmov 28  }
0x1ccd   : > { %v5159_v6 = vperm.slane %v2876_v0, 2 }
0x1cda   : > { %v2698_v28 = vpop.permute.xlu0 %2697 }
0x1cdb   : > { %v2716_v4 = vmul.f32 %v5116_v30, %v2698_v28 }
0x1cdd   : > { %v2720_v37 = vsub.f32 %v2654_v12, %v2716_v4  ;;  %v2703_v32 = vpop.permute.xlu2 %2702 }
0x1cde   : > { %v2717_v15 = vmul.f32 %v5116_v30, %v2703_v32 }
0x1cdf   : > { %2763 = vperm.xlu0 %3935, %v2720_v37  }
0x1ce0   : > { %v2721_v52 = vsub.f32 %v2655_v21, %v2717_v15 }
0x1ce2   : > { %2768 = vperm.xlu2 %3934, %v2721_v52  }
0x1ce6   : > { %v2911_v61 = vpop.permute.xlu2 %2910 }
0x1ce7   : > { %v2917_v8 = vmul.f32 %v5159_v6, %v2911_v61  ;;  %3938 = vset.pattern.permute.xlu0 %v4201_v47 }
0x1ce9   : > { %v2921_v11 = vsub.f32 %v2855_v54, %v2917_v8 }
0x1cea   : > { %3936 = vset.pattern.permute.xlu2 %v4201_v47 }
0x1ceb   : > { %4011 = vrcp.f32 %v2921_v11  ;;  %v2933_v44 = vand.u32 2147483648, %v2921_v11  ;;  %v2931_v39 = vand.u32 2147483647, %v2921_v11  ;;  %vm2927_vm14 = vweird.f32 %v2921_v11 }
0x1cec   : > { %v2958_v21 = vsub.f32 %v2921_v11, %v3566_v49 }
0x1ced   : > { %v2934_v23 = vor.u32 1.1754944e-38, %v2933_v44  ;;  %vm2932_vm2 = vcmp.eq.f32.partialorder %v2931_v39, 8.507059e+37 }
0x1cf1   : > { %v4012_v51 = vpop.eup %4011 }
0x1cf2   : > { %v2923_v22 = vmul.f32 %v4012_v51, %v2921_v11  ;;  %vm2928_vm13 = vweird.f32 %v4012_v51 }
0x1cf3   : > { %vm2929_vm15 = vmor %vm2927_vm14, %vm2928_vm13  ;;  %vm3144_vm14 = vcmp.eq.s32.totalorder %v5113_v14, 30 }
0x1cf4   : > { %v2924_v42 = vsub.f32 1.0, %v2923_v22 }
0x1cf6   : > { %v2925_v30 = vmul.f32 %v4012_v51, %v2924_v42 }
0x1cf8   : > { %v2926_v60 = vadd.f32 %v4012_v51, %v2925_v30 }
0x1cfa   : > { %v2930_v59 = vsel %vm2929_vm15, %v4012_v51, %v2926_v60 }
0x1cfb   : > { %v2935_v12 = vsel %vm2932_vm2, %v2934_v23, %v2930_v59 }
0x1cfc   : > { %2939 = vperm.xlu1 %3937, %v2935_v12  }
0x1cfe   : > { %v2774_v54 = vpop.permute.xlu1 %2773 }
0x1cff   : > { %v2784_v47 = vmul.f32 %v5128_v55, %v2774_v54 }
0x1d01   : > { %v2788_v2 = vsub.f32 %v2722_v26, %v2784_v47 }
0x1d03   : > { %2839 = vperm.xlu2 %3936, %v2788_v2  }
0x1d04   : > { %2976 = vperm.xlu1 %3937, %v2958_v21  }
0x1d0c   : > { %3939 = vset.pattern.permute.xlu1 %v4202_v50 }
0x1d3c   : > { %v2769_v3 = vpop.permute.xlu2 %2768 }
0x1d3d   : > { %v2783_v13 = vmul.f32 %v5128_v55, %v2769_v3 }
0x1d3f   : > { %v2787_v27 = vsub.f32 %v2721_v52, %v2783_v13 }
0x1d41   : > { %2834 = vperm.xlu2 %3936, %v2787_v27  }
0x1d49   : > { %3940 = vset.pattern.permute.xlu2 %v4202_v50 }
0x1d51   : > { %v2764_v1 = vpop.permute.xlu0 %2763 }
0x1d52   : > { %v2782_v28 = vmul.f32 %v5128_v55, %v2764_v1  ;;  %v3567_v55 = vsel %vm3012_vm5, 1.0, %v4192_v38 }
0x1d54   : > { %v2786_v4 = vsub.f32 %v2720_v37, %v2782_v28  ;;  %v4205_v28 = vmov 29  }
0x1d56   : > { %2829 = vperm.xlu0 %3938, %v2786_v4  }
0x1d5d   : > { %v2840_v32 = vpop.permute.xlu2 %2839 }
0x1d5e   : > { %v2850_v26 = vmul.f32 %v5143_v25, %v2840_v32  ;;  %3942 = vset.pattern.permute.xlu0 %v4204_v56 }
0x1d60   : > { %v2854_v15 = vsub.f32 %v2788_v2, %v2850_v26 }
0x1d62   : > { %2905 = vperm.xlu1 %3939, %v2854_v15  }
0x1d6e   : > { %v2940_v0 = vpop.permute.xlu1 %2939 }
0x1d6f   : > { %v2942_v61 = vmul.f32 %v2940_v0, %v2921_v11 }
0x1d71   : > { %v5173_v8 = vperm.slane %v2942_v61, 3 }
0x1d76   : > { %v2977_v50 = vpop.permute.xlu1 %2976 }
0x1d77   : > { %v2983_v52 = vmul.f32 %v5173_v8, %v2977_v50 }
0x1d79   : > { %v2987_v37 = vsub.f32 %v2921_v11, %v2983_v52 }
0x1d7b   : > { %v3024_v51 = vsub.f32 %v2987_v37, %v3567_v55  ;;  %4013 = vrcp.f32 %v2987_v37  ;;  %v2999_v12 = vand.u32 2147483648, %v2987_v37  ;;  %vm2993_vm4 = vweird.f32 %v2987_v37 }
0x1d7c   : > { %v2997_v54 = vand.u32 2147483647, %v2987_v37 }
0x1d7d   : > { %3042 = vperm.xlu0 %3942, %v3024_v51   ;;  %v3000_v11 = vor.u32 1.1754944e-38, %v2999_v12 }
0x1d7e   : > { %vm2998_vm8 = vcmp.eq.f32.partialorder %v2997_v54, 8.507059e+37 }
0x1d81   : > { %v4014_v22 = vpop.eup %4013 }
0x1d82   : > { %v2989_v42 = vmul.f32 %v4014_v22, %v2987_v37  ;;  %vm2994_vm6 = vweird.f32 %v4014_v22 }
0x1d83   : > { %vm2995_vm7 = vmor %vm2993_vm4, %vm2994_vm6  ;;  %vm3210_vm6 = vcmp.eq.s32.totalorder %v5113_v14, 31 }
0x1d84   : > { %v2990_v44 = vsub.f32 1.0, %v2989_v42 }
0x1d85   : > { %3945 = vset.pattern.permute.xlu0 %v4205_v28 }
0x1d86   : > { %v2991_v60 = vmul.f32 %v4014_v22, %v2990_v44 }
0x1d88   : > { %v2992_v59 = vadd.f32 %v4014_v22, %v2991_v60 }
0x1d8a   : > { %v2996_v47 = vsel %vm2995_vm7, %v4014_v22, %v2992_v59 }
0x1d8b   : > { %v3001_v49 = vsel %vm2998_vm8, %v3000_v11, %v2996_v47 }
0x1d9b   : > { %v2835_v30 = vpop.permute.xlu2 %2834 }
0x1d9c   : > { %v2849_v39 = vmul.f32 %v5143_v25, %v2835_v30 }
0x1d9e   : > { %v2853_v23 = vsub.f32 %v2787_v27, %v2849_v39 }
0x1da0   : > { %2900 = vperm.xlu2 %3940, %v2853_v23  }
0x1da8   : > { %3941 = vset.pattern.permute.xlu2 %v4204_v56 }
0x1da9   : > { %3005 = vperm.xlu2 %3941, %v3001_v49  }
0x1db1   : > { %3944 = vset.pattern.permute.xlu2 %v4203_v9 }
0x1dc8   : > { %v2830_v2 = vpop.permute.xlu0 %2829 }
0x1dc9   : > { %v2848_v21 = vmul.f32 %v5143_v25, %v2830_v2 }
0x1dcb   : > { %v2852_v3 = vsub.f32 %v2786_v4, %v2848_v21 }
0x1dcd   : > { %2895 = vperm.xlu1 %3939, %v2852_v3  }
0x1dd4   : > { %v2906_v13 = vpop.permute.xlu1 %2905 }
0x1dd5   : > { %v2916_v27 = vmul.f32 %v5159_v6, %v2906_v13  ;;  %3943 = vset.pattern.permute.xlu1 %v4203_v9 }
0x1dd7   : > { %v2920_v1 = vsub.f32 %v2854_v15, %v2916_v27  ;;  %v3568_v15 = vsel %vm3078_vm9, 1.0, %v4192_v38 }
0x1dd9   : > { %2971 = vperm.xlu1 %3943, %v2920_v1  }
0x1def   : > { %v3043_v4 = vpop.permute.xlu0 %3042 }
0x1dfa   : > { %v2901_v32 = vpop.permute.xlu2 %2900 }
0x1dfb   : > { %v2915_v26 = vmul.f32 %v5159_v6, %v2901_v32 }
0x1dfd   : > { %v2919_v0 = vsub.f32 %v2853_v23, %v2915_v26 }
0x1dff   : > { %2966 = vperm.xlu2 %3944, %v2919_v0  }
0x1e03   : > { %v3006_v61 = vpop.permute.xlu2 %3005 }
0x1e04   : > { %v3008_v50 = vmul.f32 %v3006_v61, %v2987_v37 }
0x1e06   : > { %v5186_v25 = vperm.slane %v3008_v50, 4 }
0x1e07   : > { %3947 = vset.pattern.permute.xlu2 %v4205_v28 }
0x1e08   : > { %v3049_v9 = vmul.f32 %v5186_v25, %v3043_v4 }
0x1e0a   : > { %v3053_v52 = vsub.f32 %v2987_v37, %v3049_v9 }
0x1e0c   : > { %4015 = vrcp.f32 %v3053_v52  ;;  %v3090_v55 = vsub.f32 %v3053_v52, %v3568_v15  ;;  %v3065_v44 = vand.u32 2147483648, %v3053_v52  ;;  %v3063_v39 = vand.u32 2147483647, %v3053_v52 }
0x1e0d   : > { %vm3059_vm11 = vweird.f32 %v3053_v52 }
0x1e0e   : > { %3108 = vperm.xlu0 %3945, %v3090_v55   ;;  %v3066_v23 = vor.u32 1.1754944e-38, %v3065_v44  ;;  %vm3064_vm13 = vcmp.eq.f32.partialorder %v3063_v39, 8.507059e+37 }
0x1e12   : > { %v4016_v51 = vpop.eup %4015 }
0x1e13   : > { %v3055_v22 = vmul.f32 %v4016_v51, %v3053_v52  ;;  %vm3060_vm10 = vweird.f32 %v4016_v51 }
0x1e14   : > { %vm3061_vm12 = vmor %vm3059_vm11, %vm3060_vm10 }
0x1e15   : > { %v3056_v42 = vsub.f32 1.0, %v3055_v22 }
0x1e17   : > { %v3057_v30 = vmul.f32 %v4016_v51, %v3056_v42  ;;  %v3569_v42 = vsel %vm3144_vm14, 1.0, %v4192_v38 }
0x1e19   : > { %v3058_v60 = vadd.f32 %v4016_v51, %v3057_v30 }
0x1e1b   : > { %v3062_v59 = vsel %vm3061_vm12, %v4016_v51, %v3058_v60  ;;  %v4206_v60 = vmov 30  }
0x1e1c   : > { %v3067_v12 = vsel %vm3064_vm13, %v3066_v23, %v3062_v59 }
0x1e1d   : > { %3071 = vperm.xlu2 %3947, %v3067_v12  }
0x1e25   : > { %3948 = vset.pattern.permute.xlu2 %v4204_v56 }
0x1e3f   : > { %v2896_v37 = vpop.permute.xlu1 %2895 }
0x1e40   : > { %v2914_v54 = vmul.f32 %v5159_v6, %v2896_v37 }
0x1e42   : > { %v2918_v47 = vsub.f32 %v2852_v3, %v2914_v54 }
0x1e44   : > { %2961 = vperm.xlu1 %3943, %v2918_v47  }
0x1e4b   : > { %v2972_v11 = vpop.permute.xlu1 %2971 }
0x1e4c   : > { %v2982_v49 = vmul.f32 %v5173_v8, %v2972_v11  ;;  %3946 = vset.pattern.permute.xlu1 %v4204_v56 }
0x1e4e   : > { %v2986_v2 = vsub.f32 %v2920_v1, %v2982_v49 }
0x1e50   : > { %3037 = vperm.xlu1 %3946, %v2986_v2  }
0x1e59   : > { %v2967_v21 = vpop.permute.xlu2 %2966 }
0x1e5a   : > { %v2981_v13 = vmul.f32 %v5173_v8, %v2967_v21 }
0x1e5c   : > { %v2985_v27 = vsub.f32 %v2919_v0, %v2981_v13 }
0x1e5e   : > { %3032 = vperm.xlu2 %3948, %v2985_v27  }
0x1e66   : > { %3949 = vset.pattern.permute.xlu2 %v4205_v28 }
0x1e77   : > { %v3072_v32 = vpop.permute.xlu2 %3071 }
0x1e78   : > { %v3074_v26 = vmul.f32 %v3072_v32, %v3053_v52 }
0x1e7a   : > { %v5198_v6 = vperm.slane %v3074_v26, 5 }
0x1e80   : > { %v3109_v61 = vpop.permute.xlu0 %3108 }
0x1e81   : > { %v3115_v3 = vmul.f32 %v5198_v6, %v3109_v61 }
0x1e83   : > { %v3119_v50 = vsub.f32 %v3053_v52, %v3115_v3 }
0x1e85   : > { %4017 = vrcp.f32 %v3119_v50  ;;  %v3131_v59 = vand.u32 2147483648, %v3119_v50  ;;  %vm3125_vm2 = vweird.f32 %v3119_v50  ;;  %v3129_v12 = vand.u32 2147483647, %v3119_v50 }
0x1e87   : > { %v3132_v54 = vor.u32 1.1754944e-38, %v3131_v59  ;;  %vm3130_vm5 = vcmp.eq.f32.partialorder %v3129_v12, 8.507059e+37 }
0x1e8b   : > { %v4018_v9 = vpop.eup %4017 }
0x1e8c   : > { %v3121_v51 = vmul.f32 %v4018_v9, %v3119_v50  ;;  %vm3126_vm15 = vweird.f32 %v4018_v9 }
0x1e8d   : > { %vm3127_vm3 = vmor %vm3125_vm2, %vm3126_vm15 }
0x1e8e   : > { %v3122_v22 = vsub.f32 1.0, %v3121_v51 }
0x1e90   : > { %v3123_v30 = vmul.f32 %v4018_v9, %v3122_v22 }
0x1e92   : > { %v3124_v23 = vadd.f32 %v4018_v9, %v3123_v30 }
0x1e94   : > { %v3128_v37 = vsel %vm3127_vm3, %v4018_v9, %v3124_v23 }
0x1eb6   : > { %v2962_v4 = vpop.permute.xlu1 %2961 }
0x1eb7   : > { %v2980_v56 = vmul.f32 %v5173_v8, %v2962_v4  ;;  %v3156_v8 = vsub.f32 %v3119_v50, %v3569_v42 }
0x1eb8   : > { %v3033_v1 = vpop.permute.xlu2 %3032 }
0x1eb9   : > { %v2984_v15 = vsub.f32 %v2918_v47, %v2980_v56  ;;  %v3047_v0 = vmul.f32 %v5186_v25, %v3033_v1  ;;  %v3133_v47 = vsel %vm3130_vm5, %v3132_v54, %v3128_v37 }
0x1ebb   : > { %v3051_v55 = vsub.f32 %v2985_v27, %v3047_v0  ;;  %3027 = vperm.xlu1 %3946, %v2984_v15  }
0x1ebd   : > { %3098 = vperm.xlu0 %3945, %v3051_v55  }
0x1ec2   : > { %v3038_v44 = vpop.permute.xlu1 %3037 }
0x1ec3   : > { %v3048_v52 = vmul.f32 %v5186_v25, %v3038_v44  ;;  %3950 = vset.pattern.permute.xlu1 %v4205_v28  ;;  %v4207_v28 = vmov 31  }
0x1ec5   : > { %v3052_v39 = vsub.f32 %v2986_v2, %v3048_v52  ;;  %3952 = vset.pattern.permute.xlu0 %v4206_v60 }
0x1ec6   : > { %3174 = vperm.xlu0 %3952, %v3156_v8  }
0x1ec7   : > { %3103 = vperm.xlu2 %3949, %v3052_v39  }
0x1ece   : > { %3954 = vset.pattern.permute.xlu0 %v4207_v28 }
0x1ecf   : > { %3951 = vset.pattern.permute.xlu2 %v4206_v60 }
0x1ed0   : > { %3137 = vperm.xlu2 %3951, %v3133_v47  }
0x1f21   : > { %v3104_v11 = vpop.permute.xlu2 %3103 }
0x1f22   : > { %v3114_v3 = vmul.f32 %v5198_v6, %v3104_v11 }
0x1f24   : > { %v3118_v1 = vsub.f32 %v3052_v39, %v3114_v3 }
0x1f2a   : > { %v3138_v13 = vpop.permute.xlu2 %3137 }
0x1f2b   : > { %v3140_v61 = vmul.f32 %v3138_v13, %v3119_v50 }
0x1f2d   : > { %v3028_v49 = vpop.permute.xlu1 %3027  ;;  %v3177_v4 = vperm.slane %v3140_v61, 6 }
0x1f2e   : > { %v3046_v2 = vmul.f32 %v5186_v25, %v3028_v49  ;;  %v3570_v25 = vsel %vm3210_vm6, 1.0, %v4192_v38 }
0x1f2f   : > { %v3099_v21 = vpop.permute.xlu0 %3098 }
0x1f30   : > { %v3050_v27 = vsub.f32 %v2984_v15, %v3046_v2  ;;  %v3113_v32 = vmul.f32 %v5198_v6, %v3099_v21 }
0x1f32   : > { %v3117_v26 = vsub.f32 %v3051_v55, %v3113_v32  ;;  %3093 = vperm.xlu1 %3950, %v3050_v27  }
0x1f34   : > { %3164 = vperm.xlu2 %3951, %v3117_v26  }
0x1f38   : > { %v3175_v56 = vpop.permute.xlu0 %3174 }
0x1f39   : > { %v3181_v9 = vmul.f32 %v3177_v4, %v3175_v56 }
0x1f3a   : > { %3953 = vset.pattern.permute.xlu1 %v4206_v60 }
0x1f3b   : > { %v3185_v0 = vsub.f32 %v3119_v50, %v3181_v9  ;;  %3169 = vperm.xlu1 %3953, %v3118_v1  }
0x1f3c   : > { %3956 = vset.pattern.permute.xlu2 %v4207_v28 }
0x1f3d   : > { %4019 = vrcp.f32 %v3185_v0  ;;  %v3222_v15 = vsub.f32 %v3185_v0, %v3570_v25  ;;  %v3197_v42 = vand.u32 2147483648, %v3185_v0  ;;  %v3195_v52 = vand.u32 2147483647, %v3185_v0 }
0x1f3e   : > { %vm3191_vm7 = vweird.f32 %v3185_v0 }
0x1f3f   : > { %3240 = vperm.xlu0 %3954, %v3222_v15   ;;  %v3198_v8 = vor.u32 1.1754944e-38, %v3197_v42  ;;  %vm3196_vm9 = vcmp.eq.f32.partialorder %v3195_v52, 8.507059e+37 }
0x1f43   : > { %v4020_v55 = vpop.eup %4019 }
0x1f44   : > { %v3187_v51 = vmul.f32 %v4020_v55, %v3185_v0  ;;  %vm3192_vm4 = vweird.f32 %v4020_v55 }
0x1f45   : > { %vm3193_vm8 = vmor %vm3191_vm7, %vm3192_vm4 }
0x1f46   : > { %v3188_v22 = vsub.f32 1.0, %v3187_v51 }
0x1f48   : > { %v3189_v44 = vmul.f32 %v4020_v55, %v3188_v22 }
0x1f4a   : > { %v3190_v14 = vadd.f32 %v4020_v55, %v3189_v44  ;;  %v4022_v44 = vld [vmem:[%s4787_s27] sm:$0xff] }
0x1f4b   : > { %v3253_v52 = vsub.f32 %v4143_v45, %v4022_v44  ;;  %v1095_v45 = vld [vmem:[%s1094_s4] sm:$0x1] }
0x1f4c   : > { %v3194_v30 = vsel %vm3193_vm8, %v4020_v55, %v3190_v14 }
0x1f4d   : > { %v3199_v38 = vsel %vm3196_vm9, %v3198_v8, %v3194_v30  ;;  %v4023_v8 = vld [vmem:[%s4787_s27 + $0x10] sm:$0xff] }
0x1f4e   : > { %3203 = vperm.xlu2 %3956, %v3199_v38   ;;  %v3255_v30 = vsub.f32 %v4135_v41, %v4023_v8 }
0x1f8e   : > { %v3165_v50 = vpop.permute.xlu2 %3164 }
0x1f8f   : > { %v3179_v39 = vmul.f32 %v3177_v4, %v3165_v50  ;;  %v3252_v50 = vsub.f32 %v4147_v33, %v1095_v45 }
0x1f91   : > { %v3183_v60 = vsub.f32 %v3117_v26, %v3179_v39 }
0x1f93   : > { %3230 = vperm.xlu2 %3956, %v3183_v60  }
0x1fa4   : > { %v3094_v23 = vpop.permute.xlu1 %3093 }
0x1fa5   : > { %v3112_v59 = vmul.f32 %v5198_v6, %v3094_v23 }
0x1fa7   : > { %v3116_v12 = vsub.f32 %v3050_v27, %v3112_v59 }
0x1fa8   : > { %v3204_v37 = vpop.permute.xlu2 %3203 }
0x1fa9   : > { %3159 = vperm.xlu1 %3953, %v3116_v12   ;;  %v3206_v54 = vmul.f32 %v3204_v37, %v3185_v0  ;;  %v1086_v37 = vld [vmem:[%s1085_s2] sm:$0x1] }
0x1fab   : > { %v3243_v49 = vperm.slane %v3206_v54, 7 }
0x1fad   : > { %v3170_v47 = vpop.permute.xlu1 %3169 }
0x1fae   : > { %v3180_v11 = vmul.f32 %v3177_v4, %v3170_v47 }
0x1fb0   : > { %v3184_v2 = vsub.f32 %v3118_v1, %v3180_v11  ;;  %v4025_v11 = vld [vmem:[%s4766_s13] sm:$0xff] }
0x1fb1   : > { %v3241_v21 = vpop.permute.xlu0 %3240  ;;  %3955 = vset.pattern.permute.xlu1 %v4207_v28 }
0x1fb2   : > { %v3247_v13 = vmul.f32 %v3243_v49, %v3241_v21  ;;  %3235 = vperm.xlu1 %3955, %v3184_v2  }
0x1fb4   : > { %v3251_v32 = vsub.f32 %v3185_v0, %v3247_v13  ;;  %v4027_v13 = vld [vmem:[%s4766_s13 + $0x10] sm:$0xff] }
0x1fb6   : > { %3267 = vrot.lane.b32.xlu2 %v3251_v32, %s4208_s28 }
0x1fed   : > { %v3231_v26 = vpop.permute.xlu2 %3230 }
0x1fee   : > { %v3245_v56 = vmul.f32 %v3243_v49, %v3231_v26  ;;  %v4028_v26 = vld [vmem:[%s4766_s13 + $0x18] sm:$0xff] }
0x1ff0   : > { %v3249_v1 = vsub.f32 %v3183_v60, %v3245_v56 }
0x2010   : > { %v3268_v61 = vpop.permute.xlu2 %3267 }
0x2011   : > { %3288 = vmatpush.msra.mxu0 %v3268_v61  ;;  %3321 = vmatpush.msra.mxu1 %v3268_v61 }
0x2012   : > { %3584 = vmatpush.msra.mxu3 %v3268_v61 }
0x201b   : > { %v3160_v6 = vpop.permute.xlu1 %3159 }
0x201c   : > { %v3178_v27 = vmul.f32 %v3177_v4, %v3160_v6  ;;  %v4021_v4 = vld [vmem:[%s4787_s27 + $0x8] sm:$0xff] }
0x201d   : > { %v3254_v42 = vsub.f32 %v4139_v63, %v4021_v4  ;;  %v4024_v63 = vld [vmem:[%s4787_s27 + $0x18] sm:$0xff] }
0x201e   : > { %v3182_v3 = vsub.f32 %v3116_v12, %v3178_v27  ;;  %v3256_v38 = vsub.f32 %v4131_v5, %v4024_v63 }
0x2020   : > { %3225 = vperm.xlu1 %3955, %v3182_v3  }
0x2024   : > { %v3236_v9 = vpop.permute.xlu1 %3235 }
0x2025   : > { %v3246_v25 = vmul.f32 %v3243_v49, %v3236_v9 }
0x2027   : > { %v3250_v28 = vsub.f32 %v3184_v2, %v3246_v25  ;;  %v4026_v2 = vld [vmem:[%s4766_s13 + $0x8] sm:$0xff] }
0x2028   : > { %3263 = vrot.lane.b32.xlu1 %v3249_v1, %s4208_s28 }
0x2029   : > { %3265 = vrot.lane.b32.xlu0 %v3250_v28, %s4208_s28 }
0x2092   : > { %v3226_v0 = vpop.permute.xlu1 %3225 }
0x2093   : > { %v3244_v15 = vmul.f32 %v3243_v49, %v3226_v0 }
0x2095   : > { %v3248_v55 = vsub.f32 %v3182_v3, %v3244_v15 }
0x2097   : > { %3261 = vrot.lane.b32.xlu2 %v3248_v55, %s4208_s28 }
0x209a   : > { %v3264_v22 = vpop.permute.xlu1 %3263 }
0x209b   : > { %v3266_v51 = vpop.permute.xlu0 %3265 }
0x209c   : > { %3289 = vmatpush.msra.mxu0 %v3266_v51  ;;  %3322 = vmatpush.msra.mxu1 %v3266_v51 }
0x209d   : > { %3585 = vmatpush.msra.mxu3 %v3266_v51 }
0x209e   : > { %3290 = vmatpush.msra.mxu0 %v3264_v22  ;;  %3323 = vmatpush.msra.mxu1 %v3264_v22 }
0x209f   : > { %3586 = vmatpush.msra.mxu3 %v3264_v22 }
0x20f1   : > { %v3262_v14 = vpop.permute.xlu2 %3261 }
0x20f2   : > { %3338 = vxpose.xlu0.b32.start [1/4] (short) (narrow) %v3262_v14, 32  ;;  %3291 = vmatpush.msra.mxu0 %v3262_v14 }
0x20f3   : > { %3324 = vmatpush.msra.mxu1 %v3262_v14  ;;  %3587 = vmatpush.msra.mxu3 %v3262_v14 }
0x20f4   : > { %3573 = vmatmul.msk.f32.vlgmr.msra.gmra.mxu3 %vm78_vm1, %v3254_v42  ;;  %3572 = vmatmul.msk.f32.vlgmr.msra.gmra.mxu1 %vm78_vm1, %v3253_v52 }
0x20f5   : > { %3571 = vmatmul.msk.f32.vlgmr.msra.gmra.mxu0 %vm78_vm1, %v3252_v50 }
0x20fa   : > { %3339 = vxpose.xlu0.b32.cont [2/4] (short) (narrow) %v3264_v22, 32 }
0x20fc   : > { %3574 = vmatmul.msk.f32.gmra.mxu3 %vm78_vm1, %v3255_v30 }
0x2102   : > { %3340 = vxpose.xlu0.b32.cont [3/4] (short) (narrow) %v3266_v51, 32 }
0x2104   : > { %3575 = vmatmul.msk.f32.gmra.mxu3 %vm78_vm1, %v3256_v38 }
0x210a   : > { %3341 = vxpose.xlu0.b32.end [4/4] (short) (narrow) %v3268_v61, 32 }
0x2171   : > { %v3326_v5 = vpop.f32.mrf.mxu1 }
0x2172   : > { %v3293_v54 = vpop.f32.mrf.mxu0 }
0x2177   : > { %v3329_v41 = vpop.f32.mrf.mxu3 }
0x217f   : > { %v3332_v39 = vpop.f32.mrf.mxu3 }
0x2187   : > { %v3335_v60 = vpop.f32.mrf.mxu3 }
0x2188   : > { %3394 = vmatpush.msrb.mxu0 %v3335_v60  ;;  %3588 = vmatpush.msra.mxu2 %v3335_v60 }
0x218a   : > { %3395 = vmatpush.msrb.mxu0 %v3332_v39  ;;  %3589 = vmatpush.msra.mxu2 %v3332_v39 }
0x218c   : > { %3396 = vmatpush.msrb.mxu0 %v3329_v41  ;;  %3590 = vmatpush.msra.mxu2 %v3329_v41 }
0x218e   : > { %3397 = vmatpush.msrb.mxu0 %v3326_v5  ;;  %3591 = vmatpush.msra.mxu2 %v3326_v5 }
0x2196   : > { %v3354_v23 = vpop.trf.xlu0 }
0x2197   : > { %3576 = vmatmul.msk.f32.vlgmr.msrb.gmra.mxu0 %vm78_vm1, %v3354_v23 }
0x219e   : > { %v3355_v33 = vpop.trf.xlu0 }
0x219f   : > { %3577 = vmatmul.msk.f32.vlgmr.msra.gmra.mxu2 %vm78_vm1, %v3355_v33  ;;  %v3296_v33 = vadd.f32 %v3293_v54, %v1086_v37  }
0x21a1   : > { %3415 = vst.msk [vmem:[%s1085_s2] sm:$0x1] %vm76_vm0, %v3296_v33 }
0x21a6   : > { %v3356_v59 = vpop.trf.xlu0 }
0x21a7   : > { %3578 = vmatmul.msk.f32.gmra.mxu2 %vm78_vm1, %v3356_v59 }
0x21ae   : > { %v3357_v12 = vpop.trf.xlu0 }
0x21af   : > { %3579 = vmatmul.msk.f32.gmra.mxu2 %vm78_vm1, %v3357_v12 }
0x2214   : > { %v3399_v47 = vpop.f32.mrf.mxu0 }
0x2215   : > { %v3411_v45 = vadd.f32 %v4025_v11, %v3399_v47  }
0x2217   : > { %3416 = vst.msk [vmem:[%s4766_s13] sm:$0xff] %vm78_vm1, %v3411_v45 }
0x2222   : > { %v3402_v49 = vpop.f32.mrf.mxu2 }
0x2223   : > { %v3412_v63 = vadd.f32 %v4026_v2, %v3402_v49  }
0x2225   : > { %3417 = vst.msk [vmem:[%s4766_s13 + $0x8] sm:$0xff] %vm78_vm1, %v3412_v63 }
0x222a   : > { %v3405_v21 = vpop.f32.mrf.mxu2 }
0x222b   : > { %v3413_v41 = vadd.f32 %v4027_v13, %v3405_v21  }
0x222d   : > { %3418 = vst.msk [vmem:[%s4766_s13 + $0x10] sm:$0xff] %vm78_vm1, %v3413_v41 }
0x2231   :  { %1077 = sbr.rel (!%p1075_p1) target bundleno = 3202 (0xc82), region = 112 }
0x2232   : > { %v3408_v32 = vpop.f32.mrf.mxu2 }
0x2233   : > { %v3414_v5 = vadd.f32 %v4028_v26, %v3408_v32  }
0x2235   : > { %3419 = vst.msk [vmem:[%s4766_s13 + $0x18] sm:$0xff] %vm78_vm1, %v3414_v5 }
0x2236   :  { %3436 = vsyncpa [#allocation3], 1 }
0x2237   :  { %3437 = vsyncpa [#allocation5], 1 }

</bundles_post_ra>
